<compile_context>
chip_gen: v5e
topology: v5e:2x2
jax: 0.10.0
libtpu: 0.0.40
codegen_flags: <defaults>
</compile_context>

<pallas_src>
import functools

import jax
import jax.numpy as jnp
from jax.experimental import pallas as pl
from jax.experimental.pallas import tpu as pltpu


# --------------------------------------------------------------------------------------
# Fused kernel: per time-chunk -> gather fused input gates, GRU recurrence, LayerNorm
# --------------------------------------------------------------------------------------
def _gru_fused_kernel(ids_ref,                       # SMEM (scalar prefetch): (T_pad*B,) int32
                      fused_ref,                     # (V, 3Hp) fused emb+input-proj table (f32)
                      whh_ref,                       # (Hp, 3Hp) recurrent weights (param_dtype)
                      bhn_ref,                       # (1, Hp)  b_hn (stays inside r*(Wh h + b_hn))
                      h0_ref,                        # (B, Hp)  initial hidden state
                      gamma_ref, beta_ref,           # (1, Hp)  LayerNorm affine
                      out_ref,                       # (Tc, B, Hp) per-chunk normalized outputs
                      hT_ref,                        # (B, Hp)  final hidden state
                      gx_scr,                        # VMEM (B, 3Hp) gathered gate inputs
                      h_scr,                         # VMEM (B, Hp)  carried hidden state
                      *, time_chunk, batch, hp, h_real, t_real, mask_time):
    c = pl.program_id(0)

    @pl.when(c == 0)
    def _():
        h_scr[...] = h0_ref[...]

    h = h_scr[...]                                   # (B, Hp) f32, carried across chunks
    gamma = gamma_ref[...]
    beta = beta_ref[...]
    bhn = bhn_ref[...]
    inv_h = 1.0 / float(h_real)

    # Static unroll over the chunk: straight-line code for the LLO scheduler.
    for tt in range(time_chunk):
        t = c * time_chunk + tt                      # global time step (traced scalar)

        # ---- gather fused input-projection rows for this step (ids live in SMEM) ----
        for b in range(batch):
            idx = ids_ref[t * batch + b]
            gx_scr[pl.ds(b, 1), :] = fused_ref[pl.ds(idx, 1), :]
        gx = gx_scr[...]                             # (B, 3Hp) f32, b_ir+b_hr / b_iz+b_hz folded

        # ---- one wide recurrent matmul; gates lane-sliced at 128-aligned offsets ----
        gh = jnp.dot(h.astype(whh_ref.dtype), whh_ref[...],
                     preferred_element_type=jnp.float32)          # (B, 3Hp)
        r = jax.nn.sigmoid(gx[:, 0:hp] + gh[:, 0:hp])
        z = jax.nn.sigmoid(gx[:, hp:2 * hp] + gh[:, hp:2 * hp])
        n = jnp.tanh(gx[:, 2 * hp:3 * hp] + r * (gh[:, 2 * hp:3 * hp] + bhn))
        h_new = (1.0 - z) * n + z * h
        if mask_time:                                # only emitted when T was padded up
            h_new = jnp.where(t < t_real, h_new, h)
        h = h_new

        # ---- LayerNorm over the real H features (padded features are exactly zero) ----
        mean = jnp.sum(h, axis=-1, keepdims=True) * inv_h
        var = jnp.sum(h * h, axis=-1, keepdims=True) * inv_h - mean * mean
        y = (h - mean) * jax.lax.rsqrt(var + 1e-5) * gamma + beta
        out_ref[tt] = y.astype(out_ref.dtype)        # dropout = identity (inference mode)

    h_scr[...] = h

    @pl.when(c == pl.num_programs(0) - 1)
    def _():
        hT_ref[...] = h                              # stored once, on the last chunk only


# --------------------------------------------------------------------------------------
# Wrapper
# --------------------------------------------------------------------------------------
def _pad_gate_cols(m, h, hp):
    """(.., 3h) -> (.., 3hp): zero-pad each gate block [r|z|n] up to hp lanes."""
    if hp == h:
        return m
    pads = [(0, 0)] * (m.ndim - 1) + [(0, hp - h)]
    return jnp.concatenate(
        [jnp.pad(m[..., g * h:(g + 1) * h], pads) for g in range(3)], axis=-1)


@functools.partial(jax.jit, static_argnames=("param_dtype", "time_chunk"))
def predictor_forward(token_idxs, emb_table, w_ih_t, b_ih, w_hh_t, b_hh, ln_w, ln_b, h0,
                      *, param_dtype=jnp.bfloat16, time_chunk=8):
    """token_idxs (B,T) int32; emb_table (V,E); w_ih_t (E,3H); b_ih (1,3H);
    w_hh_t (H,3H); b_hh (1,3H); ln_w/ln_b (1,H); h0 (B,H).  Gate order [r|z|n].
    Returns (outputs (B,T,H) f32, states (1,B,H) f32)."""
    B, T = token_idxs.shape
    V, _E = emb_table.shape
    H = w_hh_t.shape[0]
    Hp = ((H + 127) // 128) * 128                     # lane-dense hidden width
    Tc = ((int(time_chunk) + 7) // 8) * 8             # time steps per grid step (mult. of 8)
    T_pad = ((T + Tc - 1) // Tc) * Tc
    n_chunks = T_pad // Tc

    # ---- one-time XLA precompute: fused embedding + input-projection table ----
    # b_hr / b_hz fold into the table; b_hn must stay inside r*(W_hn h + b_hn).
    gate_bias = b_ih + jnp.concatenate(
        [b_hh[:, 0:H], b_hh[:, H:2 * H], jnp.zeros((1, H), b_hh.dtype)], axis=-1)
    fused = emb_table.astype(jnp.float32) @ w_ih_t.astype(jnp.float32) + gate_bias
    # Table stays f32: in-VMEM dynamic row gather is 32-bit friendly; at large V the
    # right fix is a bf16 table in HBM + DMA gather (see TODO above).
    fused_p = _pad_gate_cols(fused, H, Hp).astype(jnp.float32)                 # (V, 3Hp)

    whh_p = _pad_gate_cols(w_hh_t.astype(jnp.float32), H, Hp)                  # (H, 3Hp)
    whh_p = jnp.pad(whh_p, ((0, Hp - H), (0, 0))).astype(param_dtype)          # (Hp, 3Hp)
    bhn_p = jnp.pad(b_hh[:, 2 * H:3 * H].astype(jnp.float32), ((0, 0), (0, Hp - H)))
    gamma_p = jnp.pad(ln_w.astype(jnp.float32), ((0, 0), (0, Hp - H)))
    beta_p = jnp.pad(ln_b.astype(jnp.float32), ((0, 0), (0, Hp - H)))
    h0_p = jnp.pad(h0.astype(jnp.float32), ((0, 0), (0, Hp - H)))              # (B, Hp)

    # Time-major flattened token ids -> SMEM via scalar prefetch.
    ids_flat = token_idxs.T.reshape(T * B).astype(jnp.int32)
    ids_flat = jnp.pad(ids_flat, (0, (T_pad - T) * B))

    kernel = functools.partial(
        _gru_fused_kernel, time_chunk=Tc, batch=B, hp=Hp, h_real=H, t_real=T,
        mask_time=(T_pad != T))

    out_tm, h_last = pl.pallas_call(
        kernel,
        out_shape=(jax.ShapeDtypeStruct((T_pad, B, Hp), jnp.float32),
                   jax.ShapeDtypeStruct((B, Hp), jnp.float32)),
        grid_spec=pltpu.PrefetchScalarGridSpec(
            num_scalar_prefetch=1,                    # token ids -> SMEM
            grid=(n_chunks,),
            in_specs=[
                pl.BlockSpec((V, 3 * Hp), lambda c, ids: (0, 0)),     # fused table (resident)
                pl.BlockSpec((Hp, 3 * Hp), lambda c, ids: (0, 0)),    # W_hh^T (resident)
                pl.BlockSpec((1, Hp), lambda c, ids: (0, 0)),         # b_hn
                pl.BlockSpec((B, Hp), lambda c, ids: (0, 0)),         # h0
                pl.BlockSpec((1, Hp), lambda c, ids: (0, 0)),         # LN gamma
                pl.BlockSpec((1, Hp), lambda c, ids: (0, 0)),         # LN beta
            ],
            out_specs=[
                pl.BlockSpec((Tc, B, Hp), lambda c, ids: (c, 0, 0)),  # per-chunk outputs
                pl.BlockSpec((B, Hp), lambda c, ids: (0, 0)),         # final hidden state
            ],
            scratch_shapes=[
                pltpu.VMEM((B, 3 * Hp), jnp.float32),    # gathered gate inputs (one step)
                pltpu.VMEM((B, Hp), jnp.float32),        # carried hidden state
            ],
        ),
        compiler_params=pltpu.CompilerParams(
            dimension_semantics=("arbitrary",),          # time recurrence is serial
            vmem_limit_bytes=32 * 1024 * 1024,
        ),
    )(ids_flat, fused_p, whh_p, bhn_p, h0_p, gamma_p, beta_p)

    # Transpose + unpad fuse into one XLA copy (no separate full-transpose pass).
    outputs = jnp.transpose(out_tm, (1, 0, 2))[:, :T, :H]
    return outputs, h_last[None, :, :H]


# --------------------------------------------------------------------------------------
# Pure-JAX reference (faithful PyTorch semantics: embedding -> GRU scan -> LayerNorm)
# --------------------------------------------------------------------------------------
def _reference(token_idxs, emb_table, w_ih_t, b_ih, w_hh_t, b_hh, ln_w, ln_b, h0):
    H = w_hh_t.shape[0]
    embs = emb_table[token_idxs]                                  # (B, T, E)

    def step(h, x_t):
        gx = x_t @ w_ih_t + b_ih[0]
        gh = h @ w_hh_t + b_hh[0]
        r = jax.nn.sigmoid(gx[:, :H] + gh[:, :H])
        z = jax.nn.sigmoid(gx[:, H:2 * H] + gh[:, H:2 * H])
        n = jnp.tanh(gx[:, 2 * H:] + r * gh[:, 2 * H:])
        h_new = (1.0 - z) * n + z * h
        return h_new, h_new

    xs = jnp.transpose(embs, (1, 0, 2))                           # (T, B, E)
    h_last, hs = jax.lax.scan(step, h0, xs)
    hs = jnp.transpose(hs, (1, 0, 2))                             # (B, T, H)
    mean = hs.mean(-1, keepdims=True)
    var = ((hs - mean) ** 2).mean(-1, keepdims=True)
    y = (hs - mean) / jnp.sqrt(var + 1e-5) * ln_w[0] + ln_b[0]
    return y, h_last[None]


if __name__ == "__main__":
    key = jax.random.PRNGKey(0)
    k_tok, k_emb, k_wih, k_whh, k_bih, k_bhh, k_g, k_b = jax.random.split(key, 8)

    B, T = 2, 12                                     # T=12 exercises chunking + time masking
    num_embeddings, embedding_dim, d_model = 32, 32, 32

    token_idxs = jax.random.randint(k_tok, (B, T), 0, num_embeddings, dtype=jnp.int32)
    emb_table = jax.random.normal(k_emb, (num_embeddings, embedding_dim), jnp.float32)
    s = 1.0 / (d_model ** 0.5)
    w_ih_t = jax.random.uniform(k_wih, (embedding_dim, 3 * d_model), jnp.float32, -s, s)
    w_hh_t = jax.random.uniform(k_whh, (d_model, 3 * d_model), jnp.float32, -s, s)
    b_ih = jax.random.uniform(k_bih, (1, 3 * d_model), jnp.float32, -s, s)
    b_hh = jax.random.uniform(k_bhh, (1, 3 * d_model), jnp.float32, -s, s)
    ln_w = 1.0 + 0.1 * jax.random.normal(k_g, (1, d_model), jnp.float32)
    ln_b = 0.1 * jax.random.normal(k_b, (1, d_model), jnp.float32)
    h0 = jnp.zeros((B, d_model), jnp.float32)        # states=None -> zero initial GRU state

    ref_out, ref_states = _reference(token_idxs, emb_table, w_ih_t, b_ih,
                                     w_hh_t, b_hh, ln_w, ln_b, h0)

    # f32 weight path: validates GRU / LayerNorm semantics tightly.
    out32, st32 = predictor_forward(token_idxs, emb_table, w_ih_t, b_ih, w_hh_t, b_hh,
                                    ln_w, ln_b, h0, param_dtype=jnp.float32)
    out32 = jax.block_until_ready(out32)
    st32 = jax.block_until_ready(st32)
    assert out32.shape == (B, T, d_model), out32.shape
    assert st32.shape == (1, B, d_model), st32.shape
    assert jnp.allclose(out32, ref_out, atol=2e-4, rtol=2e-4), \
        float(jnp.max(jnp.abs(out32 - ref_out)))
    assert jnp.allclose(st32, ref_states, atol=2e-4, rtol=2e-4), \
        float(jnp.max(jnp.abs(st32 - ref_states)))

    # bf16 recurrent-weight path (production config): loose sanity check.
    out16, st16 = predictor_forward(token_idxs, emb_table, w_ih_t, b_ih, w_hh_t, b_hh,
                                    ln_w, ln_b, h0, param_dtype=jnp.bfloat16)
    out16 = jax.block_until_ready(out16)
    st16 = jax.block_until_ready(st16)
    assert jnp.allclose(out16, ref_out, atol=3e-2, rtol=3e-2), \
        float(jnp.max(jnp.abs(out16 - ref_out)))
    assert jnp.allclose(st16, ref_states, atol=3e-2, rtol=3e-2), \
        float(jnp.max(jnp.abs(st16 - ref_states)))

    print("KERNEL_OK")
</pallas_src>

<mosaic_0001>
module attributes {stable_mosaic.version = 11 : i64} {
  func.func @_gru_fused_kernel(%arg0: i32, %arg1: memref<32xi32, #tpu.memory_space<smem>>, %arg2: memref<32x384xf32, #tpu.memory_space<vmem>>, %arg3: memref<128x384xf32, #tpu.memory_space<vmem>>, %arg4: memref<1x128xf32, #tpu.memory_space<vmem>>, %arg5: memref<2x128xf32, #tpu.memory_space<vmem>>, %arg6: memref<1x128xf32, #tpu.memory_space<vmem>>, %arg7: memref<1x128xf32, #tpu.memory_space<vmem>>, %arg8: memref<8x2x128xf32, #tpu.memory_space<vmem>>, %arg9: memref<2x128xf32, #tpu.memory_space<vmem>>, %arg10: memref<2x384xf32, #tpu.memory_space<vmem>>, %arg11: memref<2x128xf32, #tpu.memory_space<vmem>>) attributes {dimension_semantics = [#tpu.dimension_semantics<arbitrary>], iteration_bounds = array<i64: 2>, scalar_prefetch = 1 : i64, scratch_operands = 2 : i64, tpu.core_type = #tpu.core_type<tc>, window_params = [{pipeline_mode = #tpu.pipeline_mode<synchronous>, transform_indices = @transform_0, window_bounds = array<i64: 32, 384>}, {pipeline_mode = #tpu.pipeline_mode<synchronous>, transform_indices = @transform_1, window_bounds = array<i64: 128, 384>}, {pipeline_mode = #tpu.pipeline_mode<synchronous>, transform_indices = @transform_2, window_bounds = array<i64: 1, 128>}, {pipeline_mode = #tpu.pipeline_mode<synchronous>, transform_indices = @transform_3, window_bounds = array<i64: 2, 128>}, {pipeline_mode = #tpu.pipeline_mode<synchronous>, transform_indices = @transform_4, window_bounds = array<i64: 1, 128>}, {pipeline_mode = #tpu.pipeline_mode<synchronous>, transform_indices = @transform_5, window_bounds = array<i64: 1, 128>}, {transform_indices = @transform_6, window_bounds = array<i64: 8, 2, 128>}, {pipeline_mode = #tpu.pipeline_mode<synchronous>, transform_indices = @transform_7, window_bounds = array<i64: 2, 128>}]} {
    %c0_i32 = arith.constant 0 : i32
    %0 = arith.cmpi eq, %arg0, %c0_i32 : i32
    %1 = arith.extui %0 : i1 to i32
    %c0_i32_0 = arith.constant 0 : i32
    %2 = arith.cmpi ne, %1, %c0_i32_0 : i32
    scf.if %2 {
      %c0_227 = arith.constant 0 : index
      %c0_228 = arith.constant 0 : index
      %603 = vector.load %arg5[%c0_227, %c0_228] : memref<2x128xf32, #tpu.memory_space<vmem>>, vector<2x128xf32>
      %c0_229 = arith.constant 0 : index
      %c0_230 = arith.constant 0 : index
      %604 = vector.load %arg11[%c0_229, %c0_230] : memref<2x128xf32, #tpu.memory_space<vmem>>, vector<2x128xf32>
      tpu.vector_store %arg11[%c0_229, %c0_230], %603 {strides = array<i32>} : memref<2x128xf32, #tpu.memory_space<vmem>>, vector<2x128xf32>,
    } else {
    }
    %c0 = arith.constant 0 : index
    %c0_1 = arith.constant 0 : index
    %3 = vector.load %arg11[%c0, %c0_1] : memref<2x128xf32, #tpu.memory_space<vmem>>, vector<2x128xf32>
    %c0_2 = arith.constant 0 : index
    %c0_3 = arith.constant 0 : index
    %4 = vector.load %arg6[%c0_2, %c0_3] : memref<1x128xf32, #tpu.memory_space<vmem>>, vector<1x128xf32>
    %c0_4 = arith.constant 0 : index
    %c0_5 = arith.constant 0 : index
    %5 = vector.load %arg7[%c0_4, %c0_5] : memref<1x128xf32, #tpu.memory_space<vmem>>, vector<1x128xf32>
    %c0_6 = arith.constant 0 : index
    %c0_7 = arith.constant 0 : index
    %6 = vector.load %arg4[%c0_6, %c0_7] : memref<1x128xf32, #tpu.memory_space<vmem>>, vector<1x128xf32>
    %c8_i32 = arith.constant 8 : i32
    %7 = arith.muli %arg0, %c8_i32 : i32
    %c0_i32_8 = arith.constant 0 : i32
    %8 = arith.addi %7, %c0_i32_8 : i32
    %c2_i32 = arith.constant 2 : i32
    %9 = arith.muli %8, %c2_i32 : i32
    %c0_i32_9 = arith.constant 0 : i32
    %10 = arith.addi %9, %c0_i32_9 : i32
    %11 = arith.index_cast %10 : i32 to index
    %12 = memref.load %arg1[%11] : memref<32xi32, #tpu.memory_space<smem>>
    %13 = arith.index_cast %12 : i32 to index
    %c0_10 = arith.constant 0 : index
    %14 = vector.load %arg2[%13, %c0_10] : memref<32x384xf32, #tpu.memory_space<vmem>>, vector<1x384xf32>
    %c0_11 = arith.constant 0 : index
    %c0_12 = arith.constant 0 : index
    %15 = vector.load %arg10[%c0_11, %c0_12] : memref<2x384xf32, #tpu.memory_space<vmem>>, vector<1x384xf32>
    tpu.vector_store %arg10[%c0_11, %c0_12], %14 {strides = array<i32>} : memref<2x384xf32, #tpu.memory_space<vmem>>, vector<1x384xf32>,
    %c2_i32_13 = arith.constant 2 : i32
    %16 = arith.muli %8, %c2_i32_13 : i32
    %c1_i32 = arith.constant 1 : i32
    %17 = arith.addi %16, %c1_i32 : i32
    %18 = arith.index_cast %17 : i32 to index
    %19 = memref.load %arg1[%18] : memref<32xi32, #tpu.memory_space<smem>>
    %20 = arith.index_cast %19 : i32 to index
    %c0_14 = arith.constant 0 : index
    %21 = vector.load %arg2[%20, %c0_14] : memref<32x384xf32, #tpu.memory_space<vmem>>, vector<1x384xf32>
    %c1 = arith.constant 1 : index
    %c0_15 = arith.constant 0 : index
    %22 = vector.load %arg10[%c1, %c0_15] : memref<2x384xf32, #tpu.memory_space<vmem>>, vector<1x384xf32>
    tpu.vector_store %arg10[%c1, %c0_15], %21 {strides = array<i32>} : memref<2x384xf32, #tpu.memory_space<vmem>>, vector<1x384xf32>,
    %c0_16 = arith.constant 0 : index
    %c0_17 = arith.constant 0 : index
    %23 = vector.load %arg10[%c0_16, %c0_17] : memref<2x384xf32, #tpu.memory_space<vmem>>, vector<2x384xf32>
    %c0_18 = arith.constant 0 : index
    %c0_19 = arith.constant 0 : index
    %24 = vector.load %arg3[%c0_18, %c0_19] : memref<128x384xf32, #tpu.memory_space<vmem>>, vector<128x384xf32>
    %cst = arith.constant dense<0.000000e+00> : vector<2x384xf32>
    %25 = tpu.matmul %3, %24, %cst {dimension_numbers = #tpu.dot_dimension_numbers<[1], [0], [0], [1], [0, 0, 1, 1], [], []>} : vector<2x128xf32>, vector<128x384xf32>, vector<2x384xf32> -> vector<2x384xf32>
    %26 = vector.extract_strided_slice %23 {offsets = [0, 0], sizes = [2, 128], strides = [1, 1]} : vector<2x384xf32> to vector<2x128xf32>
    %27 = vector.extract_strided_slice %25 {offsets = [0, 0], sizes = [2, 128], strides = [1, 1]} : vector<2x384xf32> to vector<2x128xf32>
    %28 = arith.addf %26, %27 : vector<2x128xf32>
    %29 = arith.negf %28 : vector<2x128xf32>
    %30 = math.exp %29 : vector<2x128xf32>
    %cst_20 = arith.constant 1.000000e+00 : f32
    %31 = vector.broadcast %cst_20 : f32 to vector<2x128xf32>
    %32 = arith.addf %31, %30 : vector<2x128xf32>
    %33 = arith.divf %31, %32 : vector<2x128xf32>
    %34 = vector.extract_strided_slice %23 {offsets = [0, 128], sizes = [2, 128], strides = [1, 1]} : vector<2x384xf32> to vector<2x128xf32>
    %35 = vector.extract_strided_slice %25 {offsets = [0, 128], sizes = [2, 128], strides = [1, 1]} : vector<2x384xf32> to vector<2x128xf32>
    %36 = arith.addf %34, %35 : vector<2x128xf32>
    %37 = arith.negf %36 : vector<2x128xf32>
    %38 = math.exp %37 : vector<2x128xf32>
    %cst_21 = arith.constant 1.000000e+00 : f32
    %39 = vector.broadcast %cst_21 : f32 to vector<2x128xf32>
    %40 = arith.addf %39, %38 : vector<2x128xf32>
    %41 = arith.divf %39, %40 : vector<2x128xf32>
    %42 = vector.extract_strided_slice %23 {offsets = [0, 256], sizes = [2, 128], strides = [1, 1]} : vector<2x384xf32> to vector<2x128xf32>
    %43 = vector.extract_strided_slice %25 {offsets = [0, 256], sizes = [2, 128], strides = [1, 1]} : vector<2x384xf32> to vector<2x128xf32>
    %44 = vector.broadcast %6 : vector<1x128xf32> to vector<2x128xf32>
    %45 = arith.addf %43, %44 : vector<2x128xf32>
    %46 = arith.mulf %33, %45 : vector<2x128xf32>
    %47 = arith.addf %42, %46 : vector<2x128xf32>
    %48 = math.tanh %47 : vector<2x128xf32>
    %cst_22 = arith.constant 1.000000e+00 : f32
    %49 = vector.broadcast %cst_22 : f32 to vector<2x128xf32>
    %50 = arith.subf %49, %41 : vector<2x128xf32>
    %51 = arith.mulf %50, %48 : vector<2x128xf32>
    %52 = arith.mulf %41, %3 : vector<2x128xf32>
    %53 = arith.addf %51, %52 : vector<2x128xf32>
    %c12_i32 = arith.constant 12 : i32
    %54 = arith.cmpi slt, %8, %c12_i32 : i32
    %55 = arith.select %54, %53, %3 : vector<2x128xf32>
    %cst_23 = arith.constant dense<0.000000e+00> : vector<2xf32>
    %56 = vector.multi_reduction <add>, %55, %cst_23 [1] : vector<2x128xf32> to vector<2xf32>
    %57 = vector.shape_cast %56 : vector<2xf32> to vector<2x1xf32>
    %cst_24 = arith.constant 3.125000e-02 : f32
    %58 = vector.broadcast %cst_24 : f32 to vector<2x1xf32>
    %59 = arith.mulf %57, %58 : vector<2x1xf32>
    %60 = arith.mulf %55, %55 : vector<2x128xf32>
    %cst_25 = arith.constant dense<0.000000e+00> : vector<2xf32>
    %61 = vector.multi_reduction <add>, %60, %cst_25 [1] : vector<2x128xf32> to vector<2xf32>
    %62 = vector.shape_cast %61 : vector<2xf32> to vector<2x1xf32>
    %cst_26 = arith.constant 3.125000e-02 : f32
    %63 = vector.broadcast %cst_26 : f32 to vector<2x1xf32>
    %64 = arith.mulf %62, %63 : vector<2x1xf32>
    %65 = arith.mulf %59, %59 : vector<2x1xf32>
    %66 = arith.subf %64, %65 : vector<2x1xf32>
    %67 = vector.broadcast %59 : vector<2x1xf32> to vector<2x128xf32>
    %68 = arith.subf %55, %67 : vector<2x128xf32>
    %cst_27 = arith.constant 9.99999974E-6 : f32
    %69 = vector.broadcast %cst_27 : f32 to vector<2x1xf32>
    %70 = arith.addf %66, %69 : vector<2x1xf32>
    %71 = math.rsqrt %70 : vector<2x1xf32>
    %72 = vector.broadcast %71 : vector<2x1xf32> to vector<2x128xf32>
    %73 = arith.mulf %68, %72 : vector<2x128xf32>
    %74 = vector.broadcast %4 : vector<1x128xf32> to vector<2x128xf32>
    %75 = arith.mulf %73, %74 : vector<2x128xf32>
    %76 = vector.broadcast %5 : vector<1x128xf32> to vector<2x128xf32>
    %77 = arith.addf %75, %76 : vector<2x128xf32>
    %c0_28 = arith.constant 0 : index
    %c0_29 = arith.constant 0 : index
    %c0_30 = arith.constant 0 : index
    %78 = vector.load %arg8[%c0_28, %c0_29, %c0_30] : memref<8x2x128xf32, #tpu.memory_space<vmem>>, vector<1x2x128xf32>
    %79 = vector.shape_cast %78 : vector<1x2x128xf32> to vector<2x128xf32>
    %80 = vector.shape_cast %77 : vector<2x128xf32> to vector<1x2x128xf32>
    tpu.vector_store %arg8[%c0_28, %c0_29, %c0_30], %80 {strides = array<i32>} : memref<8x2x128xf32, #tpu.memory_space<vmem>>, vector<1x2x128xf32>,
    %c8_i32_31 = arith.constant 8 : i32
    %81 = arith.muli %arg0, %c8_i32_31 : i32
    %c1_i32_32 = arith.constant 1 : i32
    %82 = arith.addi %81, %c1_i32_32 : i32
    %c2_i32_33 = arith.constant 2 : i32
    %83 = arith.muli %82, %c2_i32_33 : i32
    %c0_i32_34 = arith.constant 0 : i32
    %84 = arith.addi %83, %c0_i32_34 : i32
    %85 = arith.index_cast %84 : i32 to index
    %86 = memref.load %arg1[%85] : memref<32xi32, #tpu.memory_space<smem>>
    %87 = arith.index_cast %86 : i32 to index
    %c0_35 = arith.constant 0 : index
    %88 = vector.load %arg2[%87, %c0_35] : memref<32x384xf32, #tpu.memory_space<vmem>>, vector<1x384xf32>
    %c0_36 = arith.constant 0 : index
    %c0_37 = arith.constant 0 : index
    %89 = vector.load %arg10[%c0_36, %c0_37] : memref<2x384xf32, #tpu.memory_space<vmem>>, vector<1x384xf32>
    tpu.vector_store %arg10[%c0_36, %c0_37], %88 {strides = array<i32>} : memref<2x384xf32, #tpu.memory_space<vmem>>, vector<1x384xf32>,
    %c2_i32_38 = arith.constant 2 : i32
    %90 = arith.muli %82, %c2_i32_38 : i32
    %c1_i32_39 = arith.constant 1 : i32
    %91 = arith.addi %90, %c1_i32_39 : i32
    %92 = arith.index_cast %91 : i32 to index
    %93 = memref.load %arg1[%92] : memref<32xi32, #tpu.memory_space<smem>>
    %94 = arith.index_cast %93 : i32 to index
    %c0_40 = arith.constant 0 : index
    %95 = vector.load %arg2[%94, %c0_40] : memref<32x384xf32, #tpu.memory_space<vmem>>, vector<1x384xf32>
    %c1_41 = arith.constant 1 : index
    %c0_42 = arith.constant 0 : index
    %96 = vector.load %arg10[%c1_41, %c0_42] : memref<2x384xf32, #tpu.memory_space<vmem>>, vector<1x384xf32>
    tpu.vector_store %arg10[%c1_41, %c0_42], %95 {strides = array<i32>} : memref<2x384xf32, #tpu.memory_space<vmem>>, vector<1x384xf32>,
    %c0_43 = arith.constant 0 : index
    %c0_44 = arith.constant 0 : index
    %97 = vector.load %arg10[%c0_43, %c0_44] : memref<2x384xf32, #tpu.memory_space<vmem>>, vector<2x384xf32>
    %c0_45 = arith.constant 0 : index
    %c0_46 = arith.constant 0 : index
    %98 = vector.load %arg3[%c0_45, %c0_46] : memref<128x384xf32, #tpu.memory_space<vmem>>, vector<128x384xf32>
    %cst_47 = arith.constant dense<0.000000e+00> : vector<2x384xf32>
    %99 = tpu.matmul %55, %98, %cst_47 {dimension_numbers = #tpu.dot_dimension_numbers<[1], [0], [0], [1], [0, 0, 1, 1], [], []>} : vector<2x128xf32>, vector<128x384xf32>, vector<2x384xf32> -> vector<2x384xf32>
    %100 = vector.extract_strided_slice %97 {offsets = [0, 0], sizes = [2, 128], strides = [1, 1]} : vector<2x384xf32> to vector<2x128xf32>
    %101 = vector.extract_strided_slice %99 {offsets = [0, 0], sizes = [2, 128], strides = [1, 1]} : vector<2x384xf32> to vector<2x128xf32>
    %102 = arith.addf %100, %101 : vector<2x128xf32>
    %103 = arith.negf %102 : vector<2x128xf32>
    %104 = math.exp %103 : vector<2x128xf32>
    %cst_48 = arith.constant 1.000000e+00 : f32
    %105 = vector.broadcast %cst_48 : f32 to vector<2x128xf32>
    %106 = arith.addf %105, %104 : vector<2x128xf32>
    %107 = arith.divf %105, %106 : vector<2x128xf32>
    %108 = vector.extract_strided_slice %97 {offsets = [0, 128], sizes = [2, 128], strides = [1, 1]} : vector<2x384xf32> to vector<2x128xf32>
    %109 = vector.extract_strided_slice %99 {offsets = [0, 128], sizes = [2, 128], strides = [1, 1]} : vector<2x384xf32> to vector<2x128xf32>
    %110 = arith.addf %108, %109 : vector<2x128xf32>
    %111 = arith.negf %110 : vector<2x128xf32>
    %112 = math.exp %111 : vector<2x128xf32>
    %cst_49 = arith.constant 1.000000e+00 : f32
    %113 = vector.broadcast %cst_49 : f32 to vector<2x128xf32>
    %114 = arith.addf %113, %112 : vector<2x128xf32>
    %115 = arith.divf %113, %114 : vector<2x128xf32>
    %116 = vector.extract_strided_slice %97 {offsets = [0, 256], sizes = [2, 128], strides = [1, 1]} : vector<2x384xf32> to vector<2x128xf32>
    %117 = vector.extract_strided_slice %99 {offsets = [0, 256], sizes = [2, 128], strides = [1, 1]} : vector<2x384xf32> to vector<2x128xf32>
    %118 = vector.broadcast %6 : vector<1x128xf32> to vector<2x128xf32>
    %119 = arith.addf %117, %118 : vector<2x128xf32>
    %120 = arith.mulf %107, %119 : vector<2x128xf32>
    %121 = arith.addf %116, %120 : vector<2x128xf32>
    %122 = math.tanh %121 : vector<2x128xf32>
    %cst_50 = arith.constant 1.000000e+00 : f32
    %123 = vector.broadcast %cst_50 : f32 to vector<2x128xf32>
    %124 = arith.subf %123, %115 : vector<2x128xf32>
    %125 = arith.mulf %124, %122 : vector<2x128xf32>
    %126 = arith.mulf %115, %55 : vector<2x128xf32>
    %127 = arith.addf %125, %126 : vector<2x128xf32>
    %c12_i32_51 = arith.constant 12 : i32
    %128 = arith.cmpi slt, %82, %c12_i32_51 : i32
    %129 = arith.select %128, %127, %55 : vector<2x128xf32>
    %cst_52 = arith.constant dense<0.000000e+00> : vector<2xf32>
    %130 = vector.multi_reduction <add>, %129, %cst_52 [1] : vector<2x128xf32> to vector<2xf32>
    %131 = vector.shape_cast %130 : vector<2xf32> to vector<2x1xf32>
    %cst_53 = arith.constant 3.125000e-02 : f32
    %132 = vector.broadcast %cst_53 : f32 to vector<2x1xf32>
    %133 = arith.mulf %131, %132 : vector<2x1xf32>
    %134 = arith.mulf %129, %129 : vector<2x128xf32>
    %cst_54 = arith.constant dense<0.000000e+00> : vector<2xf32>
    %135 = vector.multi_reduction <add>, %134, %cst_54 [1] : vector<2x128xf32> to vector<2xf32>
    %136 = vector.shape_cast %135 : vector<2xf32> to vector<2x1xf32>
    %cst_55 = arith.constant 3.125000e-02 : f32
    %137 = vector.broadcast %cst_55 : f32 to vector<2x1xf32>
    %138 = arith.mulf %136, %137 : vector<2x1xf32>
    %139 = arith.mulf %133, %133 : vector<2x1xf32>
    %140 = arith.subf %138, %139 : vector<2x1xf32>
    %141 = vector.broadcast %133 : vector<2x1xf32> to vector<2x128xf32>
    %142 = arith.subf %129, %141 : vector<2x128xf32>
    %cst_56 = arith.constant 9.99999974E-6 : f32
    %143 = vector.broadcast %cst_56 : f32 to vector<2x1xf32>
    %144 = arith.addf %140, %143 : vector<2x1xf32>
    %145 = math.rsqrt %144 : vector<2x1xf32>
    %146 = vector.broadcast %145 : vector<2x1xf32> to vector<2x128xf32>
    %147 = arith.mulf %142, %146 : vector<2x128xf32>
    %148 = vector.broadcast %4 : vector<1x128xf32> to vector<2x128xf32>
    %149 = arith.mulf %147, %148 : vector<2x128xf32>
    %150 = vector.broadcast %5 : vector<1x128xf32> to vector<2x128xf32>
    %151 = arith.addf %149, %150 : vector<2x128xf32>
    %c1_57 = arith.constant 1 : index
    %c0_58 = arith.constant 0 : index
    %c0_59 = arith.constant 0 : index
    %152 = vector.load %arg8[%c1_57, %c0_58, %c0_59] : memref<8x2x128xf32, #tpu.memory_space<vmem>>, vector<1x2x128xf32>
    %153 = vector.shape_cast %152 : vector<1x2x128xf32> to vector<2x128xf32>
    %154 = vector.shape_cast %151 : vector<2x128xf32> to vector<1x2x128xf32>
    tpu.vector_store %arg8[%c1_57, %c0_58, %c0_59], %154 {strides = array<i32>} : memref<8x2x128xf32, #tpu.memory_space<vmem>>, vector<1x2x128xf32>,
    %c8_i32_60 = arith.constant 8 : i32
    %155 = arith.muli %arg0, %c8_i32_60 : i32
    %c2_i32_61 = arith.constant 2 : i32
    %156 = arith.addi %155, %c2_i32_61 : i32
    %c2_i32_62 = arith.constant 2 : i32
    %157 = arith.muli %156, %c2_i32_62 : i32
    %c0_i32_63 = arith.constant 0 : i32
    %158 = arith.addi %157, %c0_i32_63 : i32
    %159 = arith.index_cast %158 : i32 to index
    %160 = memref.load %arg1[%159] : memref<32xi32, #tpu.memory_space<smem>>
    %161 = arith.index_cast %160 : i32 to index
    %c0_64 = arith.constant 0 : index
    %162 = vector.load %arg2[%161, %c0_64] : memref<32x384xf32, #tpu.memory_space<vmem>>, vector<1x384xf32>
    %c0_65 = arith.constant 0 : index
    %c0_66 = arith.constant 0 : index
    %163 = vector.load %arg10[%c0_65, %c0_66] : memref<2x384xf32, #tpu.memory_space<vmem>>, vector<1x384xf32>
    tpu.vector_store %arg10[%c0_65, %c0_66], %162 {strides = array<i32>} : memref<2x384xf32, #tpu.memory_space<vmem>>, vector<1x384xf32>,
    %c2_i32_67 = arith.constant 2 : i32
    %164 = arith.muli %156, %c2_i32_67 : i32
    %c1_i32_68 = arith.constant 1 : i32
    %165 = arith.addi %164, %c1_i32_68 : i32
    %166 = arith.index_cast %165 : i32 to index
    %167 = memref.load %arg1[%166] : memref<32xi32, #tpu.memory_space<smem>>
    %168 = arith.index_cast %167 : i32 to index
    %c0_69 = arith.constant 0 : index
    %169 = vector.load %arg2[%168, %c0_69] : memref<32x384xf32, #tpu.memory_space<vmem>>, vector<1x384xf32>
    %c1_70 = arith.constant 1 : index
    %c0_71 = arith.constant 0 : index
    %170 = vector.load %arg10[%c1_70, %c0_71] : memref<2x384xf32, #tpu.memory_space<vmem>>, vector<1x384xf32>
    tpu.vector_store %arg10[%c1_70, %c0_71], %169 {strides = array<i32>} : memref<2x384xf32, #tpu.memory_space<vmem>>, vector<1x384xf32>,
    %c0_72 = arith.constant 0 : index
    %c0_73 = arith.constant 0 : index
    %171 = vector.load %arg10[%c0_72, %c0_73] : memref<2x384xf32, #tpu.memory_space<vmem>>, vector<2x384xf32>
    %c0_74 = arith.constant 0 : index
    %c0_75 = arith.constant 0 : index
    %172 = vector.load %arg3[%c0_74, %c0_75] : memref<128x384xf32, #tpu.memory_space<vmem>>, vector<128x384xf32>
    %cst_76 = arith.constant dense<0.000000e+00> : vector<2x384xf32>
    %173 = tpu.matmul %129, %172, %cst_76 {dimension_numbers = #tpu.dot_dimension_numbers<[1], [0], [0], [1], [0, 0, 1, 1], [], []>} : vector<2x128xf32>, vector<128x384xf32>, vector<2x384xf32> -> vector<2x384xf32>
    %174 = vector.extract_strided_slice %171 {offsets = [0, 0], sizes = [2, 128], strides = [1, 1]} : vector<2x384xf32> to vector<2x128xf32>
    %175 = vector.extract_strided_slice %173 {offsets = [0, 0], sizes = [2, 128], strides = [1, 1]} : vector<2x384xf32> to vector<2x128xf32>
    %176 = arith.addf %174, %175 : vector<2x128xf32>
    %177 = arith.negf %176 : vector<2x128xf32>
    %178 = math.exp %177 : vector<2x128xf32>
    %cst_77 = arith.constant 1.000000e+00 : f32
    %179 = vector.broadcast %cst_77 : f32 to vector<2x128xf32>
    %180 = arith.addf %179, %178 : vector<2x128xf32>
    %181 = arith.divf %179, %180 : vector<2x128xf32>
    %182 = vector.extract_strided_slice %171 {offsets = [0, 128], sizes = [2, 128], strides = [1, 1]} : vector<2x384xf32> to vector<2x128xf32>
    %183 = vector.extract_strided_slice %173 {offsets = [0, 128], sizes = [2, 128], strides = [1, 1]} : vector<2x384xf32> to vector<2x128xf32>
    %184 = arith.addf %182, %183 : vector<2x128xf32>
    %185 = arith.negf %184 : vector<2x128xf32>
    %186 = math.exp %185 : vector<2x128xf32>
    %cst_78 = arith.constant 1.000000e+00 : f32
    %187 = vector.broadcast %cst_78 : f32 to vector<2x128xf32>
    %188 = arith.addf %187, %186 : vector<2x128xf32>
    %189 = arith.divf %187, %188 : vector<2x128xf32>
    %190 = vector.extract_strided_slice %171 {offsets = [0, 256], sizes = [2, 128], strides = [1, 1]} : vector<2x384xf32> to vector<2x128xf32>
    %191 = vector.extract_strided_slice %173 {offsets = [0, 256], sizes = [2, 128], strides = [1, 1]} : vector<2x384xf32> to vector<2x128xf32>
    %192 = vector.broadcast %6 : vector<1x128xf32> to vector<2x128xf32>
    %193 = arith.addf %191, %192 : vector<2x128xf32>
    %194 = arith.mulf %181, %193 : vector<2x128xf32>
    %195 = arith.addf %190, %194 : vector<2x128xf32>
    %196 = math.tanh %195 : vector<2x128xf32>
    %cst_79 = arith.constant 1.000000e+00 : f32
    %197 = vector.broadcast %cst_79 : f32 to vector<2x128xf32>
    %198 = arith.subf %197, %189 : vector<2x128xf32>
    %199 = arith.mulf %198, %196 : vector<2x128xf32>
    %200 = arith.mulf %189, %129 : vector<2x128xf32>
    %201 = arith.addf %199, %200 : vector<2x128xf32>
    %c12_i32_80 = arith.constant 12 : i32
    %202 = arith.cmpi slt, %156, %c12_i32_80 : i32
    %203 = arith.select %202, %201, %129 : vector<2x128xf32>
    %cst_81 = arith.constant dense<0.000000e+00> : vector<2xf32>
    %204 = vector.multi_reduction <add>, %203, %cst_81 [1] : vector<2x128xf32> to vector<2xf32>
    %205 = vector.shape_cast %204 : vector<2xf32> to vector<2x1xf32>
    %cst_82 = arith.constant 3.125000e-02 : f32
    %206 = vector.broadcast %cst_82 : f32 to vector<2x1xf32>
    %207 = arith.mulf %205, %206 : vector<2x1xf32>
    %208 = arith.mulf %203, %203 : vector<2x128xf32>
    %cst_83 = arith.constant dense<0.000000e+00> : vector<2xf32>
    %209 = vector.multi_reduction <add>, %208, %cst_83 [1] : vector<2x128xf32> to vector<2xf32>
    %210 = vector.shape_cast %209 : vector<2xf32> to vector<2x1xf32>
    %cst_84 = arith.constant 3.125000e-02 : f32
    %211 = vector.broadcast %cst_84 : f32 to vector<2x1xf32>
    %212 = arith.mulf %210, %211 : vector<2x1xf32>
    %213 = arith.mulf %207, %207 : vector<2x1xf32>
    %214 = arith.subf %212, %213 : vector<2x1xf32>
    %215 = vector.broadcast %207 : vector<2x1xf32> to vector<2x128xf32>
    %216 = arith.subf %203, %215 : vector<2x128xf32>
    %cst_85 = arith.constant 9.99999974E-6 : f32
    %217 = vector.broadcast %cst_85 : f32 to vector<2x1xf32>
    %218 = arith.addf %214, %217 : vector<2x1xf32>
    %219 = math.rsqrt %218 : vector<2x1xf32>
    %220 = vector.broadcast %219 : vector<2x1xf32> to vector<2x128xf32>
    %221 = arith.mulf %216, %220 : vector<2x128xf32>
    %222 = vector.broadcast %4 : vector<1x128xf32> to vector<2x128xf32>
    %223 = arith.mulf %221, %222 : vector<2x128xf32>
    %224 = vector.broadcast %5 : vector<1x128xf32> to vector<2x128xf32>
    %225 = arith.addf %223, %224 : vector<2x128xf32>
    %c2 = arith.constant 2 : index
    %c0_86 = arith.constant 0 : index
    %c0_87 = arith.constant 0 : index
    %226 = vector.load %arg8[%c2, %c0_86, %c0_87] : memref<8x2x128xf32, #tpu.memory_space<vmem>>, vector<1x2x128xf32>
    %227 = vector.shape_cast %226 : vector<1x2x128xf32> to vector<2x128xf32>
    %228 = vector.shape_cast %225 : vector<2x128xf32> to vector<1x2x128xf32>
    tpu.vector_store %arg8[%c2, %c0_86, %c0_87], %228 {strides = array<i32>} : memref<8x2x128xf32, #tpu.memory_space<vmem>>, vector<1x2x128xf32>,
    %c8_i32_88 = arith.constant 8 : i32
    %229 = arith.muli %arg0, %c8_i32_88 : i32
    %c3_i32 = arith.constant 3 : i32
    %230 = arith.addi %229, %c3_i32 : i32
    %c2_i32_89 = arith.constant 2 : i32
    %231 = arith.muli %230, %c2_i32_89 : i32
    %c0_i32_90 = arith.constant 0 : i32
    %232 = arith.addi %231, %c0_i32_90 : i32
    %233 = arith.index_cast %232 : i32 to index
    %234 = memref.load %arg1[%233] : memref<32xi32, #tpu.memory_space<smem>>
    %235 = arith.index_cast %234 : i32 to index
    %c0_91 = arith.constant 0 : index
    %236 = vector.load %arg2[%235, %c0_91] : memref<32x384xf32, #tpu.memory_space<vmem>>, vector<1x384xf32>
    %c0_92 = arith.constant 0 : index
    %c0_93 = arith.constant 0 : index
    %237 = vector.load %arg10[%c0_92, %c0_93] : memref<2x384xf32, #tpu.memory_space<vmem>>, vector<1x384xf32>
    tpu.vector_store %arg10[%c0_92, %c0_93], %236 {strides = array<i32>} : memref<2x384xf32, #tpu.memory_space<vmem>>, vector<1x384xf32>,
    %c2_i32_94 = arith.constant 2 : i32
    %238 = arith.muli %230, %c2_i32_94 : i32
    %c1_i32_95 = arith.constant 1 : i32
    %239 = arith.addi %238, %c1_i32_95 : i32
    %240 = arith.index_cast %239 : i32 to index
    %241 = memref.load %arg1[%240] : memref<32xi32, #tpu.memory_space<smem>>
    %242 = arith.index_cast %241 : i32 to index
    %c0_96 = arith.constant 0 : index
    %243 = vector.load %arg2[%242, %c0_96] : memref<32x384xf32, #tpu.memory_space<vmem>>, vector<1x384xf32>
    %c1_97 = arith.constant 1 : index
    %c0_98 = arith.constant 0 : index
    %244 = vector.load %arg10[%c1_97, %c0_98] : memref<2x384xf32, #tpu.memory_space<vmem>>, vector<1x384xf32>
    tpu.vector_store %arg10[%c1_97, %c0_98], %243 {strides = array<i32>} : memref<2x384xf32, #tpu.memory_space<vmem>>, vector<1x384xf32>,
    %c0_99 = arith.constant 0 : index
    %c0_100 = arith.constant 0 : index
    %245 = vector.load %arg10[%c0_99, %c0_100] : memref<2x384xf32, #tpu.memory_space<vmem>>, vector<2x384xf32>
    %c0_101 = arith.constant 0 : index
    %c0_102 = arith.constant 0 : index
    %246 = vector.load %arg3[%c0_101, %c0_102] : memref<128x384xf32, #tpu.memory_space<vmem>>, vector<128x384xf32>
    %cst_103 = arith.constant dense<0.000000e+00> : vector<2x384xf32>
    %247 = tpu.matmul %203, %246, %cst_103 {dimension_numbers = #tpu.dot_dimension_numbers<[1], [0], [0], [1], [0, 0, 1, 1], [], []>} : vector<2x128xf32>, vector<128x384xf32>, vector<2x384xf32> -> vector<2x384xf32>
    %248 = vector.extract_strided_slice %245 {offsets = [0, 0], sizes = [2, 128], strides = [1, 1]} : vector<2x384xf32> to vector<2x128xf32>
    %249 = vector.extract_strided_slice %247 {offsets = [0, 0], sizes = [2, 128], strides = [1, 1]} : vector<2x384xf32> to vector<2x128xf32>
    %250 = arith.addf %248, %249 : vector<2x128xf32>
    %251 = arith.negf %250 : vector<2x128xf32>
    %252 = math.exp %251 : vector<2x128xf32>
    %cst_104 = arith.constant 1.000000e+00 : f32
    %253 = vector.broadcast %cst_104 : f32 to vector<2x128xf32>
    %254 = arith.addf %253, %252 : vector<2x128xf32>
    %255 = arith.divf %253, %254 : vector<2x128xf32>
    %256 = vector.extract_strided_slice %245 {offsets = [0, 128], sizes = [2, 128], strides = [1, 1]} : vector<2x384xf32> to vector<2x128xf32>
    %257 = vector.extract_strided_slice %247 {offsets = [0, 128], sizes = [2, 128], strides = [1, 1]} : vector<2x384xf32> to vector<2x128xf32>
    %258 = arith.addf %256, %257 : vector<2x128xf32>
    %259 = arith.negf %258 : vector<2x128xf32>
    %260 = math.exp %259 : vector<2x128xf32>
    %cst_105 = arith.constant 1.000000e+00 : f32
    %261 = vector.broadcast %cst_105 : f32 to vector<2x128xf32>
    %262 = arith.addf %261, %260 : vector<2x128xf32>
    %263 = arith.divf %261, %262 : vector<2x128xf32>
    %264 = vector.extract_strided_slice %245 {offsets = [0, 256], sizes = [2, 128], strides = [1, 1]} : vector<2x384xf32> to vector<2x128xf32>
    %265 = vector.extract_strided_slice %247 {offsets = [0, 256], sizes = [2, 128], strides = [1, 1]} : vector<2x384xf32> to vector<2x128xf32>
    %266 = vector.broadcast %6 : vector<1x128xf32> to vector<2x128xf32>
    %267 = arith.addf %265, %266 : vector<2x128xf32>
    %268 = arith.mulf %255, %267 : vector<2x128xf32>
    %269 = arith.addf %264, %268 : vector<2x128xf32>
    %270 = math.tanh %269 : vector<2x128xf32>
    %cst_106 = arith.constant 1.000000e+00 : f32
    %271 = vector.broadcast %cst_106 : f32 to vector<2x128xf32>
    %272 = arith.subf %271, %263 : vector<2x128xf32>
    %273 = arith.mulf %272, %270 : vector<2x128xf32>
    %274 = arith.mulf %263, %203 : vector<2x128xf32>
    %275 = arith.addf %273, %274 : vector<2x128xf32>
    %c12_i32_107 = arith.constant 12 : i32
    %276 = arith.cmpi slt, %230, %c12_i32_107 : i32
    %277 = arith.select %276, %275, %203 : vector<2x128xf32>
    %cst_108 = arith.constant dense<0.000000e+00> : vector<2xf32>
    %278 = vector.multi_reduction <add>, %277, %cst_108 [1] : vector<2x128xf32> to vector<2xf32>
    %279 = vector.shape_cast %278 : vector<2xf32> to vector<2x1xf32>
    %cst_109 = arith.constant 3.125000e-02 : f32
    %280 = vector.broadcast %cst_109 : f32 to vector<2x1xf32>
    %281 = arith.mulf %279, %280 : vector<2x1xf32>
    %282 = arith.mulf %277, %277 : vector<2x128xf32>
    %cst_110 = arith.constant dense<0.000000e+00> : vector<2xf32>
    %283 = vector.multi_reduction <add>, %282, %cst_110 [1] : vector<2x128xf32> to vector<2xf32>
    %284 = vector.shape_cast %283 : vector<2xf32> to vector<2x1xf32>
    %cst_111 = arith.constant 3.125000e-02 : f32
    %285 = vector.broadcast %cst_111 : f32 to vector<2x1xf32>
    %286 = arith.mulf %284, %285 : vector<2x1xf32>
    %287 = arith.mulf %281, %281 : vector<2x1xf32>
    %288 = arith.subf %286, %287 : vector<2x1xf32>
    %289 = vector.broadcast %281 : vector<2x1xf32> to vector<2x128xf32>
    %290 = arith.subf %277, %289 : vector<2x128xf32>
    %cst_112 = arith.constant 9.99999974E-6 : f32
    %291 = vector.broadcast %cst_112 : f32 to vector<2x1xf32>
    %292 = arith.addf %288, %291 : vector<2x1xf32>
    %293 = math.rsqrt %292 : vector<2x1xf32>
    %294 = vector.broadcast %293 : vector<2x1xf32> to vector<2x128xf32>
    %295 = arith.mulf %290, %294 : vector<2x128xf32>
    %296 = vector.broadcast %4 : vector<1x128xf32> to vector<2x128xf32>
    %297 = arith.mulf %295, %296 : vector<2x128xf32>
    %298 = vector.broadcast %5 : vector<1x128xf32> to vector<2x128xf32>
    %299 = arith.addf %297, %298 : vector<2x128xf32>
    %c3 = arith.constant 3 : index
    %c0_113 = arith.constant 0 : index
    %c0_114 = arith.constant 0 : index
    %300 = vector.load %arg8[%c3, %c0_113, %c0_114] : memref<8x2x128xf32, #tpu.memory_space<vmem>>, vector<1x2x128xf32>
    %301 = vector.shape_cast %300 : vector<1x2x128xf32> to vector<2x128xf32>
    %302 = vector.shape_cast %299 : vector<2x128xf32> to vector<1x2x128xf32>
    tpu.vector_store %arg8[%c3, %c0_113, %c0_114], %302 {strides = array<i32>} : memref<8x2x128xf32, #tpu.memory_space<vmem>>, vector<1x2x128xf32>,
    %c8_i32_115 = arith.constant 8 : i32
    %303 = arith.muli %arg0, %c8_i32_115 : i32
    %c4_i32 = arith.constant 4 : i32
    %304 = arith.addi %303, %c4_i32 : i32
    %c2_i32_116 = arith.constant 2 : i32
    %305 = arith.muli %304, %c2_i32_116 : i32
    %c0_i32_117 = arith.constant 0 : i32
    %306 = arith.addi %305, %c0_i32_117 : i32
    %307 = arith.index_cast %306 : i32 to index
    %308 = memref.load %arg1[%307] : memref<32xi32, #tpu.memory_space<smem>>
    %309 = arith.index_cast %308 : i32 to index
    %c0_118 = arith.constant 0 : index
    %310 = vector.load %arg2[%309, %c0_118] : memref<32x384xf32, #tpu.memory_space<vmem>>, vector<1x384xf32>
    %c0_119 = arith.constant 0 : index
    %c0_120 = arith.constant 0 : index
    %311 = vector.load %arg10[%c0_119, %c0_120] : memref<2x384xf32, #tpu.memory_space<vmem>>, vector<1x384xf32>
    tpu.vector_store %arg10[%c0_119, %c0_120], %310 {strides = array<i32>} : memref<2x384xf32, #tpu.memory_space<vmem>>, vector<1x384xf32>,
    %c2_i32_121 = arith.constant 2 : i32
    %312 = arith.muli %304, %c2_i32_121 : i32
    %c1_i32_122 = arith.constant 1 : i32
    %313 = arith.addi %312, %c1_i32_122 : i32
    %314 = arith.index_cast %313 : i32 to index
    %315 = memref.load %arg1[%314] : memref<32xi32, #tpu.memory_space<smem>>
    %316 = arith.index_cast %315 : i32 to index
    %c0_123 = arith.constant 0 : index
    %317 = vector.load %arg2[%316, %c0_123] : memref<32x384xf32, #tpu.memory_space<vmem>>, vector<1x384xf32>
    %c1_124 = arith.constant 1 : index
    %c0_125 = arith.constant 0 : index
    %318 = vector.load %arg10[%c1_124, %c0_125] : memref<2x384xf32, #tpu.memory_space<vmem>>, vector<1x384xf32>
    tpu.vector_store %arg10[%c1_124, %c0_125], %317 {strides = array<i32>} : memref<2x384xf32, #tpu.memory_space<vmem>>, vector<1x384xf32>,
    %c0_126 = arith.constant 0 : index
    %c0_127 = arith.constant 0 : index
    %319 = vector.load %arg10[%c0_126, %c0_127] : memref<2x384xf32, #tpu.memory_space<vmem>>, vector<2x384xf32>
    %c0_128 = arith.constant 0 : index
    %c0_129 = arith.constant 0 : index
    %320 = vector.load %arg3[%c0_128, %c0_129] : memref<128x384xf32, #tpu.memory_space<vmem>>, vector<128x384xf32>
    %cst_130 = arith.constant dense<0.000000e+00> : vector<2x384xf32>
    %321 = tpu.matmul %277, %320, %cst_130 {dimension_numbers = #tpu.dot_dimension_numbers<[1], [0], [0], [1], [0, 0, 1, 1], [], []>} : vector<2x128xf32>, vector<128x384xf32>, vector<2x384xf32> -> vector<2x384xf32>
    %322 = vector.extract_strided_slice %319 {offsets = [0, 0], sizes = [2, 128], strides = [1, 1]} : vector<2x384xf32> to vector<2x128xf32>
    %323 = vector.extract_strided_slice %321 {offsets = [0, 0], sizes = [2, 128], strides = [1, 1]} : vector<2x384xf32> to vector<2x128xf32>
    %324 = arith.addf %322, %323 : vector<2x128xf32>
    %325 = arith.negf %324 : vector<2x128xf32>
    %326 = math.exp %325 : vector<2x128xf32>
    %cst_131 = arith.constant 1.000000e+00 : f32
    %327 = vector.broadcast %cst_131 : f32 to vector<2x128xf32>
    %328 = arith.addf %327, %326 : vector<2x128xf32>
    %329 = arith.divf %327, %328 : vector<2x128xf32>
    %330 = vector.extract_strided_slice %319 {offsets = [0, 128], sizes = [2, 128], strides = [1, 1]} : vector<2x384xf32> to vector<2x128xf32>
    %331 = vector.extract_strided_slice %321 {offsets = [0, 128], sizes = [2, 128], strides = [1, 1]} : vector<2x384xf32> to vector<2x128xf32>
    %332 = arith.addf %330, %331 : vector<2x128xf32>
    %333 = arith.negf %332 : vector<2x128xf32>
    %334 = math.exp %333 : vector<2x128xf32>
    %cst_132 = arith.constant 1.000000e+00 : f32
    %335 = vector.broadcast %cst_132 : f32 to vector<2x128xf32>
    %336 = arith.addf %335, %334 : vector<2x128xf32>
    %337 = arith.divf %335, %336 : vector<2x128xf32>
    %338 = vector.extract_strided_slice %319 {offsets = [0, 256], sizes = [2, 128], strides = [1, 1]} : vector<2x384xf32> to vector<2x128xf32>
    %339 = vector.extract_strided_slice %321 {offsets = [0, 256], sizes = [2, 128], strides = [1, 1]} : vector<2x384xf32> to vector<2x128xf32>
    %340 = vector.broadcast %6 : vector<1x128xf32> to vector<2x128xf32>
    %341 = arith.addf %339, %340 : vector<2x128xf32>
    %342 = arith.mulf %329, %341 : vector<2x128xf32>
    %343 = arith.addf %338, %342 : vector<2x128xf32>
    %344 = math.tanh %343 : vector<2x128xf32>
    %cst_133 = arith.constant 1.000000e+00 : f32
    %345 = vector.broadcast %cst_133 : f32 to vector<2x128xf32>
    %346 = arith.subf %345, %337 : vector<2x128xf32>
    %347 = arith.mulf %346, %344 : vector<2x128xf32>
    %348 = arith.mulf %337, %277 : vector<2x128xf32>
    %349 = arith.addf %347, %348 : vector<2x128xf32>
    %c12_i32_134 = arith.constant 12 : i32
    %350 = arith.cmpi slt, %304, %c12_i32_134 : i32
    %351 = arith.select %350, %349, %277 : vector<2x128xf32>
    %cst_135 = arith.constant dense<0.000000e+00> : vector<2xf32>
    %352 = vector.multi_reduction <add>, %351, %cst_135 [1] : vector<2x128xf32> to vector<2xf32>
    %353 = vector.shape_cast %352 : vector<2xf32> to vector<2x1xf32>
    %cst_136 = arith.constant 3.125000e-02 : f32
    %354 = vector.broadcast %cst_136 : f32 to vector<2x1xf32>
    %355 = arith.mulf %353, %354 : vector<2x1xf32>
    %356 = arith.mulf %351, %351 : vector<2x128xf32>
    %cst_137 = arith.constant dense<0.000000e+00> : vector<2xf32>
    %357 = vector.multi_reduction <add>, %356, %cst_137 [1] : vector<2x128xf32> to vector<2xf32>
    %358 = vector.shape_cast %357 : vector<2xf32> to vector<2x1xf32>
    %cst_138 = arith.constant 3.125000e-02 : f32
    %359 = vector.broadcast %cst_138 : f32 to vector<2x1xf32>
    %360 = arith.mulf %358, %359 : vector<2x1xf32>
    %361 = arith.mulf %355, %355 : vector<2x1xf32>
    %362 = arith.subf %360, %361 : vector<2x1xf32>
    %363 = vector.broadcast %355 : vector<2x1xf32> to vector<2x128xf32>
    %364 = arith.subf %351, %363 : vector<2x128xf32>
    %cst_139 = arith.constant 9.99999974E-6 : f32
    %365 = vector.broadcast %cst_139 : f32 to vector<2x1xf32>
    %366 = arith.addf %362, %365 : vector<2x1xf32>
    %367 = math.rsqrt %366 : vector<2x1xf32>
    %368 = vector.broadcast %367 : vector<2x1xf32> to vector<2x128xf32>
    %369 = arith.mulf %364, %368 : vector<2x128xf32>
    %370 = vector.broadcast %4 : vector<1x128xf32> to vector<2x128xf32>
    %371 = arith.mulf %369, %370 : vector<2x128xf32>
    %372 = vector.broadcast %5 : vector<1x128xf32> to vector<2x128xf32>
    %373 = arith.addf %371, %372 : vector<2x128xf32>
    %c4 = arith.constant 4 : index
    %c0_140 = arith.constant 0 : index
    %c0_141 = arith.constant 0 : index
    %374 = vector.load %arg8[%c4, %c0_140, %c0_141] : memref<8x2x128xf32, #tpu.memory_space<vmem>>, vector<1x2x128xf32>
    %375 = vector.shape_cast %374 : vector<1x2x128xf32> to vector<2x128xf32>
    %376 = vector.shape_cast %373 : vector<2x128xf32> to vector<1x2x128xf32>
    tpu.vector_store %arg8[%c4, %c0_140, %c0_141], %376 {strides = array<i32>} : memref<8x2x128xf32, #tpu.memory_space<vmem>>, vector<1x2x128xf32>,
    %c8_i32_142 = arith.constant 8 : i32
    %377 = arith.muli %arg0, %c8_i32_142 : i32
    %c5_i32 = arith.constant 5 : i32
    %378 = arith.addi %377, %c5_i32 : i32
    %c2_i32_143 = arith.constant 2 : i32
    %379 = arith.muli %378, %c2_i32_143 : i32
    %c0_i32_144 = arith.constant 0 : i32
    %380 = arith.addi %379, %c0_i32_144 : i32
    %381 = arith.index_cast %380 : i32 to index
    %382 = memref.load %arg1[%381] : memref<32xi32, #tpu.memory_space<smem>>
    %383 = arith.index_cast %382 : i32 to index
    %c0_145 = arith.constant 0 : index
    %384 = vector.load %arg2[%383, %c0_145] : memref<32x384xf32, #tpu.memory_space<vmem>>, vector<1x384xf32>
    %c0_146 = arith.constant 0 : index
    %c0_147 = arith.constant 0 : index
    %385 = vector.load %arg10[%c0_146, %c0_147] : memref<2x384xf32, #tpu.memory_space<vmem>>, vector<1x384xf32>
    tpu.vector_store %arg10[%c0_146, %c0_147], %384 {strides = array<i32>} : memref<2x384xf32, #tpu.memory_space<vmem>>, vector<1x384xf32>,
    %c2_i32_148 = arith.constant 2 : i32
    %386 = arith.muli %378, %c2_i32_148 : i32
    %c1_i32_149 = arith.constant 1 : i32
    %387 = arith.addi %386, %c1_i32_149 : i32
    %388 = arith.index_cast %387 : i32 to index
    %389 = memref.load %arg1[%388] : memref<32xi32, #tpu.memory_space<smem>>
    %390 = arith.index_cast %389 : i32 to index
    %c0_150 = arith.constant 0 : index
    %391 = vector.load %arg2[%390, %c0_150] : memref<32x384xf32, #tpu.memory_space<vmem>>, vector<1x384xf32>
    %c1_151 = arith.constant 1 : index
    %c0_152 = arith.constant 0 : index
    %392 = vector.load %arg10[%c1_151, %c0_152] : memref<2x384xf32, #tpu.memory_space<vmem>>, vector<1x384xf32>
    tpu.vector_store %arg10[%c1_151, %c0_152], %391 {strides = array<i32>} : memref<2x384xf32, #tpu.memory_space<vmem>>, vector<1x384xf32>,
    %c0_153 = arith.constant 0 : index
    %c0_154 = arith.constant 0 : index
    %393 = vector.load %arg10[%c0_153, %c0_154] : memref<2x384xf32, #tpu.memory_space<vmem>>, vector<2x384xf32>
    %c0_155 = arith.constant 0 : index
    %c0_156 = arith.constant 0 : index
    %394 = vector.load %arg3[%c0_155, %c0_156] : memref<128x384xf32, #tpu.memory_space<vmem>>, vector<128x384xf32>
    %cst_157 = arith.constant dense<0.000000e+00> : vector<2x384xf32>
    %395 = tpu.matmul %351, %394, %cst_157 {dimension_numbers = #tpu.dot_dimension_numbers<[1], [0], [0], [1], [0, 0, 1, 1], [], []>} : vector<2x128xf32>, vector<128x384xf32>, vector<2x384xf32> -> vector<2x384xf32>
    %396 = vector.extract_strided_slice %393 {offsets = [0, 0], sizes = [2, 128], strides = [1, 1]} : vector<2x384xf32> to vector<2x128xf32>
    %397 = vector.extract_strided_slice %395 {offsets = [0, 0], sizes = [2, 128], strides = [1, 1]} : vector<2x384xf32> to vector<2x128xf32>
    %398 = arith.addf %396, %397 : vector<2x128xf32>
    %399 = arith.negf %398 : vector<2x128xf32>
    %400 = math.exp %399 : vector<2x128xf32>
    %cst_158 = arith.constant 1.000000e+00 : f32
    %401 = vector.broadcast %cst_158 : f32 to vector<2x128xf32>
    %402 = arith.addf %401, %400 : vector<2x128xf32>
    %403 = arith.divf %401, %402 : vector<2x128xf32>
    %404 = vector.extract_strided_slice %393 {offsets = [0, 128], sizes = [2, 128], strides = [1, 1]} : vector<2x384xf32> to vector<2x128xf32>
    %405 = vector.extract_strided_slice %395 {offsets = [0, 128], sizes = [2, 128], strides = [1, 1]} : vector<2x384xf32> to vector<2x128xf32>
    %406 = arith.addf %404, %405 : vector<2x128xf32>
    %407 = arith.negf %406 : vector<2x128xf32>
    %408 = math.exp %407 : vector<2x128xf32>
    %cst_159 = arith.constant 1.000000e+00 : f32
    %409 = vector.broadcast %cst_159 : f32 to vector<2x128xf32>
    %410 = arith.addf %409, %408 : vector<2x128xf32>
    %411 = arith.divf %409, %410 : vector<2x128xf32>
    %412 = vector.extract_strided_slice %393 {offsets = [0, 256], sizes = [2, 128], strides = [1, 1]} : vector<2x384xf32> to vector<2x128xf32>
    %413 = vector.extract_strided_slice %395 {offsets = [0, 256], sizes = [2, 128], strides = [1, 1]} : vector<2x384xf32> to vector<2x128xf32>
    %414 = vector.broadcast %6 : vector<1x128xf32> to vector<2x128xf32>
    %415 = arith.addf %413, %414 : vector<2x128xf32>
    %416 = arith.mulf %403, %415 : vector<2x128xf32>
    %417 = arith.addf %412, %416 : vector<2x128xf32>
    %418 = math.tanh %417 : vector<2x128xf32>
    %cst_160 = arith.constant 1.000000e+00 : f32
    %419 = vector.broadcast %cst_160 : f32 to vector<2x128xf32>
    %420 = arith.subf %419, %411 : vector<2x128xf32>
    %421 = arith.mulf %420, %418 : vector<2x128xf32>
    %422 = arith.mulf %411, %351 : vector<2x128xf32>
    %423 = arith.addf %421, %422 : vector<2x128xf32>
    %c12_i32_161 = arith.constant 12 : i32
    %424 = arith.cmpi slt, %378, %c12_i32_161 : i32
    %425 = arith.select %424, %423, %351 : vector<2x128xf32>
    %cst_162 = arith.constant dense<0.000000e+00> : vector<2xf32>
    %426 = vector.multi_reduction <add>, %425, %cst_162 [1] : vector<2x128xf32> to vector<2xf32>
    %427 = vector.shape_cast %426 : vector<2xf32> to vector<2x1xf32>
    %cst_163 = arith.constant 3.125000e-02 : f32
    %428 = vector.broadcast %cst_163 : f32 to vector<2x1xf32>
    %429 = arith.mulf %427, %428 : vector<2x1xf32>
    %430 = arith.mulf %425, %425 : vector<2x128xf32>
    %cst_164 = arith.constant dense<0.000000e+00> : vector<2xf32>
    %431 = vector.multi_reduction <add>, %430, %cst_164 [1] : vector<2x128xf32> to vector<2xf32>
    %432 = vector.shape_cast %431 : vector<2xf32> to vector<2x1xf32>
    %cst_165 = arith.constant 3.125000e-02 : f32
    %433 = vector.broadcast %cst_165 : f32 to vector<2x1xf32>
    %434 = arith.mulf %432, %433 : vector<2x1xf32>
    %435 = arith.mulf %429, %429 : vector<2x1xf32>
    %436 = arith.subf %434, %435 : vector<2x1xf32>
    %437 = vector.broadcast %429 : vector<2x1xf32> to vector<2x128xf32>
    %438 = arith.subf %425, %437 : vector<2x128xf32>
    %cst_166 = arith.constant 9.99999974E-6 : f32
    %439 = vector.broadcast %cst_166 : f32 to vector<2x1xf32>
    %440 = arith.addf %436, %439 : vector<2x1xf32>
    %441 = math.rsqrt %440 : vector<2x1xf32>
    %442 = vector.broadcast %441 : vector<2x1xf32> to vector<2x128xf32>
    %443 = arith.mulf %438, %442 : vector<2x128xf32>
    %444 = vector.broadcast %4 : vector<1x128xf32> to vector<2x128xf32>
    %445 = arith.mulf %443, %444 : vector<2x128xf32>
    %446 = vector.broadcast %5 : vector<1x128xf32> to vector<2x128xf32>
    %447 = arith.addf %445, %446 : vector<2x128xf32>
    %c5 = arith.constant 5 : index
    %c0_167 = arith.constant 0 : index
    %c0_168 = arith.constant 0 : index
    %448 = vector.load %arg8[%c5, %c0_167, %c0_168] : memref<8x2x128xf32, #tpu.memory_space<vmem>>, vector<1x2x128xf32>
    %449 = vector.shape_cast %448 : vector<1x2x128xf32> to vector<2x128xf32>
    %450 = vector.shape_cast %447 : vector<2x128xf32> to vector<1x2x128xf32>
    tpu.vector_store %arg8[%c5, %c0_167, %c0_168], %450 {strides = array<i32>} : memref<8x2x128xf32, #tpu.memory_space<vmem>>, vector<1x2x128xf32>,
    %c8_i32_169 = arith.constant 8 : i32
    %451 = arith.muli %arg0, %c8_i32_169 : i32
    %c6_i32 = arith.constant 6 : i32
    %452 = arith.addi %451, %c6_i32 : i32
    %c2_i32_170 = arith.constant 2 : i32
    %453 = arith.muli %452, %c2_i32_170 : i32
    %c0_i32_171 = arith.constant 0 : i32
    %454 = arith.addi %453, %c0_i32_171 : i32
    %455 = arith.index_cast %454 : i32 to index
    %456 = memref.load %arg1[%455] : memref<32xi32, #tpu.memory_space<smem>>
    %457 = arith.index_cast %456 : i32 to index
    %c0_172 = arith.constant 0 : index
    %458 = vector.load %arg2[%457, %c0_172] : memref<32x384xf32, #tpu.memory_space<vmem>>, vector<1x384xf32>
    %c0_173 = arith.constant 0 : index
    %c0_174 = arith.constant 0 : index
    %459 = vector.load %arg10[%c0_173, %c0_174] : memref<2x384xf32, #tpu.memory_space<vmem>>, vector<1x384xf32>
    tpu.vector_store %arg10[%c0_173, %c0_174], %458 {strides = array<i32>} : memref<2x384xf32, #tpu.memory_space<vmem>>, vector<1x384xf32>,
    %c2_i32_175 = arith.constant 2 : i32
    %460 = arith.muli %452, %c2_i32_175 : i32
    %c1_i32_176 = arith.constant 1 : i32
    %461 = arith.addi %460, %c1_i32_176 : i32
    %462 = arith.index_cast %461 : i32 to index
    %463 = memref.load %arg1[%462] : memref<32xi32, #tpu.memory_space<smem>>
    %464 = arith.index_cast %463 : i32 to index
    %c0_177 = arith.constant 0 : index
    %465 = vector.load %arg2[%464, %c0_177] : memref<32x384xf32, #tpu.memory_space<vmem>>, vector<1x384xf32>
    %c1_178 = arith.constant 1 : index
    %c0_179 = arith.constant 0 : index
    %466 = vector.load %arg10[%c1_178, %c0_179] : memref<2x384xf32, #tpu.memory_space<vmem>>, vector<1x384xf32>
    tpu.vector_store %arg10[%c1_178, %c0_179], %465 {strides = array<i32>} : memref<2x384xf32, #tpu.memory_space<vmem>>, vector<1x384xf32>,
    %c0_180 = arith.constant 0 : index
    %c0_181 = arith.constant 0 : index
    %467 = vector.load %arg10[%c0_180, %c0_181] : memref<2x384xf32, #tpu.memory_space<vmem>>, vector<2x384xf32>
    %c0_182 = arith.constant 0 : index
    %c0_183 = arith.constant 0 : index
    %468 = vector.load %arg3[%c0_182, %c0_183] : memref<128x384xf32, #tpu.memory_space<vmem>>, vector<128x384xf32>
    %cst_184 = arith.constant dense<0.000000e+00> : vector<2x384xf32>
    %469 = tpu.matmul %425, %468, %cst_184 {dimension_numbers = #tpu.dot_dimension_numbers<[1], [0], [0], [1], [0, 0, 1, 1], [], []>} : vector<2x128xf32>, vector<128x384xf32>, vector<2x384xf32> -> vector<2x384xf32>
    %470 = vector.extract_strided_slice %467 {offsets = [0, 0], sizes = [2, 128], strides = [1, 1]} : vector<2x384xf32> to vector<2x128xf32>
    %471 = vector.extract_strided_slice %469 {offsets = [0, 0], sizes = [2, 128], strides = [1, 1]} : vector<2x384xf32> to vector<2x128xf32>
    %472 = arith.addf %470, %471 : vector<2x128xf32>
    %473 = arith.negf %472 : vector<2x128xf32>
    %474 = math.exp %473 : vector<2x128xf32>
    %cst_185 = arith.constant 1.000000e+00 : f32
    %475 = vector.broadcast %cst_185 : f32 to vector<2x128xf32>
    %476 = arith.addf %475, %474 : vector<2x128xf32>
    %477 = arith.divf %475, %476 : vector<2x128xf32>
    %478 = vector.extract_strided_slice %467 {offsets = [0, 128], sizes = [2, 128], strides = [1, 1]} : vector<2x384xf32> to vector<2x128xf32>
    %479 = vector.extract_strided_slice %469 {offsets = [0, 128], sizes = [2, 128], strides = [1, 1]} : vector<2x384xf32> to vector<2x128xf32>
    %480 = arith.addf %478, %479 : vector<2x128xf32>
    %481 = arith.negf %480 : vector<2x128xf32>
    %482 = math.exp %481 : vector<2x128xf32>
    %cst_186 = arith.constant 1.000000e+00 : f32
    %483 = vector.broadcast %cst_186 : f32 to vector<2x128xf32>
    %484 = arith.addf %483, %482 : vector<2x128xf32>
    %485 = arith.divf %483, %484 : vector<2x128xf32>
    %486 = vector.extract_strided_slice %467 {offsets = [0, 256], sizes = [2, 128], strides = [1, 1]} : vector<2x384xf32> to vector<2x128xf32>
    %487 = vector.extract_strided_slice %469 {offsets = [0, 256], sizes = [2, 128], strides = [1, 1]} : vector<2x384xf32> to vector<2x128xf32>
    %488 = vector.broadcast %6 : vector<1x128xf32> to vector<2x128xf32>
    %489 = arith.addf %487, %488 : vector<2x128xf32>
    %490 = arith.mulf %477, %489 : vector<2x128xf32>
    %491 = arith.addf %486, %490 : vector<2x128xf32>
    %492 = math.tanh %491 : vector<2x128xf32>
    %cst_187 = arith.constant 1.000000e+00 : f32
    %493 = vector.broadcast %cst_187 : f32 to vector<2x128xf32>
    %494 = arith.subf %493, %485 : vector<2x128xf32>
    %495 = arith.mulf %494, %492 : vector<2x128xf32>
    %496 = arith.mulf %485, %425 : vector<2x128xf32>
    %497 = arith.addf %495, %496 : vector<2x128xf32>
    %c12_i32_188 = arith.constant 12 : i32
    %498 = arith.cmpi slt, %452, %c12_i32_188 : i32
    %499 = arith.select %498, %497, %425 : vector<2x128xf32>
    %cst_189 = arith.constant dense<0.000000e+00> : vector<2xf32>
    %500 = vector.multi_reduction <add>, %499, %cst_189 [1] : vector<2x128xf32> to vector<2xf32>
    %501 = vector.shape_cast %500 : vector<2xf32> to vector<2x1xf32>
    %cst_190 = arith.constant 3.125000e-02 : f32
    %502 = vector.broadcast %cst_190 : f32 to vector<2x1xf32>
    %503 = arith.mulf %501, %502 : vector<2x1xf32>
    %504 = arith.mulf %499, %499 : vector<2x128xf32>
    %cst_191 = arith.constant dense<0.000000e+00> : vector<2xf32>
    %505 = vector.multi_reduction <add>, %504, %cst_191 [1] : vector<2x128xf32> to vector<2xf32>
    %506 = vector.shape_cast %505 : vector<2xf32> to vector<2x1xf32>
    %cst_192 = arith.constant 3.125000e-02 : f32
    %507 = vector.broadcast %cst_192 : f32 to vector<2x1xf32>
    %508 = arith.mulf %506, %507 : vector<2x1xf32>
    %509 = arith.mulf %503, %503 : vector<2x1xf32>
    %510 = arith.subf %508, %509 : vector<2x1xf32>
    %511 = vector.broadcast %503 : vector<2x1xf32> to vector<2x128xf32>
    %512 = arith.subf %499, %511 : vector<2x128xf32>
    %cst_193 = arith.constant 9.99999974E-6 : f32
    %513 = vector.broadcast %cst_193 : f32 to vector<2x1xf32>
    %514 = arith.addf %510, %513 : vector<2x1xf32>
    %515 = math.rsqrt %514 : vector<2x1xf32>
    %516 = vector.broadcast %515 : vector<2x1xf32> to vector<2x128xf32>
    %517 = arith.mulf %512, %516 : vector<2x128xf32>
    %518 = vector.broadcast %4 : vector<1x128xf32> to vector<2x128xf32>
    %519 = arith.mulf %517, %518 : vector<2x128xf32>
    %520 = vector.broadcast %5 : vector<1x128xf32> to vector<2x128xf32>
    %521 = arith.addf %519, %520 : vector<2x128xf32>
    %c6 = arith.constant 6 : index
    %c0_194 = arith.constant 0 : index
    %c0_195 = arith.constant 0 : index
    %522 = vector.load %arg8[%c6, %c0_194, %c0_195] : memref<8x2x128xf32, #tpu.memory_space<vmem>>, vector<1x2x128xf32>
    %523 = vector.shape_cast %522 : vector<1x2x128xf32> to vector<2x128xf32>
    %524 = vector.shape_cast %521 : vector<2x128xf32> to vector<1x2x128xf32>
    tpu.vector_store %arg8[%c6, %c0_194, %c0_195], %524 {strides = array<i32>} : memref<8x2x128xf32, #tpu.memory_space<vmem>>, vector<1x2x128xf32>,
    %c8_i32_196 = arith.constant 8 : i32
    %525 = arith.muli %arg0, %c8_i32_196 : i32
    %c7_i32 = arith.constant 7 : i32
    %526 = arith.addi %525, %c7_i32 : i32
    %c2_i32_197 = arith.constant 2 : i32
    %527 = arith.muli %526, %c2_i32_197 : i32
    %c0_i32_198 = arith.constant 0 : i32
    %528 = arith.addi %527, %c0_i32_198 : i32
    %529 = arith.index_cast %528 : i32 to index
    %530 = memref.load %arg1[%529] : memref<32xi32, #tpu.memory_space<smem>>
    %531 = arith.index_cast %530 : i32 to index
    %c0_199 = arith.constant 0 : index
    %532 = vector.load %arg2[%531, %c0_199] : memref<32x384xf32, #tpu.memory_space<vmem>>, vector<1x384xf32>
    %c0_200 = arith.constant 0 : index
    %c0_201 = arith.constant 0 : index
    %533 = vector.load %arg10[%c0_200, %c0_201] : memref<2x384xf32, #tpu.memory_space<vmem>>, vector<1x384xf32>
    tpu.vector_store %arg10[%c0_200, %c0_201], %532 {strides = array<i32>} : memref<2x384xf32, #tpu.memory_space<vmem>>, vector<1x384xf32>,
    %c2_i32_202 = arith.constant 2 : i32
    %534 = arith.muli %526, %c2_i32_202 : i32
    %c1_i32_203 = arith.constant 1 : i32
    %535 = arith.addi %534, %c1_i32_203 : i32
    %536 = arith.index_cast %535 : i32 to index
    %537 = memref.load %arg1[%536] : memref<32xi32, #tpu.memory_space<smem>>
    %538 = arith.index_cast %537 : i32 to index
    %c0_204 = arith.constant 0 : index
    %539 = vector.load %arg2[%538, %c0_204] : memref<32x384xf32, #tpu.memory_space<vmem>>, vector<1x384xf32>
    %c1_205 = arith.constant 1 : index
    %c0_206 = arith.constant 0 : index
    %540 = vector.load %arg10[%c1_205, %c0_206] : memref<2x384xf32, #tpu.memory_space<vmem>>, vector<1x384xf32>
    tpu.vector_store %arg10[%c1_205, %c0_206], %539 {strides = array<i32>} : memref<2x384xf32, #tpu.memory_space<vmem>>, vector<1x384xf32>,
    %c0_207 = arith.constant 0 : index
    %c0_208 = arith.constant 0 : index
    %541 = vector.load %arg10[%c0_207, %c0_208] : memref<2x384xf32, #tpu.memory_space<vmem>>, vector<2x384xf32>
    %c0_209 = arith.constant 0 : index
    %c0_210 = arith.constant 0 : index
    %542 = vector.load %arg3[%c0_209, %c0_210] : memref<128x384xf32, #tpu.memory_space<vmem>>, vector<128x384xf32>
    %cst_211 = arith.constant dense<0.000000e+00> : vector<2x384xf32>
    %543 = tpu.matmul %499, %542, %cst_211 {dimension_numbers = #tpu.dot_dimension_numbers<[1], [0], [0], [1], [0, 0, 1, 1], [], []>} : vector<2x128xf32>, vector<128x384xf32>, vector<2x384xf32> -> vector<2x384xf32>
    %544 = vector.extract_strided_slice %541 {offsets = [0, 0], sizes = [2, 128], strides = [1, 1]} : vector<2x384xf32> to vector<2x128xf32>
    %545 = vector.extract_strided_slice %543 {offsets = [0, 0], sizes = [2, 128], strides = [1, 1]} : vector<2x384xf32> to vector<2x128xf32>
    %546 = arith.addf %544, %545 : vector<2x128xf32>
    %547 = arith.negf %546 : vector<2x128xf32>
    %548 = math.exp %547 : vector<2x128xf32>
    %cst_212 = arith.constant 1.000000e+00 : f32
    %549 = vector.broadcast %cst_212 : f32 to vector<2x128xf32>
    %550 = arith.addf %549, %548 : vector<2x128xf32>
    %551 = arith.divf %549, %550 : vector<2x128xf32>
    %552 = vector.extract_strided_slice %541 {offsets = [0, 128], sizes = [2, 128], strides = [1, 1]} : vector<2x384xf32> to vector<2x128xf32>
    %553 = vector.extract_strided_slice %543 {offsets = [0, 128], sizes = [2, 128], strides = [1, 1]} : vector<2x384xf32> to vector<2x128xf32>
    %554 = arith.addf %552, %553 : vector<2x128xf32>
    %555 = arith.negf %554 : vector<2x128xf32>
    %556 = math.exp %555 : vector<2x128xf32>
    %cst_213 = arith.constant 1.000000e+00 : f32
    %557 = vector.broadcast %cst_213 : f32 to vector<2x128xf32>
    %558 = arith.addf %557, %556 : vector<2x128xf32>
    %559 = arith.divf %557, %558 : vector<2x128xf32>
    %560 = vector.extract_strided_slice %541 {offsets = [0, 256], sizes = [2, 128], strides = [1, 1]} : vector<2x384xf32> to vector<2x128xf32>
    %561 = vector.extract_strided_slice %543 {offsets = [0, 256], sizes = [2, 128], strides = [1, 1]} : vector<2x384xf32> to vector<2x128xf32>
    %562 = vector.broadcast %6 : vector<1x128xf32> to vector<2x128xf32>
    %563 = arith.addf %561, %562 : vector<2x128xf32>
    %564 = arith.mulf %551, %563 : vector<2x128xf32>
    %565 = arith.addf %560, %564 : vector<2x128xf32>
    %566 = math.tanh %565 : vector<2x128xf32>
    %cst_214 = arith.constant 1.000000e+00 : f32
    %567 = vector.broadcast %cst_214 : f32 to vector<2x128xf32>
    %568 = arith.subf %567, %559 : vector<2x128xf32>
    %569 = arith.mulf %568, %566 : vector<2x128xf32>
    %570 = arith.mulf %559, %499 : vector<2x128xf32>
    %571 = arith.addf %569, %570 : vector<2x128xf32>
    %c12_i32_215 = arith.constant 12 : i32
    %572 = arith.cmpi slt, %526, %c12_i32_215 : i32
    %573 = arith.select %572, %571, %499 : vector<2x128xf32>
    %cst_216 = arith.constant dense<0.000000e+00> : vector<2xf32>
    %574 = vector.multi_reduction <add>, %573, %cst_216 [1] : vector<2x128xf32> to vector<2xf32>
    %575 = vector.shape_cast %574 : vector<2xf32> to vector<2x1xf32>
    %cst_217 = arith.constant 3.125000e-02 : f32
    %576 = vector.broadcast %cst_217 : f32 to vector<2x1xf32>
    %577 = arith.mulf %575, %576 : vector<2x1xf32>
    %578 = arith.mulf %573, %573 : vector<2x128xf32>
    %cst_218 = arith.constant dense<0.000000e+00> : vector<2xf32>
    %579 = vector.multi_reduction <add>, %578, %cst_218 [1] : vector<2x128xf32> to vector<2xf32>
    %580 = vector.shape_cast %579 : vector<2xf32> to vector<2x1xf32>
    %cst_219 = arith.constant 3.125000e-02 : f32
    %581 = vector.broadcast %cst_219 : f32 to vector<2x1xf32>
    %582 = arith.mulf %580, %581 : vector<2x1xf32>
    %583 = arith.mulf %577, %577 : vector<2x1xf32>
    %584 = arith.subf %582, %583 : vector<2x1xf32>
    %585 = vector.broadcast %577 : vector<2x1xf32> to vector<2x128xf32>
    %586 = arith.subf %573, %585 : vector<2x128xf32>
    %cst_220 = arith.constant 9.99999974E-6 : f32
    %587 = vector.broadcast %cst_220 : f32 to vector<2x1xf32>
    %588 = arith.addf %584, %587 : vector<2x1xf32>
    %589 = math.rsqrt %588 : vector<2x1xf32>
    %590 = vector.broadcast %589 : vector<2x1xf32> to vector<2x128xf32>
    %591 = arith.mulf %586, %590 : vector<2x128xf32>
    %592 = vector.broadcast %4 : vector<1x128xf32> to vector<2x128xf32>
    %593 = arith.mulf %591, %592 : vector<2x128xf32>
    %594 = vector.broadcast %5 : vector<1x128xf32> to vector<2x128xf32>
    %595 = arith.addf %593, %594 : vector<2x128xf32>
    %c7 = arith.constant 7 : index
    %c0_221 = arith.constant 0 : index
    %c0_222 = arith.constant 0 : index
    %596 = vector.load %arg8[%c7, %c0_221, %c0_222] : memref<8x2x128xf32, #tpu.memory_space<vmem>>, vector<1x2x128xf32>
    %597 = vector.shape_cast %596 : vector<1x2x128xf32> to vector<2x128xf32>
    %598 = vector.shape_cast %595 : vector<2x128xf32> to vector<1x2x128xf32>
    tpu.vector_store %arg8[%c7, %c0_221, %c0_222], %598 {strides = array<i32>} : memref<8x2x128xf32, #tpu.memory_space<vmem>>, vector<1x2x128xf32>,
    %c0_223 = arith.constant 0 : index
    %c0_224 = arith.constant 0 : index
    %599 = vector.load %arg11[%c0_223, %c0_224] : memref<2x128xf32, #tpu.memory_space<vmem>>, vector<2x128xf32>
    tpu.vector_store %arg11[%c0_223, %c0_224], %573 {strides = array<i32>} : memref<2x128xf32, #tpu.memory_space<vmem>>, vector<2x128xf32>,
    %c1_i32_225 = arith.constant 1 : i32
    %600 = arith.cmpi eq, %arg0, %c1_i32_225 : i32
    %601 = arith.extui %600 : i1 to i32
    %c0_i32_226 = arith.constant 0 : i32
    %602 = arith.cmpi ne, %601, %c0_i32_226 : i32
    scf.if %602 {
      %c0_227 = arith.constant 0 : index
      %c0_228 = arith.constant 0 : index
      %603 = vector.load %arg9[%c0_227, %c0_228] : memref<2x128xf32, #tpu.memory_space<vmem>>, vector<2x128xf32>
      tpu.vector_store %arg9[%c0_227, %c0_228], %573 {strides = array<i32>} : memref<2x128xf32, #tpu.memory_space<vmem>>, vector<2x128xf32>,
    } else {
    }
    return
  }
  func.func @transform_0(%arg0: i32, %arg1: memref<32xi32, #tpu.memory_space<smem>>) -> (i32, i32) {
    %c0_i32 = arith.constant 0 : i32
    %c0_i32_0 = arith.constant 0 : i32
    %c0_i32_1 = arith.constant 0 : i32
    return %c0_i32, %c0_i32_0 : i32, i32
  }
  func.func @transform_1(%arg0: i32, %arg1: memref<32xi32, #tpu.memory_space<smem>>) -> (i32, i32) {
    %c0_i32 = arith.constant 0 : i32
    %c0_i32_0 = arith.constant 0 : i32
    %c0_i32_1 = arith.constant 0 : i32
    return %c0_i32, %c0_i32_0 : i32, i32
  }
  func.func @transform_2(%arg0: i32, %arg1: memref<32xi32, #tpu.memory_space<smem>>) -> (i32, i32) {
    %c0_i32 = arith.constant 0 : i32
    %c0_i32_0 = arith.constant 0 : i32
    %c0_i32_1 = arith.constant 0 : i32
    return %c0_i32, %c0_i32_0 : i32, i32
  }
  func.func @transform_3(%arg0: i32, %arg1: memref<32xi32, #tpu.memory_space<smem>>) -> (i32, i32) {
    %c0_i32 = arith.constant 0 : i32
    %c0_i32_0 = arith.constant 0 : i32
    %c0_i32_1 = arith.constant 0 : i32
    return %c0_i32, %c0_i32_0 : i32, i32
  }
  func.func @transform_4(%arg0: i32, %arg1: memref<32xi32, #tpu.memory_space<smem>>) -> (i32, i32) {
    %c0_i32 = arith.constant 0 : i32
    %c0_i32_0 = arith.constant 0 : i32
    %c0_i32_1 = arith.constant 0 : i32
    return %c0_i32, %c0_i32_0 : i32, i32
  }
  func.func @transform_5(%arg0: i32, %arg1: memref<32xi32, #tpu.memory_space<smem>>) -> (i32, i32) {
    %c0_i32 = arith.constant 0 : i32
    %c0_i32_0 = arith.constant 0 : i32
    %c0_i32_1 = arith.constant 0 : i32
    return %c0_i32, %c0_i32_0 : i32, i32
  }
  func.func @transform_6(%arg0: i32, %arg1: memref<32xi32, #tpu.memory_space<smem>>) -> (i32, i32, i32) {
    %c0_i32 = arith.constant 0 : i32
    %c0_i32_0 = arith.constant 0 : i32
    %c0_i32_1 = arith.constant 0 : i32
    return %arg0, %c0_i32, %c0_i32_0 : i32, i32, i32
  }
  func.func @transform_7(%arg0: i32, %arg1: memref<32xi32, #tpu.memory_space<smem>>) -> (i32, i32) {
    %c0_i32 = arith.constant 0 : i32
    %c0_i32_0 = arith.constant 0 : i32
    %c0_i32_1 = arith.constant 0 : i32
    return %c0_i32, %c0_i32_0 : i32, i32
  }
}

</mosaic_0001>

<bundles_post_ra>
// kernel: predictor_forward.1
= control target key start
LH: loop header
LB: loop body
LE: loop exit
PB: predicated region body
PF: predicated region fallthrough
CT: control target
= control target key end

     0   :  { %s2370_s30 = smov [#allocation5]   ;;  %s3874_s0 = inlined_call_operand.vmem [shape: s32[32], index: 0, kind: input, shape index: {}]   ;;  %s3875_s1 = inlined_call_operand.vmem [shape: f32[32,384], index: 1, kind: input, shape index: {}]   ;;  %s3876_s2 = inlined_call_operand.vmem [shape: f32[128,384], index: 2, kind: input, shape index: {}]   ;;  %s3877_s3 = inlined_call_operand.vmem [shape: f32[1,128], index: 3, kind: input, shape index: {}]   ;;  %s3878_s4 = inlined_call_operand.vmem [shape: f32[2,128], index: 4, kind: input, shape index: {}]   ;;  %s3879_s5 = inlined_call_operand.vmem [shape: f32[1,128], index: 5, kind: input, shape index: {}]   ;;  %s3880_s6 = inlined_call_operand.vmem [shape: f32[1,128], index: 6, kind: input, shape index: {}]   ;;  %s3881_s7 = inlined_call_operand.vmem [shape: f32[16,2,128], index: 7, kind: output, shape index: {0}]   ;;  %s3882_s8 = inlined_call_operand.vmem [shape: f32[2,128], index: 8, kind: output, shape index: {1}]  }
   0x1   :  { %s15_s29 = sshll.u32 %s3874_s0, 4  ;;  %s16_s29 = int_to_ptr.vmem [resolvable:$true] %s15_s29 }
   0x2   :  { %18 = dma.vmem_to_smem %s16_s29, 16, %s2370_s30, [#allocation4] }
   0x3   :  { %2364 = dma.done.wait [#allocation4], 16 }
   0x4   :  { %2365 = vsyncadd [#allocation4], 4294967280 }
   0x5   :  { %21 = sfence }
   0x6   :  { %s2419_s9 = smov 0  }
   0x7 LB: > { %s2425_s10 = sadd.s32 4294967295, %s2368_s9   ;;  %p2158_p0 = scmp.ge.s32.totalorder %s2368_s9, 1  ;;  %s2368_s9 = sphi %s2419_s9, %s27_s9  }
   0x8   : > { %p234_p1 = scmp.lt.s32.totalorder %s2368_s9, 3 }
   0xa   : > { %p235_p2 = pnand %p2158_p0, %p234_p1 }
   0xb   : > { %s2430_s0 = sshll.u32 (!%p235_p2), %s2425_s10, 3  ;;  %p2161_p4 = scmp.ne.s32.totalorder (!%p235_p2), %s2425_s10, 0 }
   0xc   : > { %238 = sbr.rel (%p235_p2) target bundleno = 1614 (0x64e), region = 44  ;;  %p262_p3 = scmp.lt.s32.totalorder (!%p235_p2), %s2430_s0, 15 }
  0x11   : > { %s263_s11 = scalar_select %p262_p3, %s2430_s0, 15 }
  0x12   : > { %270 = sbr.rel (%p2161_p4) target bundleno = 25 (0x19), region = 48 }
  0x13   : > { %s2160_s12 = sshll.u32 %s263_s11, 1 }
  0x14   : > { %s2437_s15 = scalar_lea.vmem %s3881_s7, %s2160_s12 }
  0x17   : > { %v271_v0 = vld [vmem:[%s3878_s4] sm:$0x3] }
  0x18   : > { %272 = vst [vmem:[#allocation3] sm:$0x3] %v271_v0 }
  0x19 PF: > { %v2446_v1 = vld [vmem:[%s3876_s2 + $0x168] sm:$0xff]  ;;  %v2451_v2 = vld [vmem:[%s3876_s2 + $0x170] sm:$0xff]  ;;  %s2459_s24 = sshll.u32 %s2425_s10, 4  ;;  %v2466_v4 = vld [vmem:[%s3876_s2 + $0x158] sm:$0xff]  ;;  %v289_v17 = vlaneseq  ;;  %p472_p5 = scmp.lt.s32.totalorder %s2430_s0, 12  ;;  %vm477_vm10 = vcmask 1041408  }
  0x1a   : > { %v2456_v3 = vld [vmem:[%s3876_s2 + $0x150] sm:$0xff]  ;;  %356 = vmatpush.msra.mxu0 %v2446_v1  ;;  %376 = vmatpush.msra.mxu1 %v2451_v2  ;;  %s2469_s27 = sld [smem:[#allocation5 + %s2459_s24]]  ;;  %s294_s28 = sadd.s32 1, %s2459_s24  ;;  %v2475_v5 = vld [vmem:[%s3876_s2 + $0x138] sm:$0xff]  ;;  %v2480_v6 = vld [vmem:[%s3876_s2 + $0x140] sm:$0xff] }
  0x1b   : > { %s2482_s13 = sld [smem:[#allocation5 + %s294_s28]]  ;;  %585 = vmatpush.msra.mxu3 %v2446_v1  ;;  %v2490_v7 = vld [vmem:[%s3876_s2 + $0x120] sm:$0xff]  ;;  %v2495_v8 = vld [vmem:[%s3876_s2 + $0x128] sm:$0xff]  ;;  %v2508_v10 = vld [vmem:[%s3876_s2 + $0x110] sm:$0xff]  ;;  %vm2595_vm0 = vcmp.lt.s32.totalorder %v289_v17, 384  ;;  %s2214_s30 = sadd.s32 2, %s2459_s24 }
  0x1c   : > { %357 = vmatpush.msra.mxu0 %v2456_v3  ;;  %377 = vmatpush.msra.mxu1 %v2466_v4  ;;  %v2503_v9 = vld [vmem:[%s3876_s2 + $0x108] sm:$0xff]  ;;  %v2518_v11 = vld [vmem:[%s3876_s2 + $0xf0] sm:$0xff]  ;;  %v2523_v12 = vld [vmem:[%s3876_s2 + $0xf8] sm:$0xff]  ;;  %s473_s28 = scalar_select %p472_p5, 1, 0 }
  0x1d   : > { %586 = vmatpush.msra.mxu3 %v2456_v3  ;;  %v2528_v13 = vld [vmem:[%s3876_s2 + $0x178] sm:$0xff]  ;;  %v2537_v14 = vld [vmem:[%s3876_s2 + $0x160] sm:$0xff]  ;;  %v2559_v18 = vld [vmem:[%s3876_s2 + $0x148] sm:$0xff]  ;;  %s524_s11 = sadd.s32 1, %s2214_s30  ;;  %p2210_p13 = scmp.ne.s32.totalorder %s2425_s10, 1 }
  0x1e   : > { %358 = vmatpush.msra.mxu0 %v2475_v5  ;;  %378 = vmatpush.msra.mxu1 %v2480_v6  ;;  %v2543_v15 = vld [vmem:[%s3876_s2 + $0xd8] sm:$0xff]  ;;  %v2548_v16 = vld [vmem:[%s3876_s2 + $0xe0] sm:$0xff]  ;;  %v2569_v20 = vld [vmem:[%s3876_s2 + $0xc8] sm:$0xff]  ;;  %s525_s12 = sld [smem:[#allocation5 + %s524_s11]] }
  0x1f   : > { %587 = vmatpush.msra.mxu3 %v2475_v5  ;;  %396 = vmatpush.msra.mxu2 %v2528_v13  ;;  %v2564_v19 = vld [vmem:[%s3876_s2 + $0xc0] sm:$0xff]  ;;  %v2578_v21 = vld [vmem:[%s3876_s2 + $0x130] sm:$0xff]  ;;  %v2587_v22 = vld [vmem:[%s3876_s2 + $0xa8] sm:$0xff] }
  0x20   : > { %359 = vmatpush.msra.mxu0 %v2490_v7  ;;  %379 = vmatpush.msra.mxu1 %v2495_v8  ;;  %s280_s23 = sshra.s32 %s2469_s27, 3  ;;  %s283_s25 = sand.u32 7, %s2469_s27  ;;  %v2592_v23 = vld [vmem:[%s3876_s2 + $0xb0] sm:$0xff]  ;;  %v2613_v26 = vld [vmem:[%s3876_s2 + $0x98] sm:$0xff]  ;;  %v2629_v29 = vld [vmem:[%s3876_s2 + $0x100] sm:$0xff] }
  0x21   : > { %s2164_s14 = smul.u32 24, %s280_s23  ;;  %s296_s16 = sshra.s32 %s2482_s13, 3  ;;  %588 = vmatpush.msra.mxu3 %v2490_v7  ;;  %397 = vmatpush.msra.mxu2 %v2537_v14  ;;  %v2608_v25 = vld [vmem:[%s3876_s2 + $0x90] sm:$0xff]  ;;  %v2618_v27 = vld [vmem:[%s3876_s2 + $0x118] sm:$0xff]  ;;  %v2639_v32 = vld [vmem:[%s3876_s2 + $0x80] sm:$0xff] }
  0x22   : > { %360 = vmatpush.msra.mxu0 %v2503_v9  ;;  %380 = vmatpush.msra.mxu1 %v2508_v10  ;;  %s299_s18 = sand.u32 7, %s2482_s13  ;;  %s2165_s19 = smul.u32 24, %s296_s16  ;;  %v2623_v28 = vld [vmem:[%s3876_s2 + $0x78] sm:$0xff]  ;;  %v2650_v33 = vld [vmem:[%s3876_s2 + $0xe8] sm:$0xff]  ;;  %v2655_v34 = vld [vmem:[%s3876_s2 + $0x60] sm:$0xff] }
  0x23   : > { %s2551_s26 = sadd.s32 %s2164_s14, %s283_s25  ;;  %589 = vmatpush.msra.mxu3 %v2503_v9  ;;  %398 = vmatpush.msra.mxu2 %v2559_v18  ;;  %v2660_v35 = vld [vmem:[%s3876_s2 + $0x68] sm:$0xff]  ;;  %v2669_v36 = vld [vmem:[%s3876_s2 + $0xd0] sm:$0xff]  ;;  %v2688_v39 = vld [vmem:[%s3876_s2 + $0xb8] sm:$0xff]  ;;  %s513_s25 = sld [smem:[#allocation5 + %s2214_s30]] }
  0x24   : > { %361 = vmatpush.msra.mxu0 %v2518_v11  ;;  %381 = vmatpush.msra.mxu1 %v2523_v12  ;;  %s302_s29 = sadd.s32 %s2165_s19, %s299_s18  ;;  %s287_s18 = scalar_lea.vmem %s3875_s1, %s2551_s26  ;;  %v2674_v37 = vld [vmem:[%s3876_s2 + $0x48] sm:$0xff]  ;;  %v2679_v38 = vld [vmem:[%s3876_s2 + $0x50] sm:$0xff]  ;;  %v2698_v41 = vld [vmem:[%s3876_s2 + $0x38] sm:$0xff] }
  0x25   : > { %590 = vmatpush.msra.mxu3 %v2518_v11  ;;  %s303_s26 = scalar_lea.vmem %s3875_s1, %s302_s29  ;;  %399 = vmatpush.msra.mxu2 %v2578_v21  ;;  %v288_v30 = vld [vmem:[%s287_s18] ss:$8 sm:$0x7]  ;;  %v2712_v43 = vld [vmem:[%s3876_s2 + $0x18] sm:$0xff]  ;;  %v2742_v48 = vld [vmem:[#allocation3] sm:$0x3] }
  0x26   : > { %362 = vmatpush.msra.mxu0 %v2543_v15  ;;  %382 = vmatpush.msra.mxu1 %v2548_v16  ;;  %293 = vst.msk [vmem:[#allocation2] ss:$2 sm:$0x7] %vm2595_vm0, %v288_v30  ;;  %v304_v31 = vld [vmem:[%s303_s26] ss:$8 sm:$0x7]  ;;  %v474_v30 = vstv %s473_s28 }
  0x27   : > { %591 = vmatpush.msra.mxu3 %v2543_v15  ;;  %400 = vmatpush.msra.mxu2 %v2618_v27  ;;  %306 = vst.msk [vmem:[#allocation2 + $0x1] ss:$2 sm:$0x7] %vm2595_vm0, %v304_v31  ;;  %v2693_v40 = vld [vmem:[%s3876_s2 + $0x30] sm:$0xff]  ;;  %v2707_v42 = vld [vmem:[%s3876_s2 + $0xa0] sm:$0xff]  ;;  %v2726_v45 = vld [vmem:[%s3876_s2 + $0x88] sm:$0xff] }
  0x28   : > { %363 = vmatpush.msra.mxu0 %v2564_v19  ;;  %383 = vmatpush.msra.mxu1 %v2569_v20  ;;  %v2717_v44 = vld [vmem:[%s3876_s2 + $0x20] sm:$0xff]  ;;  %v2736_v47 = vld [vmem:[%s3876_s2 + $0x8] sm:$0xff]  ;;  %v2748_v49 = vld [vmem:[%s3876_s2 + $0x70] sm:$0xff]  ;;  %vm475_vm9 = vcmp.eq.s32.totalorder %v474_v30, 1  ;;  %s526_s29 = sshra.s32 %s525_s12, 3  ;;  %s529_s19 = sand.u32 7, %s525_s12 }
  0x29   : > { %592 = vmatpush.msra.mxu3 %v2564_v19  ;;  %401 = vmatpush.msra.mxu2 %v2629_v29  ;;  %v2731_v46 = vld [vmem:[%s3876_s2] sm:$0xff]  ;;  %v2758_v50 = vld [vmem:[%s3876_s2 + $0x58] sm:$0xff]  ;;  %v2774_v52 = vld [vmem:[%s3876_s2 + $0x28] sm:$0xff]  ;;  %s514_s14 = sshra.s32 %s513_s25, 3  ;;  %s2170_s27 = smul.u32 24, %s526_s29 }
  0x2a   : > { %364 = vmatpush.msra.mxu0 %v2587_v22  ;;  %384 = vmatpush.msra.mxu1 %v2592_v23  ;;  %v2765_v51 = vld [vmem:[%s3876_s2 + $0x40] sm:$0xff]  ;;  %v2783_v53 = vld [vmem:[%s3876_s2 + $0x10] sm:$0xff]  ;;  %s2169_s16 = smul.u32 24, %s514_s14  ;;  %s517_s17 = sand.u32 7, %s513_s25 }
  0x2b   : > { %593 = vmatpush.msra.mxu3 %v2587_v22  ;;  %402 = vmatpush.msra.mxu2 %v2650_v33  ;;  %s532_s18 = sadd.s32 %s2170_s27, %s529_s19  ;;  %s511_s14 = sadd.s32 1, %s2430_s0 }
  0x2c   : > { %365 = vmatpush.msra.mxu0 %v2608_v25  ;;  %385 = vmatpush.msra.mxu1 %v2613_v26  ;;  %s520_s20 = sadd.s32 %s2169_s16, %s517_s17  ;;  %s533_s28 = scalar_lea.vmem %s3875_s1, %s532_s18 }
  0x2d   : > { %594 = vmatpush.msra.mxu3 %v2608_v25  ;;  %403 = vmatpush.msra.mxu2 %v2669_v36  ;;  %s521_s23 = scalar_lea.vmem %s3875_s1, %s520_s20  ;;  %p698_p6 = scmp.lt.s32.totalorder %s511_s14, 12 }
  0x2e   : > { %366 = vmatpush.msra.mxu0 %v2623_v28  ;;  %386 = vmatpush.msra.mxu1 %v2639_v32  ;;  %v307_v54 = vld [vmem:[#allocation2] sm:$0x3f]  ;;  %s2216_s16 = sadd.s32 4, %s2459_s24 }
  0x2f   : > { %595 = vmatpush.msra.mxu3 %v2623_v28  ;;  %404 = vmatpush.msra.mxu2 %v2688_v39  ;;  %v437_v55 = vrot.slane %v307_v54, 2  ;;  %s699_s29 = scalar_select %p698_p6, 1, 0 }
  0x30   : > { %367 = vmatpush.msra.mxu0 %v2655_v34  ;;  %387 = vmatpush.msra.mxu1 %v2660_v35  ;;  %s744_s27 = sadd.s32 1, %s2216_s16  ;;  %s733_s17 = sld [smem:[#allocation5 + %s2216_s16]] }
  0x31   : > { %596 = vmatpush.msra.mxu3 %v2655_v34  ;;  %405 = vmatpush.msra.mxu2 %v2707_v42  ;;  %s745_s19 = sld [smem:[#allocation5 + %s744_s27]] }
  0x32   : > { %368 = vmatpush.msra.mxu0 %v2674_v37  ;;  %388 = vmatpush.msra.mxu1 %v2679_v38 }
  0x33   : > { %597 = vmatpush.msra.mxu3 %v2674_v37  ;;  %406 = vmatpush.msra.mxu2 %v2726_v45 }
  0x34   : > { %369 = vmatpush.msra.mxu0 %v2693_v40  ;;  %389 = vmatpush.msra.mxu1 %v2698_v41 }
  0x35   : > { %598 = vmatpush.msra.mxu3 %v2693_v40  ;;  %407 = vmatpush.msra.mxu2 %v2748_v49 }
  0x36   : > { %370 = vmatpush.msra.mxu0 %v2712_v43  ;;  %390 = vmatpush.msra.mxu1 %v2717_v44  ;;  %s734_s20 = sshra.s32 %s733_s17, 3 }
  0x37   : > { %599 = vmatpush.msra.mxu3 %v2712_v43  ;;  %408 = vmatpush.msra.mxu2 %v2758_v50  ;;  %s746_s18 = sshra.s32 %s745_s19, 3  ;;  %s2175_s21 = smul.u32 24, %s734_s20 }
  0x38   : > { %371 = vmatpush.msra.mxu0 %v2731_v46  ;;  %391 = vmatpush.msra.mxu1 %v2736_v47  ;;  %s2176_s22 = smul.u32 24, %s746_s18  ;;  %s749_s13 = sand.u32 7, %s745_s19 }
  0x39   : > { %372 = vmatmul.f32.vlgmr.msra.gmra.mxu0 %v2742_v48  ;;  %392 = vmatmul.f32.vlgmr.msra.gmra.mxu1 %v2742_v48 }
  0x3a   : > { %605 = vmatpush.msrb.mxu0 %v2451_v2  ;;  %625 = vmatpush.msrb.mxu1 %v2528_v13 }
  0x3b   : > { %600 = vmatpush.msra.mxu3 %v2731_v46  ;;  %409 = vmatpush.msra.mxu2 %v2765_v51 }
  0x3c   : > { %606 = vmatpush.msrb.mxu0 %v2466_v4  ;;  %626 = vmatpush.msrb.mxu1 %v2537_v14 }
  0x3d   : > { %825 = vmatpush.msrb.mxu3 %v2451_v2  ;;  %410 = vmatpush.msra.mxu2 %v2774_v52 }
  0x3e   : > { %607 = vmatpush.msrb.mxu0 %v2480_v6  ;;  %627 = vmatpush.msrb.mxu1 %v2559_v18 }
  0x3f   : > { %826 = vmatpush.msrb.mxu3 %v2466_v4  ;;  %411 = vmatpush.msra.mxu2 %v2783_v53 }
  0x40   : > { %608 = vmatpush.msrb.mxu0 %v2495_v8  ;;  %628 = vmatpush.msrb.mxu1 %v2578_v21 }
  0x41   : > { %827 = vmatpush.msrb.mxu3 %v2480_v6  ;;  %412 = vmatmul.f32.vlgmr.msra.gmra.mxu2 %v2742_v48 }
  0x42   : > { %609 = vmatpush.msrb.mxu0 %v2508_v10  ;;  %629 = vmatpush.msrb.mxu1 %v2618_v27 }
  0x43   : > { %805 = vmatpush.msrb.mxu2 %v2446_v1  ;;  %828 = vmatpush.msrb.mxu3 %v2495_v8 }
  0x44   : > { %610 = vmatpush.msrb.mxu0 %v2523_v12  ;;  %630 = vmatpush.msrb.mxu1 %v2629_v29 }
  0x45   : > { %806 = vmatpush.msrb.mxu2 %v2456_v3  ;;  %829 = vmatpush.msrb.mxu3 %v2508_v10 }
  0x46   : > { %611 = vmatpush.msrb.mxu0 %v2548_v16  ;;  %631 = vmatpush.msrb.mxu1 %v2650_v33 }
  0x47   : > { %807 = vmatpush.msrb.mxu2 %v2475_v5  ;;  %830 = vmatpush.msrb.mxu3 %v2523_v12 }
  0x48   : > { %612 = vmatpush.msrb.mxu0 %v2569_v20  ;;  %632 = vmatpush.msrb.mxu1 %v2669_v36 }
  0x49   : > { %808 = vmatpush.msrb.mxu2 %v2490_v7  ;;  %831 = vmatpush.msrb.mxu3 %v2548_v16  ;;  %v2865_v7 = vld [vmem:[%s3877_s3] ss:$0 sm:$0xff] }
  0x4a   : > { %613 = vmatpush.msrb.mxu0 %v2592_v23  ;;  %633 = vmatpush.msrb.mxu1 %v2688_v39 }
  0x4b   : > { %809 = vmatpush.msrb.mxu2 %v2503_v9  ;;  %832 = vmatpush.msrb.mxu3 %v2569_v20 }
  0x4c   : > { %614 = vmatpush.msrb.mxu0 %v2613_v26  ;;  %634 = vmatpush.msrb.mxu1 %v2707_v42 }
  0x4d   : > { %810 = vmatpush.msrb.mxu2 %v2518_v11  ;;  %833 = vmatpush.msrb.mxu3 %v2592_v23 }
  0x4e   : > { %615 = vmatpush.msrb.mxu0 %v2639_v32  ;;  %635 = vmatpush.msrb.mxu1 %v2726_v45 }
  0x4f   : > { %811 = vmatpush.msrb.mxu2 %v2543_v15  ;;  %834 = vmatpush.msrb.mxu3 %v2613_v26 }
  0x50   : > { %616 = vmatpush.msrb.mxu0 %v2660_v35  ;;  %636 = vmatpush.msrb.mxu1 %v2748_v49 }
  0x51   : > { %812 = vmatpush.msrb.mxu2 %v2564_v19  ;;  %835 = vmatpush.msrb.mxu3 %v2639_v32 }
  0x52   : > { %617 = vmatpush.msrb.mxu0 %v2679_v38  ;;  %637 = vmatpush.msrb.mxu1 %v2758_v50 }
  0x53   : > { %813 = vmatpush.msrb.mxu2 %v2587_v22  ;;  %836 = vmatpush.msrb.mxu3 %v2660_v35 }
  0x54   : > { %618 = vmatpush.msrb.mxu0 %v2698_v41  ;;  %638 = vmatpush.msrb.mxu1 %v2765_v51 }
  0x55   : > { %814 = vmatpush.msrb.mxu2 %v2608_v25  ;;  %837 = vmatpush.msrb.mxu3 %v2679_v38 }
  0x56   : > { %619 = vmatpush.msrb.mxu0 %v2717_v44  ;;  %639 = vmatpush.msrb.mxu1 %v2774_v52 }
  0x57   : > { %815 = vmatpush.msrb.mxu2 %v2623_v28  ;;  %838 = vmatpush.msrb.mxu3 %v2698_v41 }
  0x58   : > { %620 = vmatpush.msrb.mxu0 %v2736_v47  ;;  %640 = vmatpush.msrb.mxu1 %v2783_v53 }
  0x59   : > { %816 = vmatpush.msrb.mxu2 %v2655_v34  ;;  %839 = vmatpush.msrb.mxu3 %v2717_v44 }
  0x5a   : > { %845 = vmatpush.msra.mxu0 %v2528_v13 }
  0x5b   : > { %817 = vmatpush.msrb.mxu2 %v2674_v37  ;;  %840 = vmatpush.msrb.mxu3 %v2736_v47 }
  0x5c   : > { %846 = vmatpush.msra.mxu0 %v2537_v14 }
  0x5d   : > { %818 = vmatpush.msrb.mxu2 %v2693_v40  ;;  %v534_v40 = vld [vmem:[%s533_s28] ss:$8 sm:$0x7]  ;;  %s752_s28 = sadd.s32 %s2176_s22, %s749_s13  ;;  %s2218_s13 = sadd.s32 6, %s2459_s24 }
  0x5e   : > { %847 = vmatpush.msra.mxu0 %v2559_v18  ;;  %v464_v18 = vrot.slane %v307_v54, 4  ;;  %535 = vst.msk [vmem:[#allocation2 + $0x1] ss:$2 sm:$0x7] %vm2595_vm0, %v534_v40 }
  0x5f   : > { %819 = vmatpush.msrb.mxu2 %v2712_v43 }
  0x60   : > { %848 = vmatpush.msra.mxu0 %v2578_v21 }
  0x61   : > { %820 = vmatpush.msrb.mxu2 %v2731_v46 }
  0x62   : > { %849 = vmatpush.msra.mxu0 %v2618_v27 }
  0x64   : > { %850 = vmatpush.msra.mxu0 %v2629_v29 }
  0x66   : > { %851 = vmatpush.msra.mxu0 %v2650_v33 }
  0x68   : > { %852 = vmatpush.msra.mxu0 %v2669_v36 }
  0x6a   : > { %853 = vmatpush.msra.mxu0 %v2688_v39  ;;  %v522_v39 = vld [vmem:[%s521_s23] ss:$8 sm:$0x7]  ;;  %s737_s23 = sand.u32 7, %s733_s17 }
  0x6b   : > { %523 = vst.msk [vmem:[#allocation2] ss:$2 sm:$0x7] %vm2595_vm0, %v522_v39  ;;  %s740_s26 = sadd.s32 %s2175_s21, %s737_s23  ;;  %s731_s21 = sadd.s32 2, %s2430_s0 }
  0x6c   : > { %854 = vmatpush.msra.mxu0 %v2707_v42  ;;  %s741_s25 = scalar_lea.vmem %s3875_s1, %s740_s26  ;;  %p3310_p7 = scmp.lt.s32.totalorder %s731_s21, 12 }
  0x6d   : > { %s964_s26 = sadd.s32 1, %s2218_s13 }
  0x6e   : > { %855 = vmatpush.msra.mxu0 %v2726_v45  ;;  %s919_s23 = scalar_select %p3310_p7, 1, 0 }
  0x6f   : > { %s965_s30 = sld [smem:[#allocation5 + %s964_s26]] }
  0x70   : > { %856 = vmatpush.msra.mxu0 %v2748_v49 }
  0x72   : > { %857 = vmatpush.msra.mxu0 %v2758_v50  ;;  %v2892_v46 = vld [vmem:[#allocation2] sm:$0x3f] }
  0x74   : > { %858 = vmatpush.msra.mxu0 %v2765_v51 }
  0x75   : > { %s969_s16 = sand.u32 7, %s965_s30 }
  0x76   : > { %859 = vmatpush.msra.mxu0 %v2774_v52 }
  0x78   : > { %860 = vmatpush.msra.mxu0 %v2783_v53 }
  0xb6   : > { %v373_v56 = vpop.f32.mrf.mxu0  ;;  %v393_v57 = vpop.f32.mrf.mxu1 }
  0xb7   : > { %v416_v58 = vadd.f32 %v373_v56, %v307_v54  ;;  %v439_v59 = vadd.f32 %v437_v55, %v393_v57 }
  0xb9   : > { %v2166_v60 = vmul.f32 -1.442695, %v416_v58  ;;  %v2167_v61 = vmul.f32 -1.442695, %v439_v59 }
  0xbb   : > { %2246 = vpow2.f32 %v2166_v60 }
  0xbc   : > { %2248 = vpow2.f32 %v2167_v61 }
  0xc1   : > { %v2247_v62 = vpop.eup %2246 }
  0xc2   : > { %v2249_v63 = vpop.eup %2248  ;;  %v420_v0 = vadd.f32 1.0, %v2247_v62 }
  0xc3   : > { %v443_v1 = vadd.f32 1.0, %v2249_v63 }
  0xc4   : > { %2250 = vrcp.f32 %v420_v0  ;;  %v413_v9 = vpop.f32.mrf.mxu2  ;;  %v432_v10 = vand.u32 2147483648, %v420_v0  ;;  %v430_v12 = vand.u32 2147483647, %v420_v0  ;;  %vm426_vm2 = vweird.f32 %v420_v0 }
  0xc5   : > { %2252 = vrcp.f32 %v443_v1  ;;  %v462_v15 = vadd.f32 %v2865_v7, %v413_v9  ;;  %vm449_vm5 = vweird.f32 %v443_v1  ;;  %v455_v21 = vand.u32 2147483648, %v443_v1 }
  0xc6   : > { %v433_v16 = vor.u32 1.1754944e-38, %v432_v10  ;;  %vm431_vm4 = vcmp.eq.f32.partialorder %v430_v12, 8.507059e+37  ;;  %v453_v23 = vand.u32 2147483647, %v443_v1 }
  0xc7   : > { %v456_v27 = vor.u32 1.1754944e-38, %v455_v21 }
  0xc8   : > { %vm454_vm8 = vcmp.eq.f32.partialorder %v453_v23, 8.507059e+37 }
  0xca   : > { %v2251_v2 = vpop.eup %2250 }
  0xcb   : > { %v2253_v3 = vpop.eup %2252  ;;  %v422_v4 = vmul.f32 %v2251_v2, %v420_v0  ;;  %vm427_vm1 = vweird.f32 %v2251_v2 }
  0xcc   : > { %v445_v5 = vmul.f32 %v2253_v3, %v443_v1  ;;  %vm428_vm3 = vmor %vm426_vm2, %vm427_vm1  ;;  %vm450_vm6 = vweird.f32 %v2253_v3  ;;  %v2900_v1 = vld [vmem:[%s3879_s5] ss:$0 sm:$0xff] }
  0xcd   : > { %v423_v6 = vsub.f32 1.0, %v422_v4  ;;  %vm451_vm7 = vmor %vm449_vm5, %vm450_vm6  ;;  %v2905_v4 = vld [vmem:[%s3880_s6] ss:$0 sm:$0xff] }
  0xce   : > { %v446_v8 = vsub.f32 1.0, %v445_v5 }
  0xcf   : > { %v424_v11 = vmul.f32 %v2251_v2, %v423_v6 }
  0xd0   : > { %v447_v13 = vmul.f32 %v2253_v3, %v446_v8 }
  0xd1   : > { %v425_v14 = vadd.f32 %v2251_v2, %v424_v11 }
  0xd2   : > { %v448_v19 = vadd.f32 %v2253_v3, %v447_v13 }
  0xd3   : > { %v429_v17 = vsel %vm428_vm3, %v2251_v2, %v425_v14 }
  0xd4   : > { %v434_v20 = vsel %vm431_vm4, %v433_v16, %v429_v17  ;;  %v452_v26 = vsel %vm451_vm7, %v2253_v3, %v448_v19 }
  0xd5   : > { %v463_v22 = vmul.f32 %v462_v15, %v434_v20  ;;  %v457_v28 = vsel %vm454_vm8, %v456_v27, %v452_v26  ;;  %v690_v26 = vrot.slane %v2892_v46, 4 }
  0xd6   : > { %v468_v29 = vsub.f32 1.0, %v457_v28  ;;  %v470_v33 = vmul.f32 %v457_v28, %v2742_v48 }
  0xd7   : > { %v466_v25 = vadd.f32 %v464_v18, %v463_v22 }
  0xd9   : > { %2254 = vtanh.f32 %v466_v25 }
  0xdf   : > { %v2255_v31 = vpop.eup %2254 }
  0xe0   : > { %v469_v32 = vmul.f32 %v2255_v31, %v468_v29 }
  0xe2   : > { %v471_v34 = vadd.f32 %v470_v33, %v469_v32 }
  0xe4   : > { %v2871_v35 = vsel %vm475_vm9, %v471_v34, %v2742_v48  ;;  %v666_v48 = vrot.slane %v2892_v46, 2 }
  0xe5   : > { %601 = vmatmul.f32.vlgmr.msra.gmra.mxu3 %v2871_v35  ;;  %621 = vmatmul.f32.vlgmr.msrb.gmra.mxu0 %v2871_v35  ;;  %v478_v36 = vsel %vm477_vm10, %v2871_v35, 0.0  ;;  %v482_v37 = vmul.f32 %v2871_v35, %v2871_v35 }
  0xe6   : > { %641 = vmatmul.f32.vlgmr.msrb.gmra.mxu1 %v2871_v35  ;;  %479 = vadd.xlane.f32.xlu0 %v478_v36 }
  0xe7   : > { %v483_v38 = vsel %vm477_vm10, %v482_v37, 0.0 }
  0xe8   : > { %484 = vadd.xlane.f32.xlu2 %v483_v38  ;;  %v700_v38 = vstv %s699_s29  ;;  %s753_s29 = scalar_lea.vmem %s3875_s1, %s752_s28  ;;  %s953_s28 = sld [smem:[#allocation5 + %s2218_s13]] }
  0xe9   : > { %vm701_vm7 = vcmp.eq.s32.totalorder %v700_v38, 1 }
  0xee   : > { %s954_s11 = sshra.s32 %s953_s28, 3 }
  0xef   : > { %s2181_s12 = smul.u32 24, %s954_s11  ;;  %s2220_s11 = sadd.s32 8, %s2459_s24 }
 0x159   : > { %v480_v41 = vpop.xlane.xlu0 %479 }
 0x15a   : > { %v481_v42 = vmul.f32 0.03125, %v480_v41 }
 0x15b   : > { %v485_v43 = vpop.xlane.xlu2 %484 }
 0x15c   : > { %v487_v44 = vmul.f32 %v481_v42, %v481_v42  ;;  %v486_v45 = vmul.f32 0.03125, %v485_v43  ;;  %v489_v0 = vsub.f32 %v2871_v35, %v481_v42 }
 0x15e   : > { %v488_v47 = vsub.f32 %v486_v45, %v487_v44 }
 0x160   : > { %v490_v49 = vadd.f32 1e-05, %v488_v47  ;;  %v754_v47 = vld [vmem:[%s753_s29] ss:$8 sm:$0x7]  ;;  %s957_s29 = sand.u32 7, %s953_s28 }
 0x161   : > { %755 = vst.msk [vmem:[#allocation2 + $0x1] ss:$2 sm:$0x7] %vm2595_vm0, %v754_v47  ;;  %v3201_v47 = vld [vmem:[%s3876_s2 + $0x38] sm:$0xff]  ;;  %s960_s27 = sadd.s32 %s2181_s12, %s957_s29  ;;  %s951_s28 = sadd.s32 3, %s2430_s0 }
 0x162   : > { %2256 = vrsqrt.f32 %v490_v49  ;;  %v622_v50 = vpop.f32.mrf.mxu0  ;;  %vm497_vm12 = vweird.f32 %v490_v49  ;;  %s961_s18 = scalar_lea.vmem %s3875_s1, %s960_s27  ;;  %p1138_p8 = scmp.lt.s32.totalorder %s951_s28, 12 }
 0x163   : > { %v668_v51 = vadd.f32 %v666_v48, %v622_v50  ;;  %v642_v20 = vpop.f32.mrf.mxu1  ;;  %v2944_v50 = vld [vmem:[%s3876_s2 + $0x170] sm:$0xff]  ;;  %s1173_s12 = sld [smem:[#allocation5 + %s2220_s11]] }
 0x164   : > { %v688_v23 = vadd.f32 %v2865_v7, %v642_v20  ;;  %1045 = vmatpush.msra.mxu2 %v2944_v50 }
 0x165   : > { %v2172_v52 = vmul.f32 -1.442695, %v668_v51  ;;  %v2949_v51 = vld [vmem:[%s3876_s2 + $0x178] sm:$0xff] }
 0x166   : > { %1065 = vmatpush.msra.mxu3 %v2949_v51 }
 0x167   : > { %2258 = vpow2.f32 %v2172_v52  ;;  %v2957_v52 = vld [vmem:[%s3876_s2 + $0x150] sm:$0xff] }
 0x168   : > { %v2257_v53 = vpop.eup %2256  ;;  %v602_v54 = vpop.f32.mrf.mxu3 }
 0x169   : > { %v492_v55 = vmul.f32 %v2257_v53, %v490_v49  ;;  %v645_v56 = vadd.f32 %v602_v54, %v2892_v46  ;;  %vm498_vm11 = vweird.f32 %v2257_v53  ;;  %v2939_v49 = vld [vmem:[%s3876_s2 + $0x168] sm:$0xff]  ;;  %v2967_v54 = vld [vmem:[%s3876_s2 + $0x160] sm:$0xff]  ;;  %s1174_s29 = sshra.s32 %s1173_s12, 3  ;;  %s1177_s19 = sand.u32 7, %s1173_s12 }
 0x16a   : > { %vm499_vm13 = vmor %vm497_vm12, %vm498_vm11  ;;  %1025 = vmatpush.msra.mxu1 %v2939_v49  ;;  %1245 = vmatpush.msrb.mxu0 %v2939_v49  ;;  %s2187_s27 = smul.u32 24, %s1174_s29 }
 0x16b   : > { %v493_v57 = vmul.f32 %v2257_v53, %v492_v55  ;;  %v2171_v58 = vmul.f32 -1.442695, %v645_v56  ;;  %1066 = vmatpush.msra.mxu3 %v2967_v54  ;;  %v2976_v55 = vld [vmem:[%s3876_s2 + $0x138] sm:$0xff]  ;;  %v2981_v56 = vld [vmem:[%s3876_s2 + $0x140] sm:$0xff] }
 0x16c   : > { %1026 = vmatpush.msra.mxu1 %v2957_v52  ;;  %1246 = vmatpush.msrb.mxu0 %v2957_v52 }
 0x16d   : > { %v2259_v59 = vpop.eup %2258  ;;  %v494_v60 = vmul.f32 0.5, %v493_v57  ;;  %2260 = vpow2.f32 %v2171_v58  ;;  %v2986_v57 = vld [vmem:[%s3876_s2 + $0x148] sm:$0xff] }
 0x16e   : > { %v672_v61 = vadd.f32 1.0, %v2259_v59  ;;  %1027 = vmatpush.msra.mxu1 %v2976_v55  ;;  %1067 = vmatpush.msra.mxu3 %v2986_v57  ;;  %v2997_v59 = vld [vmem:[%s3876_s2 + $0x120] sm:$0xff] }
 0x16f   : > { %v495_v62 = vsub.f32 1.5, %v494_v60  ;;  %v3002_v60 = vld [vmem:[%s3876_s2 + $0x128] sm:$0xff]  ;;  %1247 = vmatpush.msrb.mxu0 %v2976_v55 }
 0x170   : > { %2262 = vrcp.f32 %v672_v61  ;;  %v684_v29 = vand.u32 2147483648, %v672_v61  ;;  %vm678_vm4 = vweird.f32 %v672_v61  ;;  %v682_v31 = vand.u32 2147483647, %v672_v61  ;;  %1028 = vmatpush.msra.mxu1 %v2997_v59 }
 0x171   : > { %v496_v63 = vmul.f32 %v2257_v53, %v495_v62  ;;  %1248 = vmatpush.msrb.mxu0 %v2997_v59 }
 0x172   : > { %v685_v34 = vor.u32 1.1754944e-38, %v684_v29  ;;  %vm683_vm6 = vcmp.eq.f32.partialorder %v682_v31, 8.507059e+37  ;;  %v3125_v31 = vld [vmem:[%s3876_s2 + $0x98] sm:$0xff] }
 0x173   : > { %v2261_v2 = vpop.eup %2260  ;;  %v500_v3 = vsel %vm499_vm13, %v2257_v53, %v496_v63  ;;  %v2962_v53 = vld [vmem:[%s3876_s2 + $0x158] sm:$0xff]  ;;  %v3016_v63 = vld [vmem:[%s3876_s2 + $0x108] sm:$0xff] }
 0x174   : > { %v501_v5 = vmul.f32 %v500_v3, %v489_v0  ;;  %v649_v6 = vadd.f32 1.0, %v2261_v2  ;;  %1046 = vmatpush.msra.mxu2 %v2962_v53  ;;  %v3021_v0 = vld [vmem:[%s3876_s2 + $0x110] sm:$0xff]  ;;  %v3026_v2 = vld [vmem:[%s3876_s2 + $0x118] sm:$0xff]  ;;  %1029 = vmatpush.msra.mxu1 %v3016_v63 }
 0x175   : > { %1249 = vmatpush.msrb.mxu0 %v3016_v63 }
 0x176   : > { %v505_v8 = vmul.f32 %v2900_v1, %v501_v5  ;;  %2264 = vrcp.f32 %v649_v6  ;;  %v2263_v9 = vpop.eup %2262  ;;  %v661_v16 = vand.u32 2147483648, %v649_v6  ;;  %v659_v18 = vand.u32 2147483647, %v649_v6  ;;  %1047 = vmatpush.msra.mxu2 %v2981_v56 }
 0x177   : > { %v674_v11 = vmul.f32 %v2263_v9, %v672_v61  ;;  %vm655_vm15 = vweird.f32 %v649_v6  ;;  %vm679_vm3 = vweird.f32 %v2263_v9  ;;  %v3007_v61 = vld [vmem:[%s3876_s2 + $0x130] sm:$0xff] }
 0x178   : > { %v509_v10 = vadd.f32 %v2905_v4, %v505_v8  ;;  %v662_v22 = vor.u32 1.1754944e-38, %v661_v16  ;;  %vm660_vm2 = vcmp.eq.f32.partialorder %v659_v18, 8.507059e+37  ;;  %vm680_vm5 = vmor %vm678_vm4, %vm679_vm3  ;;  %1048 = vmatpush.msra.mxu2 %v3002_v60  ;;  %1068 = vmatpush.msra.mxu3 %v3007_v61  ;;  %v3039_v8 = vld [vmem:[%s3876_s2 + $0xf0] sm:$0xff]  ;;  %v3085_v18 = vld [vmem:[%s3876_s2 + $0xc8] sm:$0xff] }
 0x179   : > { %v675_v14 = vsub.f32 1.0, %v674_v11  ;;  %1030 = vmatpush.msra.mxu1 %v3039_v8  ;;  %1250 = vmatpush.msrb.mxu0 %v3039_v8 }
 0x17a   : > { %510 = vst [vmem:[%s2437_s15] sm:$0x3] %v509_v10  ;;  %1049 = vmatpush.msra.mxu2 %v3021_v0  ;;  %1069 = vmatpush.msra.mxu3 %v3026_v2  ;;  %v3049_v10 = vld [vmem:[%s3876_s2 + $0x100] sm:$0xff] }
 0x17b   : > { %v676_v19 = vmul.f32 %v2263_v9, %v675_v14  ;;  %v3064_v14 = vld [vmem:[%s3876_s2 + $0xe0] sm:$0xff] }
 0x17c   : > { %v2265_v12 = vpop.eup %2264  ;;  %1070 = vmatpush.msra.mxu3 %v3049_v10 }
 0x17d   : > { %v651_v13 = vmul.f32 %v2265_v12, %v649_v6  ;;  %vm656_vm14 = vweird.f32 %v2265_v12  ;;  %v677_v27 = vadd.f32 %v2263_v9, %v676_v19  ;;  %v3090_v19 = vld [vmem:[%s3876_s2 + $0xd0] sm:$0xff] }
 0x17e   : > { %vm657_vm1 = vmor %vm655_vm15, %vm656_vm14 }
 0x17f   : > { %v652_v15 = vsub.f32 1.0, %v651_v13  ;;  %v681_v33 = vsel %vm680_vm5, %v2263_v9, %v677_v27  ;;  %v3044_v9 = vld [vmem:[%s3876_s2 + $0xf8] sm:$0xff] }
 0x180   : > { %v686_v36 = vsel %vm683_vm6, %v685_v34, %v681_v33  ;;  %1050 = vmatpush.msra.mxu2 %v3044_v9  ;;  %v3059_v13 = vld [vmem:[%s3876_s2 + $0xd8] sm:$0xff]  ;;  %v3144_v34 = vld [vmem:[%s3876_s2 + $0x80] sm:$0xff] }
 0x181   : > { %v653_v17 = vmul.f32 %v2265_v12, %v652_v15  ;;  %v694_v37 = vsub.f32 1.0, %v686_v36  ;;  %v696_v40 = vmul.f32 %v686_v36, %v2871_v35  ;;  %v3069_v15 = vld [vmem:[%s3876_s2 + $0xe8] sm:$0xff]  ;;  %1031 = vmatpush.msra.mxu1 %v3059_v13  ;;  %1251 = vmatpush.msrb.mxu0 %v3059_v13  ;;  %v3111_v27 = vld [vmem:[%s3876_s2 + $0xb8] sm:$0xff] }
 0x182   : > { %1051 = vmatpush.msra.mxu2 %v3064_v14  ;;  %1071 = vmatpush.msra.mxu3 %v3069_v15  ;;  %v3139_v33 = vld [vmem:[%s3876_s2 + $0x78] sm:$0xff]  ;;  %v3149_v36 = vld [vmem:[%s3876_s2 + $0x88] sm:$0xff] }
 0x183   : > { %v654_v21 = vadd.f32 %v2265_v12, %v653_v17  ;;  %v3080_v17 = vld [vmem:[%s3876_s2 + $0xc0] sm:$0xff] }
 0x184   : > { %1032 = vmatpush.msra.mxu1 %v3080_v17  ;;  %1052 = vmatpush.msra.mxu2 %v3085_v18 }
 0x185   : > { %v658_v25 = vsel %vm657_vm1, %v2265_v12, %v654_v21  ;;  %1072 = vmatpush.msra.mxu3 %v3090_v19  ;;  %1252 = vmatpush.msrb.mxu0 %v3080_v17 }
 0x186   : > { %v663_v28 = vsel %vm660_vm2, %v662_v22, %v658_v25  ;;  %v3101_v25 = vld [vmem:[%s3876_s2 + $0xa8] sm:$0xff] }
 0x187   : > { %v689_v30 = vmul.f32 %v688_v23, %v663_v28  ;;  %1033 = vmatpush.msra.mxu1 %v3101_v25  ;;  %1073 = vmatpush.msra.mxu3 %v3111_v27 }
 0x188   : > { %1253 = vmatpush.msrb.mxu0 %v3101_v25 }
 0x189   : > { %v692_v32 = vadd.f32 %v690_v26, %v689_v30  ;;  %v3106_v26 = vld [vmem:[%s3876_s2 + $0xb0] sm:$0xff] }
 0x18a   : > { %1053 = vmatpush.msra.mxu2 %v3106_v26  ;;  %v3120_v30 = vld [vmem:[%s3876_s2 + $0x90] sm:$0xff] }
 0x18b   : > { %2266 = vtanh.f32 %v692_v32  ;;  %1034 = vmatpush.msra.mxu1 %v3120_v30  ;;  %v3133_v32 = vld [vmem:[%s3876_s2 + $0xa0] sm:$0xff]  ;;  %1254 = vmatpush.msrb.mxu0 %v3120_v30 }
 0x18c   : > { %1054 = vmatpush.msra.mxu2 %v3125_v31  ;;  %1074 = vmatpush.msra.mxu3 %v3133_v32 }
 0x18d   : > { %1035 = vmatpush.msra.mxu1 %v3139_v33  ;;  %1255 = vmatpush.msrb.mxu0 %v3139_v33 }
 0x18e   : > { %1055 = vmatpush.msra.mxu2 %v3144_v34  ;;  %1075 = vmatpush.msra.mxu3 %v3149_v36 }
 0x191   : > { %v2267_v39 = vpop.eup %2266 }
 0x192   : > { %v695_v41 = vmul.f32 %v2267_v39, %v694_v37  ;;  %v3159_v39 = vld [vmem:[%s3876_s2 + $0x60] sm:$0xff] }
 0x193   : > { %1036 = vmatpush.msra.mxu1 %v3159_v39  ;;  %1256 = vmatpush.msrb.mxu0 %v3159_v39 }
 0x194   : > { %v697_v42 = vadd.f32 %v696_v40, %v695_v41  ;;  %v3164_v40 = vld [vmem:[%s3876_s2 + $0x68] sm:$0xff]  ;;  %v3169_v41 = vld [vmem:[%s3876_s2 + $0x70] sm:$0xff] }
 0x195   : > { %1056 = vmatpush.msra.mxu2 %v3164_v40  ;;  %1076 = vmatpush.msra.mxu3 %v3169_v41 }
 0x196   : > { %v2915_v43 = vsel %vm701_vm7, %v697_v42, %v2871_v35  ;;  %v742_v35 = vld [vmem:[%s741_s25] ss:$8 sm:$0x7]  ;;  %s966_s25 = sshra.s32 %s965_s30, 3 }
 0x197   : > { %821 = vmatmul.f32.vlgmr.msrb.gmra.mxu2 %v2915_v43  ;;  %841 = vmatmul.f32.vlgmr.msrb.gmra.mxu3 %v2915_v43  ;;  %v703_v44 = vsel %vm477_vm10, %v2915_v43, 0.0  ;;  %v707_v45 = vmul.f32 %v2915_v43, %v2915_v43  ;;  %743 = vst.msk [vmem:[#allocation2] ss:$2 sm:$0x7] %vm2595_vm0, %v742_v35  ;;  %v3196_v35 = vld [vmem:[%s3876_s2 + $0x30] sm:$0xff]  ;;  %s2182_s14 = smul.u32 24, %s966_s25 }
 0x198   : > { %861 = vmatmul.f32.vlgmr.msra.gmra.mxu0 %v2915_v43  ;;  %704 = vadd.xlane.f32.xlu0 %v703_v44  ;;  %v3178_v44 = vld [vmem:[%s3876_s2 + $0x48] sm:$0xff]  ;;  %s1139_s30 = scalar_select %p1138_p8, 1, 0 }
 0x199   : > { %v708_v46 = vsel %vm477_vm10, %v707_v45, 0.0  ;;  %v3183_v45 = vld [vmem:[%s3876_s2 + $0x50] sm:$0xff]  ;;  %1037 = vmatpush.msra.mxu1 %v3178_v44  ;;  %1257 = vmatpush.msrb.mxu0 %v3178_v44  ;;  %s972_s17 = sadd.s32 %s2182_s14, %s969_s16  ;;  %s1184_s25 = sadd.s32 1, %s2220_s11 }
 0x19a   : > { %1057 = vmatpush.msra.mxu2 %v3183_v45  ;;  %s1185_s14 = sld [smem:[#allocation5 + %s1184_s25]]  ;;  %s2222_s11 = sadd.s32 10, %s2459_s24 }
 0x19b   : > { %1038 = vmatpush.msra.mxu1 %v3196_v35  ;;  %1258 = vmatpush.msrb.mxu0 %v3196_v35  ;;  %s1404_s25 = sadd.s32 1, %s2222_s11  ;;  %s1393_s12 = sld [smem:[#allocation5 + %s2222_s11]] }
 0x19c   : > { %1058 = vmatpush.msra.mxu2 %v3201_v47 }
 0x19e   : > { %v3031_v6 = vld [vmem:[#allocation2] sm:$0x3f] }
 0x19f   : > { %v886_v12 = vrot.slane %v3031_v6, 2 }
 0x1a0   : > { %709 = vadd.xlane.f32.xlu0 %v708_v46  ;;  %v3188_v46 = vld [vmem:[%s3876_s2 + $0x58] sm:$0xff]  ;;  %s1186_s16 = sshra.s32 %s1185_s14, 3  ;;  %s1189_s20 = sand.u32 7, %s1185_s14 }
 0x1a1   : > { %1077 = vmatpush.msra.mxu3 %v3188_v46  ;;  %s1405_s14 = sld [smem:[#allocation5 + %s1404_s25]]  ;;  %s1394_s29 = sshra.s32 %s1393_s12, 3 }
 0x20b   : > { %v705_v48 = vpop.xlane.xlu0 %704 }
 0x20c   : > { %v2989_v58 = vmul.f32 0.03125, %v705_v48  ;;  %v3206_v48 = vld [vmem:[%s3876_s2 + $0x40] sm:$0xff] }
 0x20d   : > { %1078 = vmatpush.msra.mxu3 %v3206_v48 }
 0x20e   : > { %v712_v3 = vmul.f32 %v2989_v58, %v2989_v58 }
 0x213   : > { %v710_v62 = vpop.xlane.xlu0 %709 }
 0x214   : > { %v711_v5 = vmul.f32 0.03125, %v710_v62 }
 0x216   : > { %v713_v11 = vsub.f32 %v711_v5, %v712_v3  ;;  %v3212_v5 = vld [vmem:[%s3876_s2 + $0x18] sm:$0xff] }
 0x217   : > { %1039 = vmatpush.msra.mxu1 %v3212_v5  ;;  %1259 = vmatpush.msrb.mxu0 %v3212_v5 }
 0x218   : > { %v3072_v16 = vadd.f32 1e-05, %v713_v11  ;;  %v3217_v11 = vld [vmem:[%s3876_s2 + $0x20] sm:$0xff] }
 0x219   : > { %1059 = vmatpush.msra.mxu2 %v3217_v11 }
 0x21a   : > { %2268 = vrsqrt.f32 %v3072_v16  ;;  %v822_v20 = vpop.f32.mrf.mxu2  ;;  %v842_v21 = vpop.f32.mrf.mxu3  ;;  %vm722_vm9 = vweird.f32 %v3072_v16 }
 0x21b   : > { %v865_v22 = vadd.f32 %v822_v20, %v3031_v6  ;;  %v888_v23 = vadd.f32 %v886_v12, %v842_v21  ;;  %v3227_v21 = vld [vmem:[%s3876_s2 + $0x28] sm:$0xff] }
 0x21c   : > { %1079 = vmatpush.msra.mxu3 %v3227_v21 }
 0x21d   : > { %v2177_v28 = vmul.f32 -1.442695, %v865_v22  ;;  %v2178_v29 = vmul.f32 -1.442695, %v888_v23 }
 0x21f   : > { %2270 = vpow2.f32 %v2177_v28  ;;  %v3235_v28 = vld [vmem:[%s3876_s2] sm:$0xff] }
 0x220   : > { %v2269_v37 = vpop.eup %2268  ;;  %2272 = vpow2.f32 %v2178_v29  ;;  %v3240_v29 = vld [vmem:[%s3876_s2 + $0x8] sm:$0xff]  ;;  %1040 = vmatpush.msra.mxu1 %v3235_v28  ;;  %1260 = vmatpush.msrb.mxu0 %v3235_v28 }
 0x221   : > { %v717_v38 = vmul.f32 %v2269_v37, %v3072_v16  ;;  %vm723_vm8 = vweird.f32 %v2269_v37  ;;  %1060 = vmatpush.msra.mxu2 %v3240_v29 }
 0x222   : > { %vm724_vm11 = vmor %vm722_vm9, %vm723_vm8  ;;  %1265 = vmatpush.msrb.mxu1 %v2944_v50  ;;  %1485 = vmatpush.msra.mxu0 %v2944_v50 }
 0x223   : > { %v718_v42 = vmul.f32 %v2269_v37, %v717_v38  ;;  %v3249_v38 = vld [vmem:[%s3876_s2 + $0x10] sm:$0xff]  ;;  %1285 = vmatpush.msrb.mxu2 %v2949_v51 }
 0x224   : > { %1080 = vmatpush.msra.mxu3 %v3249_v38  ;;  %1266 = vmatpush.msrb.mxu1 %v2962_v53 }
 0x225   : > { %v2271_v62 = vpop.eup %2270  ;;  %v719_v3 = vmul.f32 0.5, %v718_v42  ;;  %1286 = vmatpush.msrb.mxu2 %v2967_v54  ;;  %1486 = vmatpush.msra.mxu0 %v2962_v53  ;;  %v862_v53 = vpop.f32.mrf.mxu0 }
 0x226   : > { %v2273_v12 = vpop.eup %2272  ;;  %v3220_v20 = vadd.f32 1.0, %v2271_v62  ;;  %v714_v62 = vsub.f32 %v2915_v43, %v2989_v58  ;;  %1465 = vmatpush.msrb.mxu3 %v2939_v49  ;;  %1267 = vmatpush.msrb.mxu1 %v2981_v56 }
 0x227   : > { %v720_v22 = vsub.f32 1.5, %v719_v3  ;;  %v3229_v23 = vadd.f32 1.0, %v2273_v12  ;;  %1287 = vmatpush.msrb.mxu2 %v2986_v57  ;;  %1487 = vmatpush.msra.mxu0 %v2981_v56 }
 0x228   : > { %2274 = vrcp.f32 %v3220_v20  ;;  %1466 = vmatpush.msrb.mxu3 %v2957_v52  ;;  %1268 = vmatpush.msrb.mxu1 %v3002_v60  ;;  %v881_v50 = vand.u32 2147483648, %v3220_v20  ;;  %vm875_vm13 = vweird.f32 %v3220_v20 }
 0x229   : > { %v721_v42 = vmul.f32 %v2269_v37, %v720_v22  ;;  %2276 = vrcp.f32 %v3229_v23  ;;  %1288 = vmatpush.msrb.mxu2 %v3007_v61  ;;  %1488 = vmatpush.msra.mxu0 %v3002_v60  ;;  %vm898_vm2 = vweird.f32 %v3229_v23 }
 0x22a   : > { %1467 = vmatpush.msrb.mxu3 %v2976_v55  ;;  %1269 = vmatpush.msrb.mxu1 %v3021_v0  ;;  %v882_v56 = vor.u32 1.1754944e-38, %v881_v50 }
 0x22b   : > { %v725_v3 = vsel %vm724_vm11, %v2269_v37, %v721_v42  ;;  %1289 = vmatpush.msrb.mxu2 %v3026_v2  ;;  %1489 = vmatpush.msra.mxu0 %v3021_v0 }
 0x22c   : > { %v726_v16 = vmul.f32 %v725_v3, %v714_v62  ;;  %1468 = vmatpush.msrb.mxu3 %v2997_v59  ;;  %1270 = vmatpush.msrb.mxu1 %v3044_v9  ;;  %v908_v59 = vadd.f32 %v2865_v7, %v862_v53  ;;  %v904_v7 = vand.u32 2147483648, %v3229_v23 }
 0x22d   : > { %1290 = vmatpush.msrb.mxu2 %v3049_v10  ;;  %1490 = vmatpush.msra.mxu0 %v3044_v9 }
 0x22e   : > { %v2275_v58 = vpop.eup %2274  ;;  %v727_v12 = vmul.f32 %v2900_v1, %v726_v16  ;;  %v879_v16 = vand.u32 2147483647, %v3220_v20  ;;  %1469 = vmatpush.msrb.mxu3 %v3016_v63  ;;  %1271 = vmatpush.msrb.mxu1 %v3064_v14 }
 0x22f   : > { %v3269_v37 = vpop.eup %2276  ;;  %v871_v22 = vmul.f32 %v2275_v58, %v3220_v20  ;;  %vm876_vm12 = vweird.f32 %v2275_v58  ;;  %1291 = vmatpush.msrb.mxu2 %v3069_v15  ;;  %1491 = vmatpush.msra.mxu0 %v3064_v14 }
 0x230   : > { %v728_v42 = vadd.f32 %v2905_v4, %v727_v12  ;;  %v894_v49 = vmul.f32 %v3269_v37, %v3229_v23  ;;  %vm877_vm14 = vmor %vm875_vm13, %vm876_vm12  ;;  %vm880_vm15 = vcmp.eq.f32.partialorder %v879_v16, 8.507059e+37  ;;  %1470 = vmatpush.msrb.mxu3 %v3039_v8  ;;  %vm899_vm1 = vweird.f32 %v3269_v37  ;;  %1272 = vmatpush.msrb.mxu1 %v3085_v18 }
 0x231   : > { %v872_v62 = vsub.f32 1.0, %v871_v22  ;;  %1292 = vmatpush.msrb.mxu2 %v3090_v19  ;;  %vm900_vm3 = vmor %vm898_vm2, %vm899_vm1  ;;  %1492 = vmatpush.msra.mxu0 %v3085_v18  ;;  %v920_v18 = vstv %s919_s23  ;;  %s973_s23 = scalar_lea.vmem %s3875_s1, %s972_s17  ;;  %s2188_s17 = smul.u32 24, %s1186_s16 }
 0x232   : > { %2173 = vst [vmem:[%s2437_s15 + $0x2] sm:$0x3] %v728_v42  ;;  %v895_v3 = vsub.f32 1.0, %v894_v49  ;;  %v910_v42 = vrot.slane %v3031_v6, 4  ;;  %1471 = vmatpush.msrb.mxu3 %v3059_v13  ;;  %v902_v6 = vand.u32 2147483647, %v3229_v23  ;;  %1273 = vmatpush.msrb.mxu1 %v3106_v26 }
 0x233   : > { %v873_v52 = vmul.f32 %v2275_v58, %v872_v62  ;;  %1293 = vmatpush.msrb.mxu2 %v3111_v27  ;;  %v905_v13 = vor.u32 1.1754944e-38, %v904_v7  ;;  %1493 = vmatpush.msra.mxu0 %v3106_v26  ;;  %vm921_vm5 = vcmp.eq.s32.totalorder %v920_v18, 1  ;;  %s1192_s21 = sadd.s32 %s2188_s17, %s1189_s20  ;;  %s1406_s16 = sshra.s32 %s1405_s14, 3 }
 0x234   : > { %v896_v55 = vmul.f32 %v3269_v37, %v895_v3  ;;  %1472 = vmatpush.msrb.mxu3 %v3080_v17  ;;  %1274 = vmatpush.msrb.mxu1 %v3125_v31  ;;  %vm903_vm4 = vcmp.eq.f32.partialorder %v902_v6, 8.507059e+37  ;;  %v3403_v6 = vld [vmem:[%s3877_s3] ss:$0 sm:$0xff]  ;;  %s1397_s17 = sand.u32 7, %s1393_s12  ;;  %s1409_s20 = sand.u32 7, %s1405_s14 }
 0x235   : > { %v874_v12 = vadd.f32 %v2275_v58, %v873_v52  ;;  %1294 = vmatpush.msrb.mxu2 %v3133_v32  ;;  %1494 = vmatpush.msra.mxu0 %v3125_v31 }
 0x236   : > { %v897_v63 = vadd.f32 %v3269_v37, %v896_v55  ;;  %1473 = vmatpush.msrb.mxu3 %v3101_v25  ;;  %1275 = vmatpush.msrb.mxu1 %v3144_v34 }
 0x237   : > { %v878_v22 = vsel %vm877_vm14, %v2275_v58, %v874_v12  ;;  %1295 = vmatpush.msrb.mxu2 %v3149_v36  ;;  %1495 = vmatpush.msra.mxu0 %v3144_v34 }
 0x238   : > { %v883_v60 = vsel %vm880_vm15, %v882_v56, %v878_v22  ;;  %v901_v9 = vsel %vm900_vm3, %v3269_v37, %v897_v63  ;;  %1474 = vmatpush.msrb.mxu3 %v3120_v30  ;;  %1276 = vmatpush.msrb.mxu1 %v3164_v40 }
 0x239   : > { %v909_v0 = vmul.f32 %v908_v59, %v883_v60  ;;  %v906_v14 = vsel %vm903_vm4, %v905_v13, %v901_v9  ;;  %1296 = vmatpush.msrb.mxu2 %v3169_v41  ;;  %1496 = vmatpush.msra.mxu0 %v3164_v40 }
 0x23a   : > { %1475 = vmatpush.msrb.mxu3 %v3139_v33  ;;  %v914_v17 = vsub.f32 1.0, %v906_v14  ;;  %1277 = vmatpush.msrb.mxu1 %v3183_v45  ;;  %v916_v30 = vmul.f32 %v906_v14, %v2915_v43 }
 0x23b   : > { %v912_v8 = vadd.f32 %v910_v42, %v909_v0  ;;  %1297 = vmatpush.msrb.mxu2 %v3188_v46  ;;  %1497 = vmatpush.msra.mxu0 %v3183_v45 }
 0x23c   : > { %1476 = vmatpush.msrb.mxu3 %v3159_v39  ;;  %1278 = vmatpush.msrb.mxu1 %v3201_v47 }
 0x23d   : > { %2278 = vtanh.f32 %v912_v8  ;;  %1298 = vmatpush.msrb.mxu2 %v3206_v48  ;;  %1498 = vmatpush.msra.mxu0 %v3201_v47 }
 0x23e   : > { %1477 = vmatpush.msrb.mxu3 %v3178_v44  ;;  %1279 = vmatpush.msrb.mxu1 %v3217_v11 }
 0x23f   : > { %1299 = vmatpush.msrb.mxu2 %v3227_v21  ;;  %1499 = vmatpush.msra.mxu0 %v3217_v11 }
 0x240   : > { %1478 = vmatpush.msrb.mxu3 %v3196_v35  ;;  %1280 = vmatpush.msrb.mxu1 %v3240_v29 }
 0x241   : > { %1300 = vmatpush.msrb.mxu2 %v3249_v38  ;;  %1500 = vmatpush.msra.mxu0 %v3240_v29 }
 0x242   : > { %1479 = vmatpush.msrb.mxu3 %v3212_v5 }
 0x243   : > { %v2279_v25 = vpop.eup %2278 }
 0x244   : > { %v915_v26 = vmul.f32 %v2279_v25, %v914_v17  ;;  %1480 = vmatpush.msrb.mxu3 %v3235_v28 }
 0x246   : > { %v917_v31 = vadd.f32 %v916_v30, %v915_v26 }
 0x248   : > { %v3347_v33 = vsel %vm921_vm5, %v917_v31, %v2915_v43 }
 0x249   : > { %1041 = vmatmul.f32.vlgmr.msra.gmra.mxu1 %v3347_v33  ;;  %1061 = vmatmul.f32.vlgmr.msra.gmra.mxu2 %v3347_v33  ;;  %v923_v34 = vsel %vm477_vm10, %v3347_v33, 0.0  ;;  %v927_v43 = vmul.f32 %v3347_v33, %v3347_v33 }
 0x24a   : > { %1081 = vmatmul.f32.vlgmr.msra.gmra.mxu3 %v3347_v33  ;;  %924 = vadd.xlane.f32.xlu1 %v923_v34  ;;  %v1140_v34 = vstv %s1139_s30  ;;  %s1193_s30 = scalar_lea.vmem %s3875_s1, %s1192_s21 }
 0x24b   : > { %1505 = vmatpush.msra.mxu1 %v2949_v51  ;;  %v928_v39 = vsel %vm477_vm10, %v927_v43, 0.0  ;;  %v962_v51 = vld [vmem:[%s961_s18] ss:$8 sm:$0x7]  ;;  %vm1141_vm3 = vcmp.eq.s32.totalorder %v1140_v34, 1  ;;  %s1180_s18 = sadd.s32 %s2187_s27, %s1177_s19  ;;  %s2193_s27 = smul.u32 24, %s1394_s29 }
 0x24c   : > { %963 = vst.msk [vmem:[#allocation2] ss:$2 sm:$0x7] %vm2595_vm0, %v962_v51  ;;  %s1181_s13 = scalar_lea.vmem %s3875_s1, %s1180_s18  ;;  %s2194_s19 = smul.u32 24, %s1406_s16 }
 0x24d   : > { %1506 = vmatpush.msra.mxu1 %v2967_v54  ;;  %v974_v54 = vld [vmem:[%s973_s23] ss:$8 sm:$0x7]  ;;  %s1400_s18 = sadd.s32 %s2193_s27, %s1397_s17  ;;  %s1171_s29 = sadd.s32 4, %s2430_s0 }
 0x24e   : > { %975 = vst.msk [vmem:[#allocation2 + $0x1] ss:$2 sm:$0x7] %vm2595_vm0, %v974_v54  ;;  %s1412_s21 = sadd.s32 %s2194_s19, %s1409_s20  ;;  %p1358_p9 = scmp.lt.s32.totalorder %s1171_s29, 12 }
 0x24f   : > { %1507 = vmatpush.msra.mxu1 %v2986_v57  ;;  %s2224_s27 = sadd.s32 12, %s2459_s24 }
 0x250   : > { %s1359_s16 = scalar_select %p1358_p9, 1, 0 }
 0x251   : > { %1508 = vmatpush.msra.mxu1 %v3007_v61  ;;  %s1624_s17 = sadd.s32 1, %s2224_s27  ;;  %s1613_s19 = sld [smem:[#allocation5 + %s2224_s27]] }
 0x252   : > { %929 = vadd.xlane.f32.xlu1 %v928_v39  ;;  %s1625_s20 = sld [smem:[#allocation5 + %s1624_s17]] }
 0x253   : > { %1509 = vmatpush.msra.mxu1 %v3026_v2 }
 0x255   : > { %1510 = vmatpush.msra.mxu1 %v3049_v10  ;;  %v3392_v2 = vld [vmem:[#allocation2] sm:$0x3f] }
 0x256   : > { %v1130_v63 = vrot.slane %v3392_v2, 4 }
 0x257   : > { %1511 = vmatpush.msra.mxu1 %v3069_v15 }
 0x258   : > { %s1629_s26 = sand.u32 7, %s1625_s20 }
 0x259   : > { %1512 = vmatpush.msra.mxu1 %v3090_v19 }
 0x25b   : > { %1513 = vmatpush.msra.mxu1 %v3111_v27 }
 0x25d   : > { %1514 = vmatpush.msra.mxu1 %v3133_v32 }
 0x25f   : > { %1515 = vmatpush.msra.mxu1 %v3149_v36 }
 0x261   : > { %1516 = vmatpush.msra.mxu1 %v3169_v41  ;;  %v1106_v41 = vrot.slane %v3392_v2, 2 }
 0x263   : > { %1517 = vmatpush.msra.mxu1 %v3188_v46 }
 0x265   : > { %1518 = vmatpush.msra.mxu1 %v3206_v48 }
 0x267   : > { %1519 = vmatpush.msra.mxu1 %v3227_v21 }
 0x269   : > { %1520 = vmatpush.msra.mxu1 %v3249_v38 }
 0x2bd   : > { %v925_v57 = vpop.xlane.xlu1 %924 }
 0x2be   : > { %v926_v61 = vmul.f32 0.03125, %v925_v57 }
 0x2c0   : > { %v932_v15 = vmul.f32 %v926_v61, %v926_v61  ;;  %v934_v49 = vsub.f32 %v3347_v33, %v926_v61 }
 0x2c5   : > { %v930_v10 = vpop.xlane.xlu1 %929 }
 0x2c6   : > { %v931_v19 = vmul.f32 0.03125, %v930_v10  ;;  %v1042_v27 = vpop.f32.mrf.mxu1 }
 0x2c7   : > { %v1085_v32 = vadd.f32 %v1042_v27, %v3392_v2 }
 0x2c8   : > { %v933_v36 = vsub.f32 %v931_v19, %v932_v15  ;;  %v1194_v15 = vld [vmem:[%s1193_s30] ss:$8 sm:$0x7]  ;;  %s1413_s30 = scalar_lea.vmem %s3875_s1, %s1412_s21  ;;  %s1626_s21 = sshra.s32 %s1625_s20, 3 }
 0x2c9   : > { %v2183_v40 = vmul.f32 -1.442695, %v1085_v32  ;;  %1195 = vst.msk [vmem:[#allocation2 + $0x1] ss:$2 sm:$0x7] %vm2595_vm0, %v1194_v15  ;;  %v1360_v15 = vstv %s1359_s16  ;;  %s2200_s23 = smul.u32 24, %s1626_s21 }
 0x2ca   : > { %v935_v44 = vadd.f32 1e-05, %v933_v36 }
 0x2cb   : > { %2280 = vpow2.f32 %v2183_v40  ;;  %s3494_s16 = sadd.s32 %s2200_s23, %s1629_s26  ;;  %s2226_s26 = sadd.s32 14, %s2459_s24 }
 0x2cc   : > { %2282 = vrsqrt.f32 %v935_v44  ;;  %v1062_v45 = vpop.f32.mrf.mxu2  ;;  %vm942_vm7 = vweird.f32 %v935_v44  ;;  %s1633_s17 = scalar_lea.vmem %s3875_s1, %s3494_s16  ;;  %s1391_s16 = sadd.s32 5, %s2430_s0 }
 0x2cd   : > { %v1108_v46 = vadd.f32 %v1106_v41, %v1062_v45  ;;  %v1082_v56 = vpop.f32.mrf.mxu3  ;;  %v1414_v41 = vld [vmem:[%s1413_s30] ss:$8 sm:$0x7]  ;;  %p3781_p10 = scmp.lt.s32.totalorder %s1391_s16, 12  ;;  %s1844_s28 = sadd.s32 1, %s2226_s26 }
 0x2ce   : > { %s1833_s30 = sld [smem:[#allocation5 + %s2226_s26]] }
 0x2cf   : > { %v2184_v35 = vmul.f32 -1.442695, %v1108_v46  ;;  %s1845_s11 = sld [smem:[#allocation5 + %s1844_s28]] }
 0x2d1   : > { %v2281_v47 = vpop.eup %2280  ;;  %2284 = vpow2.f32 %v2184_v35 }
 0x2d2   : > { %v2283_v48 = vpop.eup %2282  ;;  %v1089_v5 = vadd.f32 1.0, %v2281_v47 }
 0x2d3   : > { %v937_v11 = vmul.f32 %v2283_v48, %v935_v44  ;;  %vm943_vm6 = vweird.f32 %v2283_v48 }
 0x2d4   : > { %2286 = vrcp.f32 %v1089_v5  ;;  %vm944_vm8 = vmor %vm942_vm7, %vm943_vm6  ;;  %v1101_v52 = vand.u32 2147483648, %v1089_v5  ;;  %v1099_v53 = vand.u32 2147483647, %v1089_v5  ;;  %vm1095_vm11 = vweird.f32 %v1089_v5  ;;  %s1834_s25 = sshra.s32 %s1833_s30, 3  ;;  %s1837_s27 = sand.u32 7, %s1833_s30 }
 0x2d5   : > { %v938_v20 = vmul.f32 %v2283_v48, %v937_v11  ;;  %s2205_s14 = smul.u32 24, %s1834_s25 }
 0x2d6   : > { %v1102_v60 = vor.u32 1.1754944e-38, %v1101_v52  ;;  %vm1100_vm13 = vcmp.eq.f32.partialorder %v1099_v53, 8.507059e+37 }
 0x2d7   : > { %v2285_v21 = vpop.eup %2284  ;;  %v939_v23 = vmul.f32 0.5, %v938_v20  ;;  %s1840_s20 = sadd.s32 %s2205_s14, %s1837_s27 }
 0x2d8   : > { %v1112_v28 = vadd.f32 1.0, %v2285_v21 }
 0x2d9   : > { %v940_v29 = vsub.f32 1.5, %v939_v23 }
 0x2da   : > { %v2287_v38 = vpop.eup %2286  ;;  %2288 = vrcp.f32 %v1112_v28  ;;  %v1122_v14 = vand.u32 2147483647, %v1112_v28  ;;  %vm1118_vm15 = vweird.f32 %v1112_v28 }
 0x2db   : > { %v941_v58 = vmul.f32 %v2283_v48, %v940_v29  ;;  %v1091_v37 = vmul.f32 %v2287_v38, %v1089_v5  ;;  %vm1096_vm9 = vweird.f32 %v2287_v38 }
 0x2dc   : > { %vm1097_vm12 = vmor %vm1095_vm11, %vm1096_vm9  ;;  %vm1123_vm2 = vcmp.eq.f32.partialorder %v1122_v14, 8.507059e+37 }
 0x2dd   : > { %v945_v62 = vsel %vm944_vm8, %v2283_v48, %v941_v58  ;;  %v1092_v50 = vsub.f32 1.0, %v1091_v37 }
 0x2de   : > { %v946_v3 = vmul.f32 %v945_v62, %v934_v49 }
 0x2df   : > { %v1093_v16 = vmul.f32 %v2287_v38, %v1092_v50 }
 0x2e0   : > { %v2289_v55 = vpop.eup %2288  ;;  %v947_v12 = vmul.f32 %v2900_v1, %v946_v3  ;;  %v1128_v1 = vadd.f32 %v3403_v6, %v1082_v56  ;;  %v3450_v56 = vld [vmem:[%s3879_s5] ss:$0 sm:$0xff] }
 0x2e1   : > { %v1114_v59 = vmul.f32 %v2289_v55, %v1112_v28  ;;  %v1094_v22 = vadd.f32 %v2287_v38, %v1093_v16  ;;  %vm1119_vm14 = vweird.f32 %v2289_v55 }
 0x2e2   : > { %v948_v42 = vadd.f32 %v2905_v4, %v947_v12  ;;  %v1124_v4 = vand.u32 2147483648, %v1112_v28  ;;  %vm1120_vm1 = vmor %vm1118_vm15, %vm1119_vm14 }
 0x2e3   : > { %v1115_v0 = vsub.f32 1.0, %v1114_v59  ;;  %v1098_v7 = vsel %vm1097_vm12, %v2287_v38, %v1094_v22 }
 0x2e4   : > { %2179 = vst [vmem:[%s2437_s15 + $0x4] sm:$0x3] %v948_v42  ;;  %v1103_v8 = vsel %vm1100_vm13, %v1102_v60, %v1098_v7  ;;  %v1125_v25 = vor.u32 1.1754944e-38, %v1124_v4  ;;  %v3456_v60 = vld [vmem:[%s3880_s6] ss:$0 sm:$0xff] }
 0x2e5   : > { %v1116_v9 = vmul.f32 %v2289_v55, %v1115_v0  ;;  %v1129_v13 = vmul.f32 %v1128_v1, %v1103_v8 }
 0x2e7   : > { %v1117_v17 = vadd.f32 %v2289_v55, %v1116_v9  ;;  %v1132_v18 = vadd.f32 %v1130_v63, %v1129_v13 }
 0x2e9   : > { %v1121_v26 = vsel %vm1120_vm1, %v2289_v55, %v1117_v17  ;;  %2290 = vtanh.f32 %v1132_v18  ;;  %vm1361_vm1 = vcmp.eq.s32.totalorder %v1360_v15, 1  ;;  %v3658_v15 = vld [vmem:[%s3876_s2 + $0x80] sm:$0xff] }
 0x2ea   : > { %v1126_v30 = vsel %vm1123_vm2, %v1125_v25, %v1121_v26 }
 0x2eb   : > { %v1134_v31 = vsub.f32 1.0, %v1126_v30  ;;  %v1136_v51 = vmul.f32 %v1126_v30, %v3347_v33 }
 0x2ef   : > { %v2291_v43 = vpop.eup %2290 }
 0x2f0   : > { %v1135_v39 = vmul.f32 %v2291_v43, %v1134_v31 }
 0x2f2   : > { %v1137_v54 = vadd.f32 %v1136_v51, %v1135_v39 }
 0x2f4   : > { %v3410_v57 = vsel %vm1141_vm3, %v1137_v54, %v3347_v33  ;;  %v1182_v33 = vld [vmem:[%s1181_s13] ss:$8 sm:$0x7]  ;;  %s1401_s13 = scalar_lea.vmem %s3875_s1, %s1400_s18  ;;  %s1614_s18 = sshra.s32 %s1613_s19, 3 }
 0x2f5   : > { %1261 = vmatmul.f32.vlgmr.msrb.gmra.mxu0 %v3410_v57  ;;  %1281 = vmatmul.f32.vlgmr.msrb.gmra.mxu1 %v3410_v57  ;;  %v1143_v61 = vsel %vm477_vm10, %v3410_v57, 0.0  ;;  %v1147_v2 = vmul.f32 %v3410_v57, %v3410_v57  ;;  %1183 = vst.msk [vmem:[#allocation2] ss:$2 sm:$0x7] %vm2595_vm0, %v1182_v33  ;;  %s2199_s22 = smul.u32 24, %s1614_s18 }
 0x2f6   : > { %1301 = vmatmul.f32.vlgmr.msrb.gmra.mxu2 %v3410_v57  ;;  %1144 = vadd.xlane.f32.xlu1 %v1143_v61  ;;  %v1402_v36 = vld [vmem:[%s1401_s13] ss:$8 sm:$0x7]  ;;  %s1617_s13 = sand.u32 7, %s1613_s19  ;;  %s1849_s19 = sand.u32 7, %s1845_s11 }
 0x2f7   : > { %v1148_v10 = vsel %vm477_vm10, %v1147_v2, 0.0  ;;  %s3492_s29 = sadd.s32 %s2199_s22, %s1617_s13  ;;  %s1841_s22 = scalar_lea.vmem %s3875_s1, %s1840_s20 }
 0x2f8   : > { %1149 = vadd.xlane.f32.xlu2 %v1148_v10  ;;  %s1621_s12 = scalar_lea.vmem %s3875_s1, %s3492_s29 }
 0x2f9   : > { %s1579_s13 = scalar_select %p3781_p10, 1, 0 }
 0x2fc   : > { %v3438_v32 = vld [vmem:[#allocation2] sm:$0x3f] }
 0x2fd   : > { %1403 = vst.msk [vmem:[#allocation2] ss:$2 sm:$0x7] %vm2595_vm0, %v1402_v36  ;;  %v1326_v35 = vrot.slane %v3438_v32, 2  ;;  %v1350_v30 = vrot.slane %v3438_v32, 4 }
 0x2fe   : > { %1415 = vst.msk [vmem:[#allocation2 + $0x1] ss:$2 sm:$0x7] %vm2595_vm0, %v1414_v41 }
 0x369   : > { %v1145_v19 = vpop.xlane.xlu1 %1144 }
 0x36a   : > { %v1146_v27 = vmul.f32 0.03125, %v1145_v19 }
 0x36b   : > { %v1150_v40 = vpop.xlane.xlu2 %1149 }
 0x36c   : > { %v1152_v44 = vmul.f32 %v1146_v27, %v1146_v27  ;;  %v1151_v45 = vmul.f32 0.03125, %v1150_v40  ;;  %v1154_v16 = vsub.f32 %v3410_v57, %v1146_v27 }
 0x36e   : > { %v1153_v46 = vsub.f32 %v1151_v45, %v1152_v44 }
 0x370   : > { %v1155_v47 = vadd.f32 1e-05, %v1153_v46  ;;  %v1682_v46 = vld [vmem:[%s3876_s2 + $0x168] sm:$0xff] }
 0x371   : > { %1685 = vmatpush.msra.mxu2 %v1682_v46  ;;  %1905 = vmatpush.msrb.mxu1 %v1682_v46  ;;  %v1646_v46 = vld [vmem:[%s3876_s2 + $0x48] sm:$0xff] }
 0x372   : > { %2292 = vrsqrt.f32 %v1155_v47  ;;  %v1262_v48 = vpop.f32.mrf.mxu0  ;;  %v1282_v5 = vpop.f32.mrf.mxu1  ;;  %vm1162_vm5 = vweird.f32 %v1155_v47 }
 0x373   : > { %v1305_v11 = vadd.f32 %v1262_v48, %v3438_v32  ;;  %v1328_v20 = vadd.f32 %v1326_v35, %v1282_v5  ;;  %v3482_v35 = vld [vmem:[%s3876_s2 + $0x170] sm:$0xff] }
 0x374   : > { %1705 = vmatpush.msra.mxu3 %v3482_v35 }
 0x375   : > { %v2189_v21 = vmul.f32 -1.442695, %v1305_v11  ;;  %v2190_v23 = vmul.f32 -1.442695, %v1328_v20  ;;  %v1679_v11 = vld [vmem:[%s3876_s2 + $0x150] sm:$0xff]  ;;  %v3503_v20 = vld [vmem:[%s3876_s2 + $0x158] sm:$0xff] }
 0x376   : > { %1686 = vmatpush.msra.mxu2 %v1679_v11  ;;  %1706 = vmatpush.msra.mxu3 %v3503_v20 }
 0x377   : > { %2294 = vpow2.f32 %v2189_v21  ;;  %v3508_v21 = vld [vmem:[%s3876_s2 + $0x160] sm:$0xff]  ;;  %1906 = vmatpush.msrb.mxu1 %v1679_v11 }
 0x378   : > { %v2293_v28 = vpop.eup %2292  ;;  %2296 = vpow2.f32 %v2190_v23 }
 0x379   : > { %v1157_v29 = vmul.f32 %v2293_v28, %v1155_v47  ;;  %vm1163_vm4 = vweird.f32 %v2293_v28  ;;  %v1302_v14 = vpop.f32.mrf.mxu2  ;;  %v3487_v47 = vld [vmem:[%s3876_s2 + $0x178] sm:$0xff] }
 0x37a   : > { %vm1164_vm6 = vmor %vm1162_vm5, %vm1163_vm4  ;;  %v1348_v26 = vadd.f32 %v3403_v6, %v1302_v14  ;;  %1725 = vmatpush.msrb.mxu0 %v3487_v47  ;;  %v1661_v14 = vld [vmem:[%s3876_s2 + $0xc0] sm:$0xff] }
 0x37b   : > { %v1158_v38 = vmul.f32 %v2293_v28, %v1157_v29  ;;  %v3512_v29 = vld [vmem:[#allocation2] sm:$0x3f] }
 0x37c   : > { %1726 = vmatpush.msrb.mxu0 %v3508_v21 }
 0x37d   : > { %v2295_v58 = vpop.eup %2294  ;;  %v1159_v37 = vmul.f32 0.5, %v1158_v38  ;;  %v1676_v38 = vld [vmem:[%s3876_s2 + $0x138] sm:$0xff] }
 0x37e   : > { %v2297_v49 = vpop.eup %2296  ;;  %v1309_v62 = vadd.f32 1.0, %v2295_v58  ;;  %v3522_v58 = vld [vmem:[%s3876_s2 + $0x140] sm:$0xff]  ;;  %1687 = vmatpush.msra.mxu2 %v1676_v38  ;;  %1907 = vmatpush.msrb.mxu1 %v1676_v38  ;;  %v1643_v38 = vld [vmem:[%s3876_s2 + $0x30] sm:$0xff] }
 0x37f   : > { %v1160_v50 = vsub.f32 1.5, %v1159_v37  ;;  %v1332_v3 = vadd.f32 1.0, %v2297_v49  ;;  %v3527_v37 = vld [vmem:[%s3876_s2 + $0x148] sm:$0xff]  ;;  %1707 = vmatpush.msra.mxu3 %v3522_v58 }
 0x380   : > { %2298 = vrcp.f32 %v1309_v62  ;;  %v1321_v8 = vand.u32 2147483648, %v1309_v62  ;;  %v1319_v4 = vand.u32 2147483647, %v1309_v62  ;;  %vm1315_vm8 = vweird.f32 %v1309_v62  ;;  %1727 = vmatpush.msrb.mxu0 %v3527_v37 }
 0x381   : > { %v1161_v52 = vmul.f32 %v2293_v28, %v1160_v50  ;;  %2300 = vrcp.f32 %v1332_v3  ;;  %v1344_v43 = vand.u32 2147483648, %v1332_v3  ;;  %vm1338_vm13 = vweird.f32 %v1332_v3  ;;  %v1673_v50 = vld [vmem:[%s3876_s2 + $0x120] sm:$0xff] }
 0x382   : > { %v1322_v18 = vor.u32 1.1754944e-38, %v1321_v8  ;;  %vm1320_vm11 = vcmp.eq.f32.partialorder %v1319_v4, 8.507059e+37  ;;  %v1342_v51 = vand.u32 2147483647, %v1332_v3  ;;  %1688 = vmatpush.msra.mxu2 %v1673_v50  ;;  %1908 = vmatpush.msrb.mxu1 %v1673_v50  ;;  %v3597_v4 = vld [vmem:[%s3876_s2 + $0xe0] sm:$0xff] }
 0x383   : > { %v1165_v53 = vsel %vm1164_vm6, %v2293_v28, %v1161_v52  ;;  %v1345_v2 = vor.u32 1.1754944e-38, %v1344_v43  ;;  %v3551_v52 = vld [vmem:[%s3876_s2 + $0x130] sm:$0xff] }
 0x384   : > { %v1166_v55 = vmul.f32 %v1165_v53, %v1154_v16  ;;  %vm1343_vm15 = vcmp.eq.f32.partialorder %v1342_v51, 8.507059e+37  ;;  %v1622_v53 = vld [vmem:[%s1621_s12] ss:$8 sm:$0x7]  ;;  %1728 = vmatpush.msrb.mxu0 %v3551_v52  ;;  %s1846_s12 = sshra.s32 %s1845_s11, 3  ;;  %s1831_s11 = sadd.s32 7, %s2430_s0 }
 0x385   : > { %1623 = vst.msk [vmem:[#allocation2] ss:$2 sm:$0x7] %vm2595_vm0, %v1622_v53  ;;  %v3629_v43 = vld [vmem:[%s3876_s2 + $0xb0] sm:$0xff]  ;;  %p2018_p12 = scmp.lt.s32.totalorder %s1831_s11, 12 }
 0x386   : > { %v2299_v12 = vpop.eup %2298  ;;  %v1167_v59 = vmul.f32 %v3450_v56, %v1166_v55  ;;  %v1634_v55 = vld [vmem:[%s1633_s17] ss:$8 sm:$0x7]  ;;  %s2206_s17 = smul.u32 24, %s1846_s12 }
 0x387   : > { %v2301_v22 = vpop.eup %2300  ;;  %v1311_v42 = vmul.f32 %v2299_v12, %v1309_v62  ;;  %vm1316_vm7 = vweird.f32 %v2299_v12  ;;  %v1546_v62 = vrot.slane %v3512_v29, 2  ;;  %1635 = vst.msk [vmem:[#allocation2 + $0x1] ss:$2 sm:$0x7] %vm2595_vm0, %v1634_v55  ;;  %v1640_v55 = vld [vmem:[%s3876_s2 + $0x18] sm:$0xff] }
 0x388   : > { %v1168_v63 = vadd.f32 %v3456_v60, %v1167_v59  ;;  %v1334_v0 = vmul.f32 %v2301_v22, %v1332_v3  ;;  %vm1317_vm9 = vmor %vm1315_vm8, %vm1316_vm7  ;;  %vm1339_vm12 = vweird.f32 %v2301_v22  ;;  %v3546_v3 = vld [vmem:[%s3876_s2 + $0x128] sm:$0xff]  ;;  %s1852_s18 = sadd.s32 %s2206_s17, %s1849_s19 }
 0x389   : > { %v1312_v7 = vsub.f32 1.0, %v1311_v42  ;;  %vm1340_vm14 = vmor %vm1338_vm13, %vm1339_vm12  ;;  %1708 = vmatpush.msra.mxu3 %v3546_v3  ;;  %v1670_v59 = vld [vmem:[%s3876_s2 + $0x108] sm:$0xff]  ;;  %v3571_v42 = vld [vmem:[%s3876_s2 + $0x118] sm:$0xff]  ;;  %s1853_s23 = scalar_lea.vmem %s3875_s1, %s1852_s18 }
 0x38a   : > { %2185 = vst [vmem:[%s2437_s15 + $0x6] sm:$0x3] %v1168_v63  ;;  %v1335_v1 = vsub.f32 1.0, %v1334_v0  ;;  %1689 = vmatpush.msra.mxu2 %v1670_v59  ;;  %v1667_v0 = vld [vmem:[%s3876_s2 + $0xf0] sm:$0xff]  ;;  %1729 = vmatpush.msrb.mxu0 %v3571_v42  ;;  %s2019_s25 = scalar_select %p2018_p12, 1, 0 }
 0x38b   : > { %v1313_v9 = vmul.f32 %v2299_v12, %v1312_v7  ;;  %v3582_v7 = vld [vmem:[%s3876_s2 + $0xf8] sm:$0xff]  ;;  %1909 = vmatpush.msrb.mxu1 %v1670_v59  ;;  %v3731_v59 = vld [vmem:[%s3876_s2 + $0x28] sm:$0xff] }
 0x38c   : > { %v1336_v13 = vmul.f32 %v2301_v22, %v1335_v1  ;;  %v3587_v1 = vld [vmem:[%s3876_s2 + $0x100] sm:$0xff]  ;;  %1690 = vmatpush.msra.mxu2 %v1667_v0 }
 0x38d   : > { %v1314_v17 = vadd.f32 %v2299_v12, %v1313_v9  ;;  %v1664_v9 = vld [vmem:[%s3876_s2 + $0xd8] sm:$0xff]  ;;  %1730 = vmatpush.msrb.mxu0 %v3587_v1  ;;  %1910 = vmatpush.msrb.mxu1 %v1667_v0  ;;  %v1637_v0 = vld [vmem:[%s3876_s2] sm:$0xff] }
 0x38e   : > { %v1337_v31 = vadd.f32 %v2301_v22, %v1336_v13  ;;  %v3602_v13 = vld [vmem:[%s3876_s2 + $0xe8] sm:$0xff]  ;;  %1691 = vmatpush.msra.mxu2 %v1664_v9 }
 0x38f   : > { %v1318_v25 = vsel %vm1317_vm9, %v2299_v12, %v1314_v17  ;;  %v3612_v17 = vld [vmem:[%s3876_s2 + $0xc8] sm:$0xff]  ;;  %1731 = vmatpush.msrb.mxu0 %v3602_v13  ;;  %1911 = vmatpush.msrb.mxu1 %v1664_v9 }
 0x390   : > { %v1323_v34 = vsel %vm1320_vm11, %v1322_v18, %v1318_v25  ;;  %v1341_v61 = vsel %vm1340_vm14, %v2301_v22, %v1337_v31  ;;  %v3566_v22 = vld [vmem:[%s3876_s2 + $0x110] sm:$0xff]  ;;  %1692 = vmatpush.msra.mxu2 %v1661_v14 }
 0x391   : > { %v1349_v39 = vmul.f32 %v1348_v26, %v1323_v34  ;;  %v1346_v10 = vsel %vm1343_vm15, %v1345_v2, %v1341_v61  ;;  %1709 = vmatpush.msra.mxu3 %v3566_v22  ;;  %v3617_v18 = vld [vmem:[%s3876_s2 + $0xd0] sm:$0xff]  ;;  %v1658_v34 = vld [vmem:[%s3876_s2 + $0xa8] sm:$0xff]  ;;  %1912 = vmatpush.msrb.mxu1 %v1661_v14  ;;  %v3644_v2 = vld [vmem:[%s3876_s2 + $0x98] sm:$0xff] }
 0x392   : > { %v1354_v33 = vsub.f32 1.0, %v1346_v10  ;;  %v1356_v32 = vmul.f32 %v1346_v10, %v3410_v57  ;;  %1732 = vmatpush.msrb.mxu0 %v3617_v18  ;;  %1693 = vmatpush.msra.mxu2 %v1658_v34  ;;  %v1655_v61 = vld [vmem:[%s3876_s2 + $0x90] sm:$0xff]  ;;  %v3649_v10 = vld [vmem:[%s3876_s2 + $0xa0] sm:$0xff] }
 0x393   : > { %v1352_v54 = vadd.f32 %v1350_v30, %v1349_v39  ;;  %1710 = vmatpush.msra.mxu3 %v3582_v7  ;;  %v3634_v39 = vld [vmem:[%s3876_s2 + $0xb8] sm:$0xff]  ;;  %1913 = vmatpush.msrb.mxu1 %v1658_v34  ;;  %v3749_v14 = vld [vmem:[%s3876_s2 + $0x10] sm:$0xff] }
 0x394   : > { %1733 = vmatpush.msrb.mxu0 %v3634_v39  ;;  %1694 = vmatpush.msra.mxu2 %v1655_v61 }
 0x395   : > { %2302 = vtanh.f32 %v1352_v54  ;;  %1711 = vmatpush.msra.mxu3 %v3597_v4  ;;  %1914 = vmatpush.msrb.mxu1 %v1655_v61 }
 0x396   : > { %1734 = vmatpush.msrb.mxu0 %v3649_v10 }
 0x397   : > { %1712 = vmatpush.msra.mxu3 %v3612_v17 }
 0x399   : > { %1713 = vmatpush.msra.mxu3 %v3629_v43 }
 0x39b   : > { %v2303_v19 = vpop.eup %2302  ;;  %1714 = vmatpush.msra.mxu3 %v3644_v2 }
 0x39c   : > { %v1355_v27 = vmul.f32 %v2303_v19, %v1354_v33  ;;  %v1652_v33 = vld [vmem:[%s3876_s2 + $0x78] sm:$0xff] }
 0x39d   : > { %1695 = vmatpush.msra.mxu2 %v1652_v33  ;;  %1715 = vmatpush.msra.mxu3 %v3658_v15 }
 0x39e   : > { %v1357_v36 = vadd.f32 %v1356_v32, %v1355_v27  ;;  %v3664_v32 = vld [vmem:[%s3876_s2 + $0x88] sm:$0xff]  ;;  %1915 = vmatpush.msrb.mxu1 %v1652_v33  ;;  %v1570_v33 = vrot.slane %v3512_v29, 4 }
 0x39f   : > { %1735 = vmatpush.msrb.mxu0 %v3664_v32 }
 0x3a0   : > { %v3465_v40 = vsel %vm1361_vm1, %v1357_v36, %v3410_v57 }
 0x3a1   : > { %1481 = vmatmul.f32.vlgmr.msrb.gmra.mxu3 %v3465_v40  ;;  %1501 = vmatmul.f32.vlgmr.msra.gmra.mxu0 %v3465_v40  ;;  %v1363_v41 = vsel %vm477_vm10, %v3465_v40, 0.0  ;;  %v1367_v44 = vmul.f32 %v3465_v40, %v3465_v40 }
 0x3a2   : > { %1521 = vmatmul.f32.vlgmr.msra.gmra.mxu1 %v3465_v40  ;;  %1364 = vadd.xlane.f32.xlu2 %v1363_v41  ;;  %v1649_v41 = vld [vmem:[%s3876_s2 + $0x60] sm:$0xff] }
 0x3a3   : > { %v1368_v45 = vsel %vm477_vm10, %v1367_v44, 0.0  ;;  %v3675_v44 = vld [vmem:[%s3876_s2 + $0x68] sm:$0xff]  ;;  %1696 = vmatpush.msra.mxu2 %v1649_v41  ;;  %1916 = vmatpush.msrb.mxu1 %v1649_v41 }
 0x3a4   : > { %1369 = vadd.xlane.f32.xlu0 %v1368_v45  ;;  %1716 = vmatpush.msra.mxu3 %v3675_v44 }
 0x3a5   : > { %1697 = vmatpush.msra.mxu2 %v1646_v46  ;;  %1917 = vmatpush.msrb.mxu1 %v1646_v46  ;;  %v1842_v46 = vld [vmem:[%s1841_s22] ss:$8 sm:$0x7] }
 0x3a7   : > { %1698 = vmatpush.msra.mxu2 %v1643_v38  ;;  %1918 = vmatpush.msrb.mxu1 %v1643_v38 }
 0x3a9   : > { %1699 = vmatpush.msra.mxu2 %v1640_v55  ;;  %1919 = vmatpush.msrb.mxu1 %v1640_v55 }
 0x3ab   : > { %1700 = vmatpush.msra.mxu2 %v1637_v0  ;;  %1920 = vmatpush.msrb.mxu1 %v1637_v0 }
 0x3ad   : > { %1925 = vmatpush.msrb.mxu2 %v3482_v35 }
 0x3af   : > { %1926 = vmatpush.msrb.mxu2 %v3503_v20 }
 0x3b1   : > { %1927 = vmatpush.msrb.mxu2 %v3522_v58 }
 0x3b3   : > { %1928 = vmatpush.msrb.mxu2 %v3546_v3 }
 0x3b5   : > { %1929 = vmatpush.msrb.mxu2 %v3566_v22 }
 0x3b7   : > { %1930 = vmatpush.msrb.mxu2 %v3582_v7 }
 0x3b9   : > { %1931 = vmatpush.msrb.mxu2 %v3597_v4 }
 0x3bb   : > { %1932 = vmatpush.msrb.mxu2 %v3612_v17 }
 0x3bd   : > { %1933 = vmatpush.msrb.mxu2 %v3629_v43 }
 0x3bf   : > { %1934 = vmatpush.msrb.mxu2 %v3644_v2 }
 0x3c1   : > { %1935 = vmatpush.msrb.mxu2 %v3658_v15 }
 0x3c3   : > { %1936 = vmatpush.msrb.mxu2 %v3675_v44 }
 0x415   : > { %v1365_v57 = vpop.xlane.xlu2 %1364 }
 0x416   : > { %v3489_v48 = vmul.f32 0.03125, %v1365_v57  ;;  %v3681_v57 = vld [vmem:[%s3876_s2 + $0x70] sm:$0xff] }
 0x417   : > { %v1370_v5 = vpop.xlane.xlu0 %1369  ;;  %1736 = vmatpush.msrb.mxu0 %v3681_v57 }
 0x418   : > { %v1372_v23 = vmul.f32 %v3489_v48, %v3489_v48  ;;  %v1371_v28 = vmul.f32 0.03125, %v1370_v5  ;;  %v3690_v5 = vld [vmem:[%s3876_s2 + $0x50] sm:$0xff] }
 0x419   : > { %1717 = vmatpush.msra.mxu3 %v3690_v5  ;;  %1937 = vmatpush.msrb.mxu2 %v3690_v5  ;;  %v1854_v5 = vld [vmem:[%s1853_s23] ss:$8 sm:$0x7] }
 0x41a   : > { %v1373_v49 = vsub.f32 %v1371_v28, %v1372_v23  ;;  %v3698_v23 = vld [vmem:[%s3876_s2 + $0x58] sm:$0xff]  ;;  %v1374_v28 = vsub.f32 %v3465_v40, %v3489_v48  ;;  %v3716_v48 = vld [vmem:[%s3876_s2 + $0x40] sm:$0xff] }
 0x41b   : > { %1737 = vmatpush.msrb.mxu0 %v3698_v23 }
 0x41c   : > { %v3553_v16 = vadd.f32 1e-05, %v1373_v49  ;;  %v3710_v49 = vld [vmem:[%s3876_s2 + $0x38] sm:$0xff] }
 0x41d   : > { %1718 = vmatpush.msra.mxu3 %v3710_v49  ;;  %1738 = vmatpush.msrb.mxu0 %v3716_v48 }
 0x41e   : > { %2304 = vrsqrt.f32 %v3553_v16  ;;  %v1502_v12 = vpop.f32.mrf.mxu0  ;;  %vm1382_vm3 = vweird.f32 %v3553_v16  ;;  %1938 = vmatpush.msrb.mxu2 %v3710_v49 }
 0x41f   : > { %v1548_v63 = vadd.f32 %v1546_v62, %v1502_v12  ;;  %v3725_v12 = vld [vmem:[%s3876_s2 + $0x20] sm:$0xff]  ;;  %1739 = vmatpush.msrb.mxu0 %v3731_v59  ;;  %v1522_v20 = vpop.f32.mrf.mxu1 }
 0x420   : > { %1719 = vmatpush.msra.mxu3 %v3725_v12  ;;  %1939 = vmatpush.msrb.mxu2 %v3725_v12 }
 0x421   : > { %v2196_v8 = vmul.f32 -1.442695, %v1548_v63  ;;  %1740 = vmatpush.msrb.mxu0 %v3749_v14 }
 0x423   : > { %2306 = vpow2.f32 %v2196_v8  ;;  %v3741_v8 = vld [vmem:[%s3876_s2 + $0x8] sm:$0xff] }
 0x424   : > { %v2305_v25 = vpop.eup %2304  ;;  %v1482_v26 = vpop.f32.mrf.mxu3  ;;  %1720 = vmatpush.msra.mxu3 %v3741_v8  ;;  %1940 = vmatpush.msrb.mxu2 %v3741_v8 }
 0x425   : > { %v1377_v30 = vmul.f32 %v2305_v25, %v3553_v16  ;;  %v1525_v31 = vadd.f32 %v1482_v26, %v3512_v29  ;;  %vm1383_vm2 = vweird.f32 %v2305_v25 }
 0x426   : > { %vm1384_vm4 = vmor %vm1382_vm3, %vm1383_vm2  ;;  %1945 = vmatpush.msrb.mxu3 %v3487_v47 }
 0x427   : > { %v1378_v51 = vmul.f32 %v2305_v25, %v1377_v30  ;;  %v2195_v54 = vmul.f32 -1.442695, %v1525_v31 }
 0x428   : > { %1946 = vmatpush.msrb.mxu3 %v3508_v21 }
 0x429   : > { %v2307_v19 = vpop.eup %2306  ;;  %v1379_v27 = vmul.f32 0.5, %v1378_v51  ;;  %2308 = vpow2.f32 %v2195_v54 }
 0x42a   : > { %v3666_v36 = vadd.f32 1.0, %v2307_v19  ;;  %1947 = vmatpush.msrb.mxu3 %v3527_v37  ;;  %v1568_v37 = vadd.f32 %v3403_v6, %v1522_v20 }
 0x42b   : > { %v1380_v45 = vsub.f32 1.5, %v1379_v27 }
 0x42c   : > { %2310 = vrcp.f32 %v3666_v36  ;;  %1948 = vmatpush.msrb.mxu3 %v3551_v52  ;;  %vm1558_vm11 = vweird.f32 %v3666_v36  ;;  %v1562_v7 = vand.u32 2147483647, %v3666_v36 }
 0x42d   : > { %v1381_v11 = vmul.f32 %v2305_v25, %v1380_v45 }
 0x42e   : > { %1949 = vmatpush.msrb.mxu3 %v3571_v42  ;;  %v1564_v42 = vand.u32 2147483648, %v3666_v36  ;;  %vm1563_vm13 = vcmp.eq.f32.partialorder %v1562_v7, 8.507059e+37 }
 0x42f   : > { %v2309_v62 = vpop.eup %2308  ;;  %v1385_v50 = vsel %vm1384_vm4, %v2305_v25, %v1381_v11 }
 0x430   : > { %v1386_v16 = vmul.f32 %v1385_v50, %v1374_v28  ;;  %v1529_v53 = vadd.f32 1.0, %v2309_v62  ;;  %1950 = vmatpush.msrb.mxu3 %v3587_v1  ;;  %v1565_v4 = vor.u32 1.1754944e-38, %v1564_v42 }
 0x432   : > { %v1387_v63 = vmul.f32 %v3450_v56, %v1386_v16  ;;  %2312 = vrcp.f32 %v1529_v53  ;;  %v3743_v9 = vpop.eup %2310  ;;  %v1541_v54 = vand.u32 2147483648, %v1529_v53  ;;  %v1539_v35 = vand.u32 2147483647, %v1529_v53  ;;  %1951 = vmatpush.msrb.mxu3 %v3602_v13 }
 0x433   : > { %v1554_v26 = vmul.f32 %v3743_v9, %v3666_v36  ;;  %vm1535_vm6 = vweird.f32 %v1529_v53  ;;  %vm1559_vm9 = vweird.f32 %v3743_v9 }
 0x434   : > { %v1388_v25 = vadd.f32 %v3456_v60, %v1387_v63  ;;  %v1542_v58 = vor.u32 1.1754944e-38, %v1541_v54  ;;  %vm1540_vm8 = vcmp.eq.f32.partialorder %v1539_v35, 8.507059e+37  ;;  %vm1560_vm12 = vmor %vm1558_vm11, %vm1559_vm9  ;;  %1952 = vmatpush.msrb.mxu3 %v3617_v18  ;;  %v1580_v18 = vstv %s1579_s13  ;;  %s1611_s13 = sadd.s32 6, %s2430_s0 }
 0x435   : > { %v1555_v34 = vsub.f32 1.0, %v1554_v26  ;;  %vm1581_vm14 = vcmp.eq.s32.totalorder %v1580_v18, 1  ;;  %p1798_p11 = scmp.lt.s32.totalorder %s1611_s13, 12 }
 0x436   : > { %2191 = vst [vmem:[%s2437_s15 + $0x8] sm:$0x3] %v1388_v25  ;;  %1953 = vmatpush.msrb.mxu3 %v3634_v39 }
 0x437   : > { %v1556_v47 = vmul.f32 %v3743_v9, %v1555_v34  ;;  %s1799_s26 = scalar_select %p1798_p11, 1, 0 }
 0x438   : > { %v2313_v30 = vpop.eup %2312  ;;  %1954 = vmatpush.msrb.mxu3 %v3649_v10 }
 0x439   : > { %v1531_v31 = vmul.f32 %v2313_v30, %v1529_v53  ;;  %vm1536_vm5 = vweird.f32 %v2313_v30  ;;  %v1557_v52 = vadd.f32 %v3743_v9, %v1556_v47 }
 0x43a   : > { %vm1537_vm7 = vmor %vm1535_vm6, %vm1536_vm5  ;;  %1955 = vmatpush.msrb.mxu3 %v3664_v32 }
 0x43b   : > { %v1532_v51 = vsub.f32 1.0, %v1531_v31  ;;  %v1561_v1 = vsel %vm1560_vm12, %v3743_v9, %v1557_v52 }
 0x43c   : > { %v1566_v13 = vsel %vm1563_vm13, %v1565_v4, %v1561_v1  ;;  %1956 = vmatpush.msrb.mxu3 %v3681_v57 }
 0x43d   : > { %v1533_v61 = vmul.f32 %v2313_v30, %v1532_v51  ;;  %v1574_v17 = vsub.f32 1.0, %v1566_v13  ;;  %v1576_v39 = vmul.f32 %v1566_v13, %v3465_v40 }
 0x43e   : > { %1957 = vmatpush.msrb.mxu3 %v3698_v23 }
 0x43f   : > { %v1534_v21 = vadd.f32 %v2313_v30, %v1533_v61 }
 0x440   : > { %1958 = vmatpush.msrb.mxu3 %v3716_v48 }
 0x441   : > { %v1538_v3 = vsel %vm1537_vm7, %v2313_v30, %v1534_v21  ;;  %v1800_v21 = vstv %s1799_s26 }
 0x442   : > { %v1543_v22 = vsel %vm1540_vm8, %v1542_v58, %v1538_v3  ;;  %1959 = vmatpush.msrb.mxu3 %v3731_v59  ;;  %vm1801_vm7 = vcmp.eq.s32.totalorder %v1800_v21, 1 }
 0x443   : > { %v1569_v19 = vmul.f32 %v1568_v37, %v1543_v22 }
 0x444   : > { %1960 = vmatpush.msrb.mxu3 %v3749_v14 }
 0x445   : > { %v1572_v29 = vadd.f32 %v1570_v33, %v1569_v19 }
 0x447   : > { %2314 = vtanh.f32 %v1572_v29 }
 0x44d   : > { %v2315_v43 = vpop.eup %2314 }
 0x44e   : > { %v1575_v27 = vmul.f32 %v2315_v43, %v1574_v17 }
 0x450   : > { %v1577_v2 = vadd.f32 %v1576_v39, %v1575_v27 }
 0x452   : > { %v3804_v10 = vsel %vm1581_vm14, %v1577_v2, %v3465_v40  ;;  %v1636_v40 = vld [vmem:[#allocation2] sm:$0x3f] }
 0x453   : > { %1701 = vmatmul.f32.vlgmr.msra.gmra.mxu2 %v3804_v10  ;;  %1721 = vmatmul.f32.vlgmr.msra.gmra.mxu3 %v3804_v10  ;;  %v1583_v15 = vsel %vm477_vm10, %v3804_v10, 0.0  ;;  %v1766_v32 = vrot.slane %v1636_v40, 2  ;;  %1843 = vst.msk [vmem:[#allocation2] ss:$2 sm:$0x7] %vm2595_vm0, %v1842_v46  ;;  %v1790_v26 = vrot.slane %v1636_v40, 4 }
 0x454   : > { %1741 = vmatmul.f32.vlgmr.msrb.gmra.mxu0 %v3804_v10  ;;  %1584 = vadd.xlane.f32.xlu2 %v1583_v15  ;;  %1855 = vst.msk [vmem:[#allocation2 + $0x1] ss:$2 sm:$0x7] %vm2595_vm0, %v1854_v5 }
 0x45b   : > { %v1856_v39 = vld [vmem:[#allocation2] sm:$0x3f] }
 0x4c7   : > { %v3840_v7 = vpop.xlane.xlu2 %1584 }
 0x4d1   : > { %v1742_v24 = vpop.f32.mrf.mxu0 }
 0x4d2   : > { %v1788_v14 = vadd.f32 %v3403_v6, %v1742_v24 }
 0x4d6   : > { %v1702_v36 = vpop.f32.mrf.mxu2  ;;  %v1722_v41 = vpop.f32.mrf.mxu3 }
 0x4d7   : > { %v1745_v44 = vadd.f32 %v1702_v36, %v1636_v40  ;;  %v1768_v45 = vadd.f32 %v1766_v32, %v1722_v41  ;;  %v1986_v40 = vrot.slane %v1856_v39, 2 }
 0x4d9   : > { %v2201_v57 = vmul.f32 -1.442695, %v1745_v44  ;;  %v2202_v11 = vmul.f32 -1.442695, %v1768_v45 }
 0x4db   : > { %2316 = vpow2.f32 %v2201_v57 }
 0x4dc   : > { %2318 = vpow2.f32 %v2202_v11 }
 0x4e1   : > { %v2317_v23 = vpop.eup %2316 }
 0x4e2   : > { %v1749_v28 = vadd.f32 1.0, %v2317_v23  ;;  %v2319_v38 = vpop.eup %2318 }
 0x4e3   : > { %v1772_v49 = vadd.f32 1.0, %v2319_v38 }
 0x4e4   : > { %2320 = vrcp.f32 %v1749_v28  ;;  %v1761_v53 = vand.u32 2147483648, %v1749_v28  ;;  %v1759_v59 = vand.u32 2147483647, %v1749_v28  ;;  %vm1755_vm0 = vweird.f32 %v1749_v28 }
 0x4e5   : > { %2322 = vrcp.f32 %v1772_v49  ;;  %v1784_v51 = vand.u32 2147483648, %v1772_v49  ;;  %vm1778_vm4 = vweird.f32 %v1772_v49  ;;  %v1782_v54 = vand.u32 2147483647, %v1772_v49 }
 0x4e6   : > { %v1762_v8 = vor.u32 1.1754944e-38, %v1761_v53  ;;  %vm1760_vm2 = vcmp.eq.f32.partialorder %v1759_v59, 8.507059e+37 }
 0x4e7   : > { %v1785_v47 = vor.u32 1.1754944e-38, %v1784_v51  ;;  %vm1783_vm6 = vcmp.eq.f32.partialorder %v1782_v54, 8.507059e+37 }
 0x4ea   : > { %v2321_v62 = vpop.eup %2320 }
 0x4eb   : > { %v1751_v50 = vmul.f32 %v2321_v62, %v1749_v28  ;;  %v2323_v48 = vpop.eup %2322  ;;  %vm1756_vm15 = vweird.f32 %v2321_v62 }
 0x4ec   : > { %v1774_v55 = vmul.f32 %v2323_v48, %v1772_v49  ;;  %vm1757_vm1 = vmor %vm1755_vm0, %vm1756_vm15  ;;  %vm1779_vm3 = vweird.f32 %v2323_v48 }
 0x4ed   : > { %v1752_v16 = vsub.f32 1.0, %v1751_v50  ;;  %vm1780_vm5 = vmor %vm1778_vm4, %vm1779_vm3 }
 0x4ee   : > { %v1775_v63 = vsub.f32 1.0, %v1774_v55 }
 0x4ef   : > { %v1753_v12 = vmul.f32 %v2321_v62, %v1752_v16 }
 0x4f0   : > { %v1776_v9 = vmul.f32 %v2323_v48, %v1775_v63 }
 0x4f1   : > { %v1754_v0 = vadd.f32 %v2321_v62, %v1753_v12 }
 0x4f2   : > { %v1777_v31 = vadd.f32 %v2323_v48, %v1776_v9 }
 0x4f3   : > { %v1758_v25 = vsel %vm1757_vm1, %v2321_v62, %v1754_v0 }
 0x4f4   : > { %v1763_v30 = vsel %vm1760_vm2, %v1762_v8, %v1758_v25  ;;  %v1781_v35 = vsel %vm1780_vm5, %v2323_v48, %v1777_v31 }
 0x4f5   : > { %v1789_v34 = vmul.f32 %v1788_v14, %v1763_v30  ;;  %v1786_v6 = vsel %vm1783_vm6, %v1785_v47, %v1781_v35 }
 0x4f6   : > { %v1794_v20 = vsub.f32 1.0, %v1786_v6  ;;  %v1796_v3 = vmul.f32 %v1786_v6, %v3804_v10 }
 0x4f7   : > { %v1792_v61 = vadd.f32 %v1790_v26, %v1789_v34  ;;  %v2010_v26 = vrot.slane %v1856_v39, 4 }
 0x4f9   : > { %2324 = vtanh.f32 %v1792_v61 }
 0x4ff   : > { %v2325_v58 = vpop.eup %2324 }
 0x500   : > { %v1795_v37 = vmul.f32 %v2325_v58, %v1794_v20 }
 0x502   : > { %v1797_v33 = vadd.f32 %v1796_v3, %v1795_v37 }
 0x504   : > { %v3830_v52 = vsel %vm1801_vm7, %v1797_v33, %v3804_v10  ;;  %v2020_v33 = vstv %s2019_s25 }
 0x505   : > { %1921 = vmatmul.f32.vlgmr.msrb.gmra.mxu1 %v3830_v52  ;;  %1941 = vmatmul.f32.vlgmr.msrb.gmra.mxu2 %v3830_v52  ;;  %v1803_v22 = vsel %vm477_vm10, %v3830_v52, 0.0  ;;  %v1807_v42 = vmul.f32 %v3830_v52, %v3830_v52  ;;  %vm2021_vm4 = vcmp.eq.s32.totalorder %v2020_v33, 1 }
 0x506   : > { %1961 = vmatmul.f32.vlgmr.msrb.gmra.mxu3 %v3830_v52  ;;  %1804 = vadd.xlane.f32.xlu0 %v1803_v22 }
 0x507   : > { %v1808_v19 = vsel %vm477_vm10, %v1807_v42, 0.0 }
 0x508   : > { %1809 = vadd.xlane.f32.xlu2 %v1808_v19 }
 0x579   : > { %v1805_v29 = vpop.xlane.xlu0 %1804 }
 0x57a   : > { %v1806_v1 = vmul.f32 0.03125, %v1805_v29 }
 0x57b   : > { %v1810_v4 = vpop.xlane.xlu2 %1809 }
 0x57c   : > { %v1812_v13 = vmul.f32 %v1806_v1, %v1806_v1  ;;  %v1811_v17 = vmul.f32 0.03125, %v1810_v4  ;;  %v1814_v38 = vsub.f32 %v3830_v52, %v1806_v1 }
 0x57e   : > { %v1813_v18 = vsub.f32 %v1811_v17, %v1812_v13 }
 0x580   : > { %v1815_v43 = vadd.f32 1e-05, %v1813_v18  ;;  %v1587_v18 = vmul.f32 %v3804_v10, %v3804_v10 }
 0x582   : > { %2326 = vrsqrt.f32 %v1815_v43  ;;  %v1922_v27 = vpop.f32.mrf.mxu1  ;;  %vm1822_vm9 = vweird.f32 %v1815_v43 }
 0x583   : > { %v1965_v2 = vadd.f32 %v1922_v27, %v1856_v39 }
 0x585   : > { %v2207_v15 = vmul.f32 -1.442695, %v1965_v2 }
 0x587   : > { %2328 = vpow2.f32 %v2207_v15 }
 0x588   : > { %v2327_v32 = vpop.eup %2326  ;;  %v1942_v36 = vpop.f32.mrf.mxu2 }
 0x589   : > { %v1817_v41 = vmul.f32 %v2327_v32, %v1815_v43  ;;  %v1988_v44 = vadd.f32 %v1986_v40, %v1942_v36  ;;  %vm1823_vm8 = vweird.f32 %v2327_v32  ;;  %v1962_v9 = vpop.f32.mrf.mxu3  ;;  %v1588_v43 = vsel %vm477_vm10, %v1587_v18, 0.0 }
 0x58a   : > { %vm1824_vm11 = vmor %vm1822_vm9, %vm1823_vm8 }
 0x58b   : > { %v1818_v45 = vmul.f32 %v2327_v32, %v1817_v41  ;;  %v2208_v57 = vmul.f32 -1.442695, %v1988_v44 }
 0x58d   : > { %v2329_v46 = vpop.eup %2328  ;;  %v1819_v5 = vmul.f32 0.5, %v1818_v45  ;;  %2330 = vpow2.f32 %v2208_v57 }
 0x58e   : > { %v1969_v11 = vadd.f32 1.0, %v2329_v46 }
 0x58f   : > { %v1820_v23 = vsub.f32 1.5, %v1819_v5 }
 0x590   : > { %2332 = vrcp.f32 %v1969_v11  ;;  %v1981_v24 = vand.u32 2147483648, %v1969_v11  ;;  %v1979_v0 = vand.u32 2147483647, %v1969_v11  ;;  %vm1975_vm13 = vweird.f32 %v1969_v11 }
 0x591   : > { %v1821_v28 = vmul.f32 %v2327_v32, %v1820_v23 }
 0x592   : > { %v1982_v30 = vor.u32 1.1754944e-38, %v1981_v24  ;;  %vm1980_vm15 = vcmp.eq.f32.partialorder %v1979_v0, 8.507059e+37 }
 0x593   : > { %v2331_v49 = vpop.eup %2330  ;;  %v1825_v62 = vsel %vm1824_vm11, %v2327_v32, %v1821_v28 }
 0x594   : > { %v1826_v50 = vmul.f32 %v1825_v62, %v1814_v38  ;;  %v1992_v48 = vadd.f32 1.0, %v2331_v49 }
 0x596   : > { %v2333_v16 = vpop.eup %2332  ;;  %v1827_v53 = vmul.f32 %v3450_v56, %v1826_v50  ;;  %2334 = vrcp.f32 %v1992_v48  ;;  %v2004_v61 = vand.u32 2147483648, %v1992_v48  ;;  %v2002_v47 = vand.u32 2147483647, %v1992_v48 }
 0x597   : > { %v1971_v55 = vmul.f32 %v2333_v16, %v1969_v11  ;;  %vm1976_vm12 = vweird.f32 %v2333_v16  ;;  %vm1998_vm1 = vweird.f32 %v1992_v48 }
 0x598   : > { %v1828_v12 = vadd.f32 %v3456_v60, %v1827_v53  ;;  %vm1977_vm14 = vmor %vm1975_vm13, %vm1976_vm12  ;;  %v2345_v60 = vld [vmem:[%s3877_s3] ss:$0 sm:$0xff]  ;;  %v2005_v21 = vor.u32 1.1754944e-38, %v2004_v61  ;;  %vm2003_vm3 = vcmp.eq.f32.partialorder %v2002_v47, 8.507059e+37 }
 0x599   : > { %v1972_v59 = vsub.f32 1.0, %v1971_v55  ;;  %v2008_v34 = vadd.f32 %v2345_v60, %v1962_v9 }
 0x59a   : > { %2203 = vst [vmem:[%s2437_s15 + $0xc] sm:$0x3] %v1828_v12 }
 0x59b   : > { %v1973_v63 = vmul.f32 %v2333_v16, %v1972_v59  ;;  %v2346_v59 = vld [vmem:[%s3879_s5] ss:$0 sm:$0xff] }
 0x59c   : > { %v2335_v8 = vpop.eup %2334 }
 0x59d   : > { %v1994_v14 = vmul.f32 %v2335_v8, %v1992_v48  ;;  %v1974_v25 = vadd.f32 %v2333_v16, %v1973_v63  ;;  %vm1999_vm0 = vweird.f32 %v2335_v8 }
 0x59e   : > { %vm2000_vm2 = vmor %vm1998_vm1, %vm1999_vm0 }
 0x59f   : > { %v1995_v56 = vsub.f32 1.0, %v1994_v14  ;;  %v1978_v31 = vsel %vm1977_vm14, %v2333_v16, %v1974_v25 }
 0x5a0   : > { %v1983_v51 = vsel %vm1980_vm15, %v1982_v30, %v1978_v31 }
 0x5a1   : > { %v1996_v54 = vmul.f32 %v2335_v8, %v1995_v56  ;;  %v2009_v35 = vmul.f32 %v2008_v34, %v1983_v51 }
 0x5a3   : > { %v2012_v6 = vadd.f32 %v2010_v26, %v2009_v35  ;;  %v1997_v20 = vadd.f32 %v2335_v8, %v1996_v54 }
 0x5a5   : > { %2336 = vtanh.f32 %v2012_v6  ;;  %v2001_v58 = vsel %vm2000_vm2, %v2335_v8, %v1997_v20  ;;  %v2347_v8 = vld [vmem:[%s3880_s6] ss:$0 sm:$0xff] }
 0x5a6   : > { %v2006_v37 = vsel %vm2003_vm3, %v2005_v21, %v2001_v58 }
 0x5a7   : > { %v2014_v3 = vsub.f32 1.0, %v2006_v37  ;;  %v2016_v19 = vmul.f32 %v2006_v37, %v3830_v52 }
 0x5ab   : > { %v2337_v22 = vpop.eup %2336 }
 0x5ac   : > { %v2015_v42 = vmul.f32 %v2337_v22, %v2014_v3 }
 0x5ae   : > { %v2017_v29 = vadd.f32 %v2016_v19, %v2015_v42 }
 0x5b0   : > { %v2022_v1 = vsel %vm2021_vm4, %v2017_v29, %v3830_v52  ;;  %v1586_v52 = vmul.f32 0.03125, %v3840_v7 }
 0x5b1   : > { %v2023_v4 = vsel %vm477_vm10, %v2022_v1, 0.0  ;;  %2051 = vst [vmem:[#allocation3] sm:$0x3] %v2022_v1  ;;  %v2027_v13 = vmul.f32 %v2022_v1, %v2022_v1 }
 0x5b2   : > { %2024 = vadd.xlane.f32.xlu1 %v2023_v4  ;;  %v1592_v44 = vmul.f32 %v1586_v52, %v1586_v52  ;;  %v1594_v0 = vsub.f32 %v3804_v10, %v1586_v52 }
 0x5b3   : > { %v2028_v17 = vsel %vm477_vm10, %v2027_v13, 0.0 }
 0x5b4   : > { %2029 = vadd.xlane.f32.xlu0 %v2028_v17 }
 0x5ba   : > { %1589 = vadd.xlane.f32.xlu1 %v1588_v43 }
 0x625   : > { %v2025_v39 = vpop.xlane.xlu1 %2024 }
 0x626   : > { %v2026_v27 = vmul.f32 0.03125, %v2025_v39 }
 0x627   : > { %v2030_v2 = vpop.xlane.xlu0 %2029 }
 0x628   : > { %v2032_v15 = vmul.f32 %v2026_v27, %v2026_v27  ;;  %v2031_v40 = vmul.f32 0.03125, %v2030_v2  ;;  %v2034_v48 = vsub.f32 %v2022_v1, %v2026_v27 }
 0x62a   : > { %v2033_v32 = vsub.f32 %v2031_v40, %v2032_v15 }
 0x62c   : > { %v2035_v36 = vadd.f32 1e-05, %v2033_v32 }
 0x62d   : > { %v1590_v41 = vpop.xlane.xlu1 %1589 }
 0x62e   : > { %2338 = vrsqrt.f32 %v2035_v36  ;;  %v1591_v45 = vmul.f32 0.03125, %v1590_v41  ;;  %vm2042_vm5 = vweird.f32 %v2035_v36 }
 0x630   : > { %v1593_v57 = vsub.f32 %v1591_v45, %v1592_v44 }
 0x632   : > { %v1595_v46 = vadd.f32 1e-05, %v1593_v57 }
 0x634   : > { %v2339_v5 = vpop.eup %2338  ;;  %2340 = vrsqrt.f32 %v1595_v46  ;;  %vm1602_vm8 = vweird.f32 %v1595_v46 }
 0x635   : > { %v2037_v11 = vmul.f32 %v2339_v5, %v2035_v36  ;;  %vm2043_vm10 = vweird.f32 %v2339_v5 }
 0x636   : > { %vm2044_vm6 = vmor %vm2042_vm5, %vm2043_vm10 }
 0x637   : > { %v2038_v23 = vmul.f32 %v2339_v5, %v2037_v11 }
 0x639   : > { %v2039_v28 = vmul.f32 0.5, %v2038_v23 }
 0x63a   : > { %v2341_v38 = vpop.eup %2340 }
 0x63b   : > { %v2040_v49 = vsub.f32 1.5, %v2039_v28  ;;  %v1597_v62 = vmul.f32 %v2341_v38, %v1595_v46  ;;  %vm1603_vm7 = vweird.f32 %v2341_v38 }
 0x63c   : > { %vm1604_vm9 = vmor %vm1602_vm8, %vm1603_vm7 }
 0x63d   : > { %v2041_v50 = vmul.f32 %v2339_v5, %v2040_v49  ;;  %v1598_v7 = vmul.f32 %v2341_v38, %v1597_v62 }
 0x63f   : > { %v2045_v16 = vsel %vm2044_vm6, %v2339_v5, %v2041_v50  ;;  %v1599_v53 = vmul.f32 0.5, %v1598_v7 }
 0x640   : > { %v2046_v55 = vmul.f32 %v2045_v16, %v2034_v48 }
 0x641   : > { %v1600_v12 = vsub.f32 1.5, %v1599_v53 }
 0x642   : > { %v2047_v24 = vmul.f32 %v2346_v59, %v2046_v55 }
 0x643   : > { %v1601_v63 = vmul.f32 %v2341_v38, %v1600_v12 }
 0x644   : > { %v2048_v9 = vadd.f32 %v2347_v8, %v2047_v24 }
 0x645   : > { %v1605_v14 = vsel %vm1604_vm9, %v2341_v38, %v1601_v63 }
 0x646   : > { %2209 = vst [vmem:[%s2437_s15 + $0xe] sm:$0x3] %v2048_v9  ;;  %v1606_v25 = vmul.f32 %v1605_v14, %v1594_v0 }
 0x648   : > { %v1607_v26 = vmul.f32 %v2346_v59, %v1606_v25  ;;  %2055 = sbr.rel (%p2210_p13) target bundleno = 1614 (0x64e), region = 52 }
 0x64a   : > { %v1608_v30 = vadd.f32 %v2347_v8, %v1607_v26 }
 0x64c   : > { %2197 = vst [vmem:[%s2437_s15 + $0xa] sm:$0x3] %v1608_v30 }
 0x64d   : > { %2056 = vst [vmem:[%s3882_s8] sm:$0x3] %v2022_v1 }
 0x64e PF: > { %s27_s9 = sadd.s32 1, %s2368_s9  }
 0x64f   : > { %p24_p0 = scmp.ge.s32.totalorder %s27_s9, 4  }
 0x651   :  { %26 = sbr.rel (!%p24_p0) target bundleno = 7 (0x7), region = 111 }

</bundles_post_ra>
